<compile_context>
chip_gen: v6e
topology: v6e:2x2x1
jax: 0.10.0
libtpu: 0.0.40
codegen_flags: <defaults>
</compile_context>

<pallas_src>
import functools

import jax
import jax.numpy as jnp
from jax import lax
from jax.experimental import pallas as pl
from jax.experimental.pallas import tpu as pltpu


# ----------------------------------------------------------------------------
# In-kernel helpers
# ----------------------------------------------------------------------------
def _lstm_scan(gx_fn, whh, out_ref, *, seq, batch, hid):
    """Recurrent part of one LSTM layer (zero initial state).

    gx_fn(t) -> (batch, 4*hid): precomputed input projection (+ bias) for step t.
    whh:       (hid, 4*hid) recurrent weight (already transposed), a VALUE.
    out_ref:   VMEM ref (seq*batch, hid); h_t written to rows [t*batch, (t+1)*batch).
    Returns the final hidden state (batch, hid).
    """
    def step(t, carry):
        h, c = carry
        gates = gx_fn(t) + jnp.dot(h, whh, preferred_element_type=jnp.float32)
        # Apply activations to the full 4H vector once (full-vreg EUP ops),
        # then slice the gates (PyTorch order: i, f, g, o).
        sig = jax.nn.sigmoid(gates)
        tnh = jnp.tanh(gates)
        i_g = sig[:, 0 * hid:1 * hid]
        f_g = sig[:, 1 * hid:2 * hid]
        g_g = tnh[:, 2 * hid:3 * hid]
        o_g = sig[:, 3 * hid:4 * hid]
        c_new = f_g * c + i_g * g_g
        h_new = o_g * jnp.tanh(c_new)
        out_ref[pl.ds(t * batch, batch), :] = h_new
        return (h_new, c_new)

    h0 = jnp.zeros((batch, hid), jnp.float32)
    c0 = jnp.zeros((batch, hid), jnp.float32)
    h_last, _ = lax.fori_loop(0, seq, step, (h0, c0), unroll=True)
    return h_last


# ----------------------------------------------------------------------------
# Fused AutoLSTM kernel
# ----------------------------------------------------------------------------
def _auto_lstm_kernel(*refs, seq, batch, input_size, hidden_size, num_layers):
    nl = num_layers
    i = 0
    x_ref = refs[i]; i += 1                                        # (seq*batch, in)
    enc = [(refs[i + 3 * l], refs[i + 3 * l + 1], refs[i + 3 * l + 2])
           for l in range(nl)]
    i += 3 * nl
    dec = [(refs[i + 3 * l], refs[i + 3 * l + 1], refs[i + 3 * l + 2])
           for l in range(nl)]
    i += 3 * nl
    lin_w_ref = refs[i]; i += 1                                    # (in, in)
    lin_b_ref = refs[i]; i += 1                                    # (1, in)
    out_ref = refs[i]; i += 1                                      # (seq*batch, in)
    gx_enc = refs[i]; i += 1                                       # (seq*batch, 4*hid)
    gx_dec = refs[i]; i += 1                                       # (seq*batch, 4*in)
    act_enc = refs[i]; i += 1                                      # (seq*batch, hid)
    act_dec = refs[i]; i += 1                                      # (seq*batch, in)

    # ---------------- eLSTM encoder (zero initial states) ----------------
    # TODO(synk): nn.LSTM inter-layer dropout=0.2 is training-only; identity here.
    cur = x_ref[...]                                               # (seq*batch, in_feat)
    h_last = None
    for l in range(nl):
        wih_ref, whh_ref, b_ref = enc[l]
        # Hoisted input projection: one batched matmul for all timesteps.
        gx_enc[...] = (jnp.dot(cur, wih_ref[...],
                               preferred_element_type=jnp.float32) + b_ref[...])
        h_last = _lstm_scan(
            lambda t: gx_enc[pl.ds(t * batch, batch), :],
            whh_ref[...], act_enc, seq=seq, batch=batch, hid=hidden_size)
        cur = act_enc[...]                                         # (seq*batch, hid)

    # ---------------- dLSTM decoder (zero initial states) ----------------
    # Layer 0 input = encoder's last hidden state repeated over time, so its
    # input projection is time-constant: compute it once, reuse every step.
    wih_ref, whh_ref, b_ref = dec[0]
    gx_const = (jnp.dot(h_last, wih_ref[...],
                        preferred_element_type=jnp.float32) + b_ref[...])
    _lstm_scan(lambda t: gx_const, whh_ref[...], act_dec,
               seq=seq, batch=batch, hid=input_size)
    cur = act_dec[...]                                             # (seq*batch, in)
    for l in range(1, nl):
        wih_ref, whh_ref, b_ref = dec[l]
        gx_dec[...] = (jnp.dot(cur, wih_ref[...],
                               preferred_element_type=jnp.float32) + b_ref[...])
        _lstm_scan(lambda t: gx_dec[pl.ds(t * batch, batch), :],
                   whh_ref[...], act_dec, seq=seq, batch=batch, hid=input_size)
        cur = act_dec[...]

    # ---------------- final Linear (single lane-dense store) ----------------
    out_ref[...] = (jnp.dot(cur, lin_w_ref[...],
                            preferred_element_type=jnp.float32)
                    + lin_b_ref[...]).astype(out_ref.dtype)


# ----------------------------------------------------------------------------
# Wrapper
# ----------------------------------------------------------------------------
def _full_block(shape):
    zeros = (0,) * len(shape)
    return pl.BlockSpec(shape, lambda: zeros)


def auto_lstm_forward(x, elstm_params, dlstm_params, lin_w, lin_b):
    """x: (seq, batch, input_size) -> y: (seq, batch, input_size)."""
    # TODO(synk): bidirectional=True path not implemented (module default is False).
    seq, batch, input_size = x.shape
    hidden_size = elstm_params[0][1].shape[1]          # w_hh: (4H, H)
    num_layers = len(elstm_params)
    assert len(dlstm_params) == num_layers
    # nn.Linear(input_size // hidden_size * hidden_size, input_size) only matches
    # the decoder output (feature dim == input_size) when input_size % hidden_size
    # == 0 — same constraint as the PyTorch model.
    assert lin_w.shape[1] == input_size, lin_w.shape

    x2d = jnp.asarray(x, jnp.float32).reshape(seq * batch, input_size)

    def prep(w_ih, w_hh, b_ih, b_hh):
        return (jnp.asarray(w_ih, jnp.float32).T,                  # (in, 4H)
                jnp.asarray(w_hh, jnp.float32).T,                  # (H, 4H)
                (jnp.asarray(b_ih, jnp.float32)
                 + jnp.asarray(b_hh, jnp.float32)).reshape(1, -1)) # (1, 4H)

    inputs = [x2d]
    for p in elstm_params:
        inputs.extend(prep(*p))
    for p in dlstm_params:
        inputs.extend(prep(*p))
    inputs.append(jnp.asarray(lin_w, jnp.float32).T)               # (in, out)
    inputs.append(jnp.asarray(lin_b, jnp.float32).reshape(1, -1))  # (1, out)

    kernel = functools.partial(
        _auto_lstm_kernel, seq=seq, batch=batch, input_size=input_size,
        hidden_size=hidden_size, num_layers=num_layers)

    y2d = pl.pallas_call(
        kernel,
        out_shape=jax.ShapeDtypeStruct((seq * batch, input_size), jnp.float32),
        grid=(),
        in_specs=[_full_block(a.shape) for a in inputs],
        out_specs=pl.BlockSpec((seq * batch, input_size), lambda: (0, 0)),
        scratch_shapes=[
            pltpu.VMEM((seq * batch, 4 * hidden_size), jnp.float32),  # gx_enc
            pltpu.VMEM((seq * batch, 4 * input_size), jnp.float32),   # gx_dec
            pltpu.VMEM((seq * batch, hidden_size), jnp.float32),      # act_enc
            pltpu.VMEM((seq * batch, input_size), jnp.float32),       # act_dec
        ],
    )(*inputs)
    return y2d.reshape(seq, batch, input_size)


# ----------------------------------------------------------------------------
# Pure-JAX reference (for correctness check)
# ----------------------------------------------------------------------------
def _lstm_ref(x, params):
    seq, batch, _ = x.shape
    out = x
    for (w_ih, w_hh, b_ih, b_hh) in params:
        H = w_hh.shape[1]
        h = jnp.zeros((batch, H), jnp.float32)
        c = jnp.zeros((batch, H), jnp.float32)
        ys = []
        for t in range(seq):
            gates = out[t] @ w_ih.T + h @ w_hh.T + b_ih + b_hh
            i_g = jax.nn.sigmoid(gates[:, 0 * H:1 * H])
            f_g = jax.nn.sigmoid(gates[:, 1 * H:2 * H])
            g_g = jnp.tanh(gates[:, 2 * H:3 * H])
            o_g = jax.nn.sigmoid(gates[:, 3 * H:4 * H])
            c = f_g * c + i_g * g_g
            h = o_g * jnp.tanh(c)
            ys.append(h)
        out = jnp.stack(ys, axis=0)
    return out


def _auto_lstm_ref(x, elstm_params, dlstm_params, lin_w, lin_b):
    seq, batch, _ = x.shape
    enc = _lstm_ref(x, elstm_params)
    rep = jnp.broadcast_to(enc[-1][None], (seq, batch, enc.shape[-1]))
    dec = _lstm_ref(rep, dlstm_params)
    return dec @ lin_w.T + lin_b


# ----------------------------------------------------------------------------
# Deterministic parameter construction (shapes follow nn.LSTM / nn.Linear)
# ----------------------------------------------------------------------------
def make_lstm_params(key, input_size, hidden_size, num_layers):
    params = []
    scale = 0.1
    for layer in range(num_layers):
        in_f = input_size if layer == 0 else hidden_size
        key, k1, k2, k3, k4 = jax.random.split(key, 5)
        w_ih = scale * jax.random.normal(k1, (4 * hidden_size, in_f), jnp.float32)
        w_hh = scale * jax.random.normal(k2, (4 * hidden_size, hidden_size), jnp.float32)
        b_ih = scale * jax.random.normal(k3, (4 * hidden_size,), jnp.float32)
        b_hh = scale * jax.random.normal(k4, (4 * hidden_size,), jnp.float32)
        params.append((w_ih, w_hh, b_ih, b_hh))
    return params, key


if __name__ == "__main__":
    # small shapes consistent with the module docstring (seq_len, 1, input_size)
    seq_len = 8
    batch = 1
    input_size = 64
    hidden_size = 32
    num_layers = 2

    key = jax.random.PRNGKey(0)
    key, kx = jax.random.split(key)
    x = jax.random.normal(kx, (seq_len, batch, input_size), jnp.float32)

    # eLSTM: input_size -> hidden_size
    elstm_params, key = make_lstm_params(key, input_size, hidden_size, num_layers)
    # dLSTM: hidden_size -> input_size
    dlstm_params, key = make_lstm_params(key, hidden_size, input_size, num_layers)
    # Linear(input_size // hidden_size * hidden_size, input_size)
    lin_in = input_size // hidden_size * hidden_size
    key, kw, kb = jax.random.split(key, 3)
    lin_w = 0.1 * jax.random.normal(kw, (input_size, lin_in), jnp.float32)
    lin_b = 0.1 * jax.random.normal(kb, (input_size,), jnp.float32)

    fwd = jax.jit(auto_lstm_forward)
    y = fwd(x, elstm_params, dlstm_params, lin_w, lin_b)
    jax.block_until_ready(y)
    assert y.shape == (seq_len, batch, input_size), y.shape

    with jax.default_matmul_precision("float32"):
        y_ref = _auto_lstm_ref(x, elstm_params, dlstm_params, lin_w, lin_b)
    max_err = float(jnp.max(jnp.abs(y - y_ref)))
    assert jnp.allclose(y, y_ref, rtol=1e-2, atol=1e-2), max_err

    print("KERNEL_OK")
</pallas_src>

<mosaic_0001>
module attributes {stable_mosaic.version = 11 : i64} {
  func.func @_auto_lstm_kernel(%arg0: memref<8x64xf32, #tpu.memory_space<vmem>>, %arg1: memref<64x128xf32, #tpu.memory_space<vmem>>, %arg2: memref<32x128xf32, #tpu.memory_space<vmem>>, %arg3: memref<1x128xf32, #tpu.memory_space<vmem>>, %arg4: memref<32x128xf32, #tpu.memory_space<vmem>>, %arg5: memref<32x128xf32, #tpu.memory_space<vmem>>, %arg6: memref<1x128xf32, #tpu.memory_space<vmem>>, %arg7: memref<32x256xf32, #tpu.memory_space<vmem>>, %arg8: memref<64x256xf32, #tpu.memory_space<vmem>>, %arg9: memref<1x256xf32, #tpu.memory_space<vmem>>, %arg10: memref<64x256xf32, #tpu.memory_space<vmem>>, %arg11: memref<64x256xf32, #tpu.memory_space<vmem>>, %arg12: memref<1x256xf32, #tpu.memory_space<vmem>>, %arg13: memref<64x64xf32, #tpu.memory_space<vmem>>, %arg14: memref<1x64xf32, #tpu.memory_space<vmem>>, %arg15: memref<8x64xf32, #tpu.memory_space<vmem>>, %arg16: memref<8x128xf32, #tpu.memory_space<vmem>>, %arg17: memref<8x256xf32, #tpu.memory_space<vmem>>, %arg18: memref<8x32xf32, #tpu.memory_space<vmem>>, %arg19: memref<8x64xf32, #tpu.memory_space<vmem>>) attributes {dimension_semantics = [], scalar_prefetch = 0 : i64, scratch_operands = 4 : i64, tpu.core_type = #tpu.core_type<tc>} {
    %c0 = arith.constant 0 : index
    %c0_0 = arith.constant 0 : index
    %0 = vector.load %arg0[%c0, %c0_0] : memref<8x64xf32, #tpu.memory_space<vmem>>, vector<8x64xf32>
    %c0_1 = arith.constant 0 : index
    %c0_2 = arith.constant 0 : index
    %1 = vector.load %arg1[%c0_1, %c0_2] : memref<64x128xf32, #tpu.memory_space<vmem>>, vector<64x128xf32>
    %cst = arith.constant dense<0.000000e+00> : vector<8x128xf32>
    %2 = tpu.matmul %0, %1, %cst {dimension_numbers = #tpu.dot_dimension_numbers<[1], [0], [0], [1], [0, 0, 1, 1], [], []>} : vector<8x64xf32>, vector<64x128xf32>, vector<8x128xf32> -> vector<8x128xf32>
    %c0_3 = arith.constant 0 : index
    %c0_4 = arith.constant 0 : index
    %3 = vector.load %arg3[%c0_3, %c0_4] : memref<1x128xf32, #tpu.memory_space<vmem>>, vector<1x128xf32>
    %4 = vector.broadcast %3 : vector<1x128xf32> to vector<8x128xf32>
    %5 = arith.addf %2, %4 : vector<8x128xf32>
    %c0_5 = arith.constant 0 : index
    %c0_6 = arith.constant 0 : index
    %6 = vector.load %arg16[%c0_5, %c0_6] : memref<8x128xf32, #tpu.memory_space<vmem>>, vector<8x128xf32>
    tpu.vector_store %arg16[%c0_5, %c0_6], %5 {strides = array<i32>} : memref<8x128xf32, #tpu.memory_space<vmem>>, vector<8x128xf32>,
    %c0_7 = arith.constant 0 : index
    %c0_8 = arith.constant 0 : index
    %7 = vector.load %arg2[%c0_7, %c0_8] : memref<32x128xf32, #tpu.memory_space<vmem>>, vector<32x128xf32>
    %cst_9 = arith.constant 0.000000e+00 : f32
    %8 = vector.broadcast %cst_9 : f32 to vector<1x32xf32>
    %cst_10 = arith.constant 0.000000e+00 : f32
    %9 = vector.broadcast %cst_10 : f32 to vector<1x32xf32>
    %c0_i32 = arith.constant 0 : i32
    %c1_i32 = arith.constant 1 : i32
    %10 = arith.muli %c0_i32, %c1_i32 : i32
    %11 = arith.index_cast %10 : i32 to index
    %c0_11 = arith.constant 0 : index
    %12 = vector.load %arg16[%11, %c0_11] : memref<8x128xf32, #tpu.memory_space<vmem>>, vector<1x128xf32>
    %cst_12 = arith.constant dense<0.000000e+00> : vector<1x128xf32>
    %13 = tpu.matmul %8, %7, %cst_12 {dimension_numbers = #tpu.dot_dimension_numbers<[1], [0], [0], [1], [0, 0, 1, 1], [], []>} : vector<1x32xf32>, vector<32x128xf32>, vector<1x128xf32> -> vector<1x128xf32>
    %14 = arith.addf %12, %13 : vector<1x128xf32>
    %15 = arith.negf %14 : vector<1x128xf32>
    %16 = math.exp %15 : vector<1x128xf32>
    %cst_13 = arith.constant 1.000000e+00 : f32
    %17 = vector.broadcast %cst_13 : f32 to vector<1x128xf32>
    %18 = arith.addf %17, %16 : vector<1x128xf32>
    %19 = arith.divf %17, %18 : vector<1x128xf32>
    %20 = math.tanh %14 : vector<1x128xf32>
    %21 = vector.extract_strided_slice %19 {offsets = [0, 0], sizes = [1, 32], strides = [1, 1]} : vector<1x128xf32> to vector<1x32xf32>
    %22 = vector.extract_strided_slice %19 {offsets = [0, 32], sizes = [1, 32], strides = [1, 1]} : vector<1x128xf32> to vector<1x32xf32>
    %23 = vector.extract_strided_slice %20 {offsets = [0, 64], sizes = [1, 32], strides = [1, 1]} : vector<1x128xf32> to vector<1x32xf32>
    %24 = vector.extract_strided_slice %19 {offsets = [0, 96], sizes = [1, 32], strides = [1, 1]} : vector<1x128xf32> to vector<1x32xf32>
    %25 = arith.mulf %22, %9 : vector<1x32xf32>
    %26 = arith.mulf %21, %23 : vector<1x32xf32>
    %27 = arith.addf %25, %26 : vector<1x32xf32>
    %28 = math.tanh %27 : vector<1x32xf32>
    %29 = arith.mulf %24, %28 : vector<1x32xf32>
    %c1_i32_14 = arith.constant 1 : i32
    %30 = arith.muli %c0_i32, %c1_i32_14 : i32
    %31 = arith.index_cast %30 : i32 to index
    %c0_15 = arith.constant 0 : index
    %32 = vector.load %arg18[%31, %c0_15] : memref<8x32xf32, #tpu.memory_space<vmem>>, vector<1x32xf32>
    tpu.vector_store %arg18[%31, %c0_15], %29 {strides = array<i32>} : memref<8x32xf32, #tpu.memory_space<vmem>>, vector<1x32xf32>,
    %c1_i32_16 = arith.constant 1 : i32
    %c1_i32_17 = arith.constant 1 : i32
    %33 = arith.muli %c1_i32_16, %c1_i32_17 : i32
    %34 = arith.index_cast %33 : i32 to index
    %c0_18 = arith.constant 0 : index
    %35 = vector.load %arg16[%34, %c0_18] : memref<8x128xf32, #tpu.memory_space<vmem>>, vector<1x128xf32>
    %cst_19 = arith.constant dense<0.000000e+00> : vector<1x128xf32>
    %36 = tpu.matmul %29, %7, %cst_19 {dimension_numbers = #tpu.dot_dimension_numbers<[1], [0], [0], [1], [0, 0, 1, 1], [], []>} : vector<1x32xf32>, vector<32x128xf32>, vector<1x128xf32> -> vector<1x128xf32>
    %37 = arith.addf %35, %36 : vector<1x128xf32>
    %38 = arith.negf %37 : vector<1x128xf32>
    %39 = math.exp %38 : vector<1x128xf32>
    %cst_20 = arith.constant 1.000000e+00 : f32
    %40 = vector.broadcast %cst_20 : f32 to vector<1x128xf32>
    %41 = arith.addf %40, %39 : vector<1x128xf32>
    %42 = arith.divf %40, %41 : vector<1x128xf32>
    %43 = math.tanh %37 : vector<1x128xf32>
    %44 = vector.extract_strided_slice %42 {offsets = [0, 0], sizes = [1, 32], strides = [1, 1]} : vector<1x128xf32> to vector<1x32xf32>
    %45 = vector.extract_strided_slice %42 {offsets = [0, 32], sizes = [1, 32], strides = [1, 1]} : vector<1x128xf32> to vector<1x32xf32>
    %46 = vector.extract_strided_slice %43 {offsets = [0, 64], sizes = [1, 32], strides = [1, 1]} : vector<1x128xf32> to vector<1x32xf32>
    %47 = vector.extract_strided_slice %42 {offsets = [0, 96], sizes = [1, 32], strides = [1, 1]} : vector<1x128xf32> to vector<1x32xf32>
    %48 = arith.mulf %45, %27 : vector<1x32xf32>
    %49 = arith.mulf %44, %46 : vector<1x32xf32>
    %50 = arith.addf %48, %49 : vector<1x32xf32>
    %51 = math.tanh %50 : vector<1x32xf32>
    %52 = arith.mulf %47, %51 : vector<1x32xf32>
    %c1_i32_21 = arith.constant 1 : i32
    %53 = arith.muli %c1_i32_16, %c1_i32_21 : i32
    %54 = arith.index_cast %53 : i32 to index
    %c0_22 = arith.constant 0 : index
    %55 = vector.load %arg18[%54, %c0_22] : memref<8x32xf32, #tpu.memory_space<vmem>>, vector<1x32xf32>
    tpu.vector_store %arg18[%54, %c0_22], %52 {strides = array<i32>} : memref<8x32xf32, #tpu.memory_space<vmem>>, vector<1x32xf32>,
    %c2_i32 = arith.constant 2 : i32
    %c1_i32_23 = arith.constant 1 : i32
    %56 = arith.muli %c2_i32, %c1_i32_23 : i32
    %57 = arith.index_cast %56 : i32 to index
    %c0_24 = arith.constant 0 : index
    %58 = vector.load %arg16[%57, %c0_24] : memref<8x128xf32, #tpu.memory_space<vmem>>, vector<1x128xf32>
    %cst_25 = arith.constant dense<0.000000e+00> : vector<1x128xf32>
    %59 = tpu.matmul %52, %7, %cst_25 {dimension_numbers = #tpu.dot_dimension_numbers<[1], [0], [0], [1], [0, 0, 1, 1], [], []>} : vector<1x32xf32>, vector<32x128xf32>, vector<1x128xf32> -> vector<1x128xf32>
    %60 = arith.addf %58, %59 : vector<1x128xf32>
    %61 = arith.negf %60 : vector<1x128xf32>
    %62 = math.exp %61 : vector<1x128xf32>
    %cst_26 = arith.constant 1.000000e+00 : f32
    %63 = vector.broadcast %cst_26 : f32 to vector<1x128xf32>
    %64 = arith.addf %63, %62 : vector<1x128xf32>
    %65 = arith.divf %63, %64 : vector<1x128xf32>
    %66 = math.tanh %60 : vector<1x128xf32>
    %67 = vector.extract_strided_slice %65 {offsets = [0, 0], sizes = [1, 32], strides = [1, 1]} : vector<1x128xf32> to vector<1x32xf32>
    %68 = vector.extract_strided_slice %65 {offsets = [0, 32], sizes = [1, 32], strides = [1, 1]} : vector<1x128xf32> to vector<1x32xf32>
    %69 = vector.extract_strided_slice %66 {offsets = [0, 64], sizes = [1, 32], strides = [1, 1]} : vector<1x128xf32> to vector<1x32xf32>
    %70 = vector.extract_strided_slice %65 {offsets = [0, 96], sizes = [1, 32], strides = [1, 1]} : vector<1x128xf32> to vector<1x32xf32>
    %71 = arith.mulf %68, %50 : vector<1x32xf32>
    %72 = arith.mulf %67, %69 : vector<1x32xf32>
    %73 = arith.addf %71, %72 : vector<1x32xf32>
    %74 = math.tanh %73 : vector<1x32xf32>
    %75 = arith.mulf %70, %74 : vector<1x32xf32>
    %c1_i32_27 = arith.constant 1 : i32
    %76 = arith.muli %c2_i32, %c1_i32_27 : i32
    %77 = arith.index_cast %76 : i32 to index
    %c0_28 = arith.constant 0 : index
    %78 = vector.load %arg18[%77, %c0_28] : memref<8x32xf32, #tpu.memory_space<vmem>>, vector<1x32xf32>
    tpu.vector_store %arg18[%77, %c0_28], %75 {strides = array<i32>} : memref<8x32xf32, #tpu.memory_space<vmem>>, vector<1x32xf32>,
    %c3_i32 = arith.constant 3 : i32
    %c1_i32_29 = arith.constant 1 : i32
    %79 = arith.muli %c3_i32, %c1_i32_29 : i32
    %80 = arith.index_cast %79 : i32 to index
    %c0_30 = arith.constant 0 : index
    %81 = vector.load %arg16[%80, %c0_30] : memref<8x128xf32, #tpu.memory_space<vmem>>, vector<1x128xf32>
    %cst_31 = arith.constant dense<0.000000e+00> : vector<1x128xf32>
    %82 = tpu.matmul %75, %7, %cst_31 {dimension_numbers = #tpu.dot_dimension_numbers<[1], [0], [0], [1], [0, 0, 1, 1], [], []>} : vector<1x32xf32>, vector<32x128xf32>, vector<1x128xf32> -> vector<1x128xf32>
    %83 = arith.addf %81, %82 : vector<1x128xf32>
    %84 = arith.negf %83 : vector<1x128xf32>
    %85 = math.exp %84 : vector<1x128xf32>
    %cst_32 = arith.constant 1.000000e+00 : f32
    %86 = vector.broadcast %cst_32 : f32 to vector<1x128xf32>
    %87 = arith.addf %86, %85 : vector<1x128xf32>
    %88 = arith.divf %86, %87 : vector<1x128xf32>
    %89 = math.tanh %83 : vector<1x128xf32>
    %90 = vector.extract_strided_slice %88 {offsets = [0, 0], sizes = [1, 32], strides = [1, 1]} : vector<1x128xf32> to vector<1x32xf32>
    %91 = vector.extract_strided_slice %88 {offsets = [0, 32], sizes = [1, 32], strides = [1, 1]} : vector<1x128xf32> to vector<1x32xf32>
    %92 = vector.extract_strided_slice %89 {offsets = [0, 64], sizes = [1, 32], strides = [1, 1]} : vector<1x128xf32> to vector<1x32xf32>
    %93 = vector.extract_strided_slice %88 {offsets = [0, 96], sizes = [1, 32], strides = [1, 1]} : vector<1x128xf32> to vector<1x32xf32>
    %94 = arith.mulf %91, %73 : vector<1x32xf32>
    %95 = arith.mulf %90, %92 : vector<1x32xf32>
    %96 = arith.addf %94, %95 : vector<1x32xf32>
    %97 = math.tanh %96 : vector<1x32xf32>
    %98 = arith.mulf %93, %97 : vector<1x32xf32>
    %c1_i32_33 = arith.constant 1 : i32
    %99 = arith.muli %c3_i32, %c1_i32_33 : i32
    %100 = arith.index_cast %99 : i32 to index
    %c0_34 = arith.constant 0 : index
    %101 = vector.load %arg18[%100, %c0_34] : memref<8x32xf32, #tpu.memory_space<vmem>>, vector<1x32xf32>
    tpu.vector_store %arg18[%100, %c0_34], %98 {strides = array<i32>} : memref<8x32xf32, #tpu.memory_space<vmem>>, vector<1x32xf32>,
    %c4_i32 = arith.constant 4 : i32
    %c1_i32_35 = arith.constant 1 : i32
    %102 = arith.muli %c4_i32, %c1_i32_35 : i32
    %103 = arith.index_cast %102 : i32 to index
    %c0_36 = arith.constant 0 : index
    %104 = vector.load %arg16[%103, %c0_36] : memref<8x128xf32, #tpu.memory_space<vmem>>, vector<1x128xf32>
    %cst_37 = arith.constant dense<0.000000e+00> : vector<1x128xf32>
    %105 = tpu.matmul %98, %7, %cst_37 {dimension_numbers = #tpu.dot_dimension_numbers<[1], [0], [0], [1], [0, 0, 1, 1], [], []>} : vector<1x32xf32>, vector<32x128xf32>, vector<1x128xf32> -> vector<1x128xf32>
    %106 = arith.addf %104, %105 : vector<1x128xf32>
    %107 = arith.negf %106 : vector<1x128xf32>
    %108 = math.exp %107 : vector<1x128xf32>
    %cst_38 = arith.constant 1.000000e+00 : f32
    %109 = vector.broadcast %cst_38 : f32 to vector<1x128xf32>
    %110 = arith.addf %109, %108 : vector<1x128xf32>
    %111 = arith.divf %109, %110 : vector<1x128xf32>
    %112 = math.tanh %106 : vector<1x128xf32>
    %113 = vector.extract_strided_slice %111 {offsets = [0, 0], sizes = [1, 32], strides = [1, 1]} : vector<1x128xf32> to vector<1x32xf32>
    %114 = vector.extract_strided_slice %111 {offsets = [0, 32], sizes = [1, 32], strides = [1, 1]} : vector<1x128xf32> to vector<1x32xf32>
    %115 = vector.extract_strided_slice %112 {offsets = [0, 64], sizes = [1, 32], strides = [1, 1]} : vector<1x128xf32> to vector<1x32xf32>
    %116 = vector.extract_strided_slice %111 {offsets = [0, 96], sizes = [1, 32], strides = [1, 1]} : vector<1x128xf32> to vector<1x32xf32>
    %117 = arith.mulf %114, %96 : vector<1x32xf32>
    %118 = arith.mulf %113, %115 : vector<1x32xf32>
    %119 = arith.addf %117, %118 : vector<1x32xf32>
    %120 = math.tanh %119 : vector<1x32xf32>
    %121 = arith.mulf %116, %120 : vector<1x32xf32>
    %c1_i32_39 = arith.constant 1 : i32
    %122 = arith.muli %c4_i32, %c1_i32_39 : i32
    %123 = arith.index_cast %122 : i32 to index
    %c0_40 = arith.constant 0 : index
    %124 = vector.load %arg18[%123, %c0_40] : memref<8x32xf32, #tpu.memory_space<vmem>>, vector<1x32xf32>
    tpu.vector_store %arg18[%123, %c0_40], %121 {strides = array<i32>} : memref<8x32xf32, #tpu.memory_space<vmem>>, vector<1x32xf32>,
    %c5_i32 = arith.constant 5 : i32
    %c1_i32_41 = arith.constant 1 : i32
    %125 = arith.muli %c5_i32, %c1_i32_41 : i32
    %126 = arith.index_cast %125 : i32 to index
    %c0_42 = arith.constant 0 : index
    %127 = vector.load %arg16[%126, %c0_42] : memref<8x128xf32, #tpu.memory_space<vmem>>, vector<1x128xf32>
    %cst_43 = arith.constant dense<0.000000e+00> : vector<1x128xf32>
    %128 = tpu.matmul %121, %7, %cst_43 {dimension_numbers = #tpu.dot_dimension_numbers<[1], [0], [0], [1], [0, 0, 1, 1], [], []>} : vector<1x32xf32>, vector<32x128xf32>, vector<1x128xf32> -> vector<1x128xf32>
    %129 = arith.addf %127, %128 : vector<1x128xf32>
    %130 = arith.negf %129 : vector<1x128xf32>
    %131 = math.exp %130 : vector<1x128xf32>
    %cst_44 = arith.constant 1.000000e+00 : f32
    %132 = vector.broadcast %cst_44 : f32 to vector<1x128xf32>
    %133 = arith.addf %132, %131 : vector<1x128xf32>
    %134 = arith.divf %132, %133 : vector<1x128xf32>
    %135 = math.tanh %129 : vector<1x128xf32>
    %136 = vector.extract_strided_slice %134 {offsets = [0, 0], sizes = [1, 32], strides = [1, 1]} : vector<1x128xf32> to vector<1x32xf32>
    %137 = vector.extract_strided_slice %134 {offsets = [0, 32], sizes = [1, 32], strides = [1, 1]} : vector<1x128xf32> to vector<1x32xf32>
    %138 = vector.extract_strided_slice %135 {offsets = [0, 64], sizes = [1, 32], strides = [1, 1]} : vector<1x128xf32> to vector<1x32xf32>
    %139 = vector.extract_strided_slice %134 {offsets = [0, 96], sizes = [1, 32], strides = [1, 1]} : vector<1x128xf32> to vector<1x32xf32>
    %140 = arith.mulf %137, %119 : vector<1x32xf32>
    %141 = arith.mulf %136, %138 : vector<1x32xf32>
    %142 = arith.addf %140, %141 : vector<1x32xf32>
    %143 = math.tanh %142 : vector<1x32xf32>
    %144 = arith.mulf %139, %143 : vector<1x32xf32>
    %c1_i32_45 = arith.constant 1 : i32
    %145 = arith.muli %c5_i32, %c1_i32_45 : i32
    %146 = arith.index_cast %145 : i32 to index
    %c0_46 = arith.constant 0 : index
    %147 = vector.load %arg18[%146, %c0_46] : memref<8x32xf32, #tpu.memory_space<vmem>>, vector<1x32xf32>
    tpu.vector_store %arg18[%146, %c0_46], %144 {strides = array<i32>} : memref<8x32xf32, #tpu.memory_space<vmem>>, vector<1x32xf32>,
    %c6_i32 = arith.constant 6 : i32
    %c1_i32_47 = arith.constant 1 : i32
    %148 = arith.muli %c6_i32, %c1_i32_47 : i32
    %149 = arith.index_cast %148 : i32 to index
    %c0_48 = arith.constant 0 : index
    %150 = vector.load %arg16[%149, %c0_48] : memref<8x128xf32, #tpu.memory_space<vmem>>, vector<1x128xf32>
    %cst_49 = arith.constant dense<0.000000e+00> : vector<1x128xf32>
    %151 = tpu.matmul %144, %7, %cst_49 {dimension_numbers = #tpu.dot_dimension_numbers<[1], [0], [0], [1], [0, 0, 1, 1], [], []>} : vector<1x32xf32>, vector<32x128xf32>, vector<1x128xf32> -> vector<1x128xf32>
    %152 = arith.addf %150, %151 : vector<1x128xf32>
    %153 = arith.negf %152 : vector<1x128xf32>
    %154 = math.exp %153 : vector<1x128xf32>
    %cst_50 = arith.constant 1.000000e+00 : f32
    %155 = vector.broadcast %cst_50 : f32 to vector<1x128xf32>
    %156 = arith.addf %155, %154 : vector<1x128xf32>
    %157 = arith.divf %155, %156 : vector<1x128xf32>
    %158 = math.tanh %152 : vector<1x128xf32>
    %159 = vector.extract_strided_slice %157 {offsets = [0, 0], sizes = [1, 32], strides = [1, 1]} : vector<1x128xf32> to vector<1x32xf32>
    %160 = vector.extract_strided_slice %157 {offsets = [0, 32], sizes = [1, 32], strides = [1, 1]} : vector<1x128xf32> to vector<1x32xf32>
    %161 = vector.extract_strided_slice %158 {offsets = [0, 64], sizes = [1, 32], strides = [1, 1]} : vector<1x128xf32> to vector<1x32xf32>
    %162 = vector.extract_strided_slice %157 {offsets = [0, 96], sizes = [1, 32], strides = [1, 1]} : vector<1x128xf32> to vector<1x32xf32>
    %163 = arith.mulf %160, %142 : vector<1x32xf32>
    %164 = arith.mulf %159, %161 : vector<1x32xf32>
    %165 = arith.addf %163, %164 : vector<1x32xf32>
    %166 = math.tanh %165 : vector<1x32xf32>
    %167 = arith.mulf %162, %166 : vector<1x32xf32>
    %c1_i32_51 = arith.constant 1 : i32
    %168 = arith.muli %c6_i32, %c1_i32_51 : i32
    %169 = arith.index_cast %168 : i32 to index
    %c0_52 = arith.constant 0 : index
    %170 = vector.load %arg18[%169, %c0_52] : memref<8x32xf32, #tpu.memory_space<vmem>>, vector<1x32xf32>
    tpu.vector_store %arg18[%169, %c0_52], %167 {strides = array<i32>} : memref<8x32xf32, #tpu.memory_space<vmem>>, vector<1x32xf32>,
    %c7_i32 = arith.constant 7 : i32
    %c1_i32_53 = arith.constant 1 : i32
    %171 = arith.muli %c7_i32, %c1_i32_53 : i32
    %172 = arith.index_cast %171 : i32 to index
    %c0_54 = arith.constant 0 : index
    %173 = vector.load %arg16[%172, %c0_54] : memref<8x128xf32, #tpu.memory_space<vmem>>, vector<1x128xf32>
    %cst_55 = arith.constant dense<0.000000e+00> : vector<1x128xf32>
    %174 = tpu.matmul %167, %7, %cst_55 {dimension_numbers = #tpu.dot_dimension_numbers<[1], [0], [0], [1], [0, 0, 1, 1], [], []>} : vector<1x32xf32>, vector<32x128xf32>, vector<1x128xf32> -> vector<1x128xf32>
    %175 = arith.addf %173, %174 : vector<1x128xf32>
    %176 = arith.negf %175 : vector<1x128xf32>
    %177 = math.exp %176 : vector<1x128xf32>
    %cst_56 = arith.constant 1.000000e+00 : f32
    %178 = vector.broadcast %cst_56 : f32 to vector<1x128xf32>
    %179 = arith.addf %178, %177 : vector<1x128xf32>
    %180 = arith.divf %178, %179 : vector<1x128xf32>
    %181 = math.tanh %175 : vector<1x128xf32>
    %182 = vector.extract_strided_slice %180 {offsets = [0, 0], sizes = [1, 32], strides = [1, 1]} : vector<1x128xf32> to vector<1x32xf32>
    %183 = vector.extract_strided_slice %180 {offsets = [0, 32], sizes = [1, 32], strides = [1, 1]} : vector<1x128xf32> to vector<1x32xf32>
    %184 = vector.extract_strided_slice %181 {offsets = [0, 64], sizes = [1, 32], strides = [1, 1]} : vector<1x128xf32> to vector<1x32xf32>
    %185 = vector.extract_strided_slice %180 {offsets = [0, 96], sizes = [1, 32], strides = [1, 1]} : vector<1x128xf32> to vector<1x32xf32>
    %186 = arith.mulf %183, %165 : vector<1x32xf32>
    %187 = arith.mulf %182, %184 : vector<1x32xf32>
    %188 = arith.addf %186, %187 : vector<1x32xf32>
    %189 = math.tanh %188 : vector<1x32xf32>
    %190 = arith.mulf %185, %189 : vector<1x32xf32>
    %c1_i32_57 = arith.constant 1 : i32
    %191 = arith.muli %c7_i32, %c1_i32_57 : i32
    %192 = arith.index_cast %191 : i32 to index
    %c0_58 = arith.constant 0 : index
    %193 = vector.load %arg18[%192, %c0_58] : memref<8x32xf32, #tpu.memory_space<vmem>>, vector<1x32xf32>
    tpu.vector_store %arg18[%192, %c0_58], %190 {strides = array<i32>} : memref<8x32xf32, #tpu.memory_space<vmem>>, vector<1x32xf32>,
    %c8_i32 = arith.constant 8 : i32
    %c0_59 = arith.constant 0 : index
    %c0_60 = arith.constant 0 : index
    %194 = vector.load %arg18[%c0_59, %c0_60] : memref<8x32xf32, #tpu.memory_space<vmem>>, vector<8x32xf32>
    %c0_61 = arith.constant 0 : index
    %c0_62 = arith.constant 0 : index
    %195 = vector.load %arg4[%c0_61, %c0_62] : memref<32x128xf32, #tpu.memory_space<vmem>>, vector<32x128xf32>
    %cst_63 = arith.constant dense<0.000000e+00> : vector<8x128xf32>
    %196 = tpu.matmul %194, %195, %cst_63 {dimension_numbers = #tpu.dot_dimension_numbers<[1], [0], [0], [1], [0, 0, 1, 1], [], []>} : vector<8x32xf32>, vector<32x128xf32>, vector<8x128xf32> -> vector<8x128xf32>
    %c0_64 = arith.constant 0 : index
    %c0_65 = arith.constant 0 : index
    %197 = vector.load %arg6[%c0_64, %c0_65] : memref<1x128xf32, #tpu.memory_space<vmem>>, vector<1x128xf32>
    %198 = vector.broadcast %197 : vector<1x128xf32> to vector<8x128xf32>
    %199 = arith.addf %196, %198 : vector<8x128xf32>
    %c0_66 = arith.constant 0 : index
    %c0_67 = arith.constant 0 : index
    %200 = vector.load %arg16[%c0_66, %c0_67] : memref<8x128xf32, #tpu.memory_space<vmem>>, vector<8x128xf32>
    tpu.vector_store %arg16[%c0_66, %c0_67], %199 {strides = array<i32>} : memref<8x128xf32, #tpu.memory_space<vmem>>, vector<8x128xf32>,
    %c0_68 = arith.constant 0 : index
    %c0_69 = arith.constant 0 : index
    %201 = vector.load %arg5[%c0_68, %c0_69] : memref<32x128xf32, #tpu.memory_space<vmem>>, vector<32x128xf32>
    %cst_70 = arith.constant 0.000000e+00 : f32
    %202 = vector.broadcast %cst_70 : f32 to vector<1x32xf32>
    %cst_71 = arith.constant 0.000000e+00 : f32
    %203 = vector.broadcast %cst_71 : f32 to vector<1x32xf32>
    %c0_i32_72 = arith.constant 0 : i32
    %c1_i32_73 = arith.constant 1 : i32
    %204 = arith.muli %c0_i32_72, %c1_i32_73 : i32
    %205 = arith.index_cast %204 : i32 to index
    %c0_74 = arith.constant 0 : index
    %206 = vector.load %arg16[%205, %c0_74] : memref<8x128xf32, #tpu.memory_space<vmem>>, vector<1x128xf32>
    %cst_75 = arith.constant dense<0.000000e+00> : vector<1x128xf32>
    %207 = tpu.matmul %202, %201, %cst_75 {dimension_numbers = #tpu.dot_dimension_numbers<[1], [0], [0], [1], [0, 0, 1, 1], [], []>} : vector<1x32xf32>, vector<32x128xf32>, vector<1x128xf32> -> vector<1x128xf32>
    %208 = arith.addf %206, %207 : vector<1x128xf32>
    %209 = arith.negf %208 : vector<1x128xf32>
    %210 = math.exp %209 : vector<1x128xf32>
    %cst_76 = arith.constant 1.000000e+00 : f32
    %211 = vector.broadcast %cst_76 : f32 to vector<1x128xf32>
    %212 = arith.addf %211, %210 : vector<1x128xf32>
    %213 = arith.divf %211, %212 : vector<1x128xf32>
    %214 = math.tanh %208 : vector<1x128xf32>
    %215 = vector.extract_strided_slice %213 {offsets = [0, 0], sizes = [1, 32], strides = [1, 1]} : vector<1x128xf32> to vector<1x32xf32>
    %216 = vector.extract_strided_slice %213 {offsets = [0, 32], sizes = [1, 32], strides = [1, 1]} : vector<1x128xf32> to vector<1x32xf32>
    %217 = vector.extract_strided_slice %214 {offsets = [0, 64], sizes = [1, 32], strides = [1, 1]} : vector<1x128xf32> to vector<1x32xf32>
    %218 = vector.extract_strided_slice %213 {offsets = [0, 96], sizes = [1, 32], strides = [1, 1]} : vector<1x128xf32> to vector<1x32xf32>
    %219 = arith.mulf %216, %203 : vector<1x32xf32>
    %220 = arith.mulf %215, %217 : vector<1x32xf32>
    %221 = arith.addf %219, %220 : vector<1x32xf32>
    %222 = math.tanh %221 : vector<1x32xf32>
    %223 = arith.mulf %218, %222 : vector<1x32xf32>
    %c1_i32_77 = arith.constant 1 : i32
    %224 = arith.muli %c0_i32_72, %c1_i32_77 : i32
    %225 = arith.index_cast %224 : i32 to index
    %c0_78 = arith.constant 0 : index
    %226 = vector.load %arg18[%225, %c0_78] : memref<8x32xf32, #tpu.memory_space<vmem>>, vector<1x32xf32>
    tpu.vector_store %arg18[%225, %c0_78], %223 {strides = array<i32>} : memref<8x32xf32, #tpu.memory_space<vmem>>, vector<1x32xf32>,
    %c1_i32_79 = arith.constant 1 : i32
    %c1_i32_80 = arith.constant 1 : i32
    %227 = arith.muli %c1_i32_79, %c1_i32_80 : i32
    %228 = arith.index_cast %227 : i32 to index
    %c0_81 = arith.constant 0 : index
    %229 = vector.load %arg16[%228, %c0_81] : memref<8x128xf32, #tpu.memory_space<vmem>>, vector<1x128xf32>
    %cst_82 = arith.constant dense<0.000000e+00> : vector<1x128xf32>
    %230 = tpu.matmul %223, %201, %cst_82 {dimension_numbers = #tpu.dot_dimension_numbers<[1], [0], [0], [1], [0, 0, 1, 1], [], []>} : vector<1x32xf32>, vector<32x128xf32>, vector<1x128xf32> -> vector<1x128xf32>
    %231 = arith.addf %229, %230 : vector<1x128xf32>
    %232 = arith.negf %231 : vector<1x128xf32>
    %233 = math.exp %232 : vector<1x128xf32>
    %cst_83 = arith.constant 1.000000e+00 : f32
    %234 = vector.broadcast %cst_83 : f32 to vector<1x128xf32>
    %235 = arith.addf %234, %233 : vector<1x128xf32>
    %236 = arith.divf %234, %235 : vector<1x128xf32>
    %237 = math.tanh %231 : vector<1x128xf32>
    %238 = vector.extract_strided_slice %236 {offsets = [0, 0], sizes = [1, 32], strides = [1, 1]} : vector<1x128xf32> to vector<1x32xf32>
    %239 = vector.extract_strided_slice %236 {offsets = [0, 32], sizes = [1, 32], strides = [1, 1]} : vector<1x128xf32> to vector<1x32xf32>
    %240 = vector.extract_strided_slice %237 {offsets = [0, 64], sizes = [1, 32], strides = [1, 1]} : vector<1x128xf32> to vector<1x32xf32>
    %241 = vector.extract_strided_slice %236 {offsets = [0, 96], sizes = [1, 32], strides = [1, 1]} : vector<1x128xf32> to vector<1x32xf32>
    %242 = arith.mulf %239, %221 : vector<1x32xf32>
    %243 = arith.mulf %238, %240 : vector<1x32xf32>
    %244 = arith.addf %242, %243 : vector<1x32xf32>
    %245 = math.tanh %244 : vector<1x32xf32>
    %246 = arith.mulf %241, %245 : vector<1x32xf32>
    %c1_i32_84 = arith.constant 1 : i32
    %247 = arith.muli %c1_i32_79, %c1_i32_84 : i32
    %248 = arith.index_cast %247 : i32 to index
    %c0_85 = arith.constant 0 : index
    %249 = vector.load %arg18[%248, %c0_85] : memref<8x32xf32, #tpu.memory_space<vmem>>, vector<1x32xf32>
    tpu.vector_store %arg18[%248, %c0_85], %246 {strides = array<i32>} : memref<8x32xf32, #tpu.memory_space<vmem>>, vector<1x32xf32>,
    %c2_i32_86 = arith.constant 2 : i32
    %c1_i32_87 = arith.constant 1 : i32
    %250 = arith.muli %c2_i32_86, %c1_i32_87 : i32
    %251 = arith.index_cast %250 : i32 to index
    %c0_88 = arith.constant 0 : index
    %252 = vector.load %arg16[%251, %c0_88] : memref<8x128xf32, #tpu.memory_space<vmem>>, vector<1x128xf32>
    %cst_89 = arith.constant dense<0.000000e+00> : vector<1x128xf32>
    %253 = tpu.matmul %246, %201, %cst_89 {dimension_numbers = #tpu.dot_dimension_numbers<[1], [0], [0], [1], [0, 0, 1, 1], [], []>} : vector<1x32xf32>, vector<32x128xf32>, vector<1x128xf32> -> vector<1x128xf32>
    %254 = arith.addf %252, %253 : vector<1x128xf32>
    %255 = arith.negf %254 : vector<1x128xf32>
    %256 = math.exp %255 : vector<1x128xf32>
    %cst_90 = arith.constant 1.000000e+00 : f32
    %257 = vector.broadcast %cst_90 : f32 to vector<1x128xf32>
    %258 = arith.addf %257, %256 : vector<1x128xf32>
    %259 = arith.divf %257, %258 : vector<1x128xf32>
    %260 = math.tanh %254 : vector<1x128xf32>
    %261 = vector.extract_strided_slice %259 {offsets = [0, 0], sizes = [1, 32], strides = [1, 1]} : vector<1x128xf32> to vector<1x32xf32>
    %262 = vector.extract_strided_slice %259 {offsets = [0, 32], sizes = [1, 32], strides = [1, 1]} : vector<1x128xf32> to vector<1x32xf32>
    %263 = vector.extract_strided_slice %260 {offsets = [0, 64], sizes = [1, 32], strides = [1, 1]} : vector<1x128xf32> to vector<1x32xf32>
    %264 = vector.extract_strided_slice %259 {offsets = [0, 96], sizes = [1, 32], strides = [1, 1]} : vector<1x128xf32> to vector<1x32xf32>
    %265 = arith.mulf %262, %244 : vector<1x32xf32>
    %266 = arith.mulf %261, %263 : vector<1x32xf32>
    %267 = arith.addf %265, %266 : vector<1x32xf32>
    %268 = math.tanh %267 : vector<1x32xf32>
    %269 = arith.mulf %264, %268 : vector<1x32xf32>
    %c1_i32_91 = arith.constant 1 : i32
    %270 = arith.muli %c2_i32_86, %c1_i32_91 : i32
    %271 = arith.index_cast %270 : i32 to index
    %c0_92 = arith.constant 0 : index
    %272 = vector.load %arg18[%271, %c0_92] : memref<8x32xf32, #tpu.memory_space<vmem>>, vector<1x32xf32>
    tpu.vector_store %arg18[%271, %c0_92], %269 {strides = array<i32>} : memref<8x32xf32, #tpu.memory_space<vmem>>, vector<1x32xf32>,
    %c3_i32_93 = arith.constant 3 : i32
    %c1_i32_94 = arith.constant 1 : i32
    %273 = arith.muli %c3_i32_93, %c1_i32_94 : i32
    %274 = arith.index_cast %273 : i32 to index
    %c0_95 = arith.constant 0 : index
    %275 = vector.load %arg16[%274, %c0_95] : memref<8x128xf32, #tpu.memory_space<vmem>>, vector<1x128xf32>
    %cst_96 = arith.constant dense<0.000000e+00> : vector<1x128xf32>
    %276 = tpu.matmul %269, %201, %cst_96 {dimension_numbers = #tpu.dot_dimension_numbers<[1], [0], [0], [1], [0, 0, 1, 1], [], []>} : vector<1x32xf32>, vector<32x128xf32>, vector<1x128xf32> -> vector<1x128xf32>
    %277 = arith.addf %275, %276 : vector<1x128xf32>
    %278 = arith.negf %277 : vector<1x128xf32>
    %279 = math.exp %278 : vector<1x128xf32>
    %cst_97 = arith.constant 1.000000e+00 : f32
    %280 = vector.broadcast %cst_97 : f32 to vector<1x128xf32>
    %281 = arith.addf %280, %279 : vector<1x128xf32>
    %282 = arith.divf %280, %281 : vector<1x128xf32>
    %283 = math.tanh %277 : vector<1x128xf32>
    %284 = vector.extract_strided_slice %282 {offsets = [0, 0], sizes = [1, 32], strides = [1, 1]} : vector<1x128xf32> to vector<1x32xf32>
    %285 = vector.extract_strided_slice %282 {offsets = [0, 32], sizes = [1, 32], strides = [1, 1]} : vector<1x128xf32> to vector<1x32xf32>
    %286 = vector.extract_strided_slice %283 {offsets = [0, 64], sizes = [1, 32], strides = [1, 1]} : vector<1x128xf32> to vector<1x32xf32>
    %287 = vector.extract_strided_slice %282 {offsets = [0, 96], sizes = [1, 32], strides = [1, 1]} : vector<1x128xf32> to vector<1x32xf32>
    %288 = arith.mulf %285, %267 : vector<1x32xf32>
    %289 = arith.mulf %284, %286 : vector<1x32xf32>
    %290 = arith.addf %288, %289 : vector<1x32xf32>
    %291 = math.tanh %290 : vector<1x32xf32>
    %292 = arith.mulf %287, %291 : vector<1x32xf32>
    %c1_i32_98 = arith.constant 1 : i32
    %293 = arith.muli %c3_i32_93, %c1_i32_98 : i32
    %294 = arith.index_cast %293 : i32 to index
    %c0_99 = arith.constant 0 : index
    %295 = vector.load %arg18[%294, %c0_99] : memref<8x32xf32, #tpu.memory_space<vmem>>, vector<1x32xf32>
    tpu.vector_store %arg18[%294, %c0_99], %292 {strides = array<i32>} : memref<8x32xf32, #tpu.memory_space<vmem>>, vector<1x32xf32>,
    %c4_i32_100 = arith.constant 4 : i32
    %c1_i32_101 = arith.constant 1 : i32
    %296 = arith.muli %c4_i32_100, %c1_i32_101 : i32
    %297 = arith.index_cast %296 : i32 to index
    %c0_102 = arith.constant 0 : index
    %298 = vector.load %arg16[%297, %c0_102] : memref<8x128xf32, #tpu.memory_space<vmem>>, vector<1x128xf32>
    %cst_103 = arith.constant dense<0.000000e+00> : vector<1x128xf32>
    %299 = tpu.matmul %292, %201, %cst_103 {dimension_numbers = #tpu.dot_dimension_numbers<[1], [0], [0], [1], [0, 0, 1, 1], [], []>} : vector<1x32xf32>, vector<32x128xf32>, vector<1x128xf32> -> vector<1x128xf32>
    %300 = arith.addf %298, %299 : vector<1x128xf32>
    %301 = arith.negf %300 : vector<1x128xf32>
    %302 = math.exp %301 : vector<1x128xf32>
    %cst_104 = arith.constant 1.000000e+00 : f32
    %303 = vector.broadcast %cst_104 : f32 to vector<1x128xf32>
    %304 = arith.addf %303, %302 : vector<1x128xf32>
    %305 = arith.divf %303, %304 : vector<1x128xf32>
    %306 = math.tanh %300 : vector<1x128xf32>
    %307 = vector.extract_strided_slice %305 {offsets = [0, 0], sizes = [1, 32], strides = [1, 1]} : vector<1x128xf32> to vector<1x32xf32>
    %308 = vector.extract_strided_slice %305 {offsets = [0, 32], sizes = [1, 32], strides = [1, 1]} : vector<1x128xf32> to vector<1x32xf32>
    %309 = vector.extract_strided_slice %306 {offsets = [0, 64], sizes = [1, 32], strides = [1, 1]} : vector<1x128xf32> to vector<1x32xf32>
    %310 = vector.extract_strided_slice %305 {offsets = [0, 96], sizes = [1, 32], strides = [1, 1]} : vector<1x128xf32> to vector<1x32xf32>
    %311 = arith.mulf %308, %290 : vector<1x32xf32>
    %312 = arith.mulf %307, %309 : vector<1x32xf32>
    %313 = arith.addf %311, %312 : vector<1x32xf32>
    %314 = math.tanh %313 : vector<1x32xf32>
    %315 = arith.mulf %310, %314 : vector<1x32xf32>
    %c1_i32_105 = arith.constant 1 : i32
    %316 = arith.muli %c4_i32_100, %c1_i32_105 : i32
    %317 = arith.index_cast %316 : i32 to index
    %c0_106 = arith.constant 0 : index
    %318 = vector.load %arg18[%317, %c0_106] : memref<8x32xf32, #tpu.memory_space<vmem>>, vector<1x32xf32>
    tpu.vector_store %arg18[%317, %c0_106], %315 {strides = array<i32>} : memref<8x32xf32, #tpu.memory_space<vmem>>, vector<1x32xf32>,
    %c5_i32_107 = arith.constant 5 : i32
    %c1_i32_108 = arith.constant 1 : i32
    %319 = arith.muli %c5_i32_107, %c1_i32_108 : i32
    %320 = arith.index_cast %319 : i32 to index
    %c0_109 = arith.constant 0 : index
    %321 = vector.load %arg16[%320, %c0_109] : memref<8x128xf32, #tpu.memory_space<vmem>>, vector<1x128xf32>
    %cst_110 = arith.constant dense<0.000000e+00> : vector<1x128xf32>
    %322 = tpu.matmul %315, %201, %cst_110 {dimension_numbers = #tpu.dot_dimension_numbers<[1], [0], [0], [1], [0, 0, 1, 1], [], []>} : vector<1x32xf32>, vector<32x128xf32>, vector<1x128xf32> -> vector<1x128xf32>
    %323 = arith.addf %321, %322 : vector<1x128xf32>
    %324 = arith.negf %323 : vector<1x128xf32>
    %325 = math.exp %324 : vector<1x128xf32>
    %cst_111 = arith.constant 1.000000e+00 : f32
    %326 = vector.broadcast %cst_111 : f32 to vector<1x128xf32>
    %327 = arith.addf %326, %325 : vector<1x128xf32>
    %328 = arith.divf %326, %327 : vector<1x128xf32>
    %329 = math.tanh %323 : vector<1x128xf32>
    %330 = vector.extract_strided_slice %328 {offsets = [0, 0], sizes = [1, 32], strides = [1, 1]} : vector<1x128xf32> to vector<1x32xf32>
    %331 = vector.extract_strided_slice %328 {offsets = [0, 32], sizes = [1, 32], strides = [1, 1]} : vector<1x128xf32> to vector<1x32xf32>
    %332 = vector.extract_strided_slice %329 {offsets = [0, 64], sizes = [1, 32], strides = [1, 1]} : vector<1x128xf32> to vector<1x32xf32>
    %333 = vector.extract_strided_slice %328 {offsets = [0, 96], sizes = [1, 32], strides = [1, 1]} : vector<1x128xf32> to vector<1x32xf32>
    %334 = arith.mulf %331, %313 : vector<1x32xf32>
    %335 = arith.mulf %330, %332 : vector<1x32xf32>
    %336 = arith.addf %334, %335 : vector<1x32xf32>
    %337 = math.tanh %336 : vector<1x32xf32>
    %338 = arith.mulf %333, %337 : vector<1x32xf32>
    %c1_i32_112 = arith.constant 1 : i32
    %339 = arith.muli %c5_i32_107, %c1_i32_112 : i32
    %340 = arith.index_cast %339 : i32 to index
    %c0_113 = arith.constant 0 : index
    %341 = vector.load %arg18[%340, %c0_113] : memref<8x32xf32, #tpu.memory_space<vmem>>, vector<1x32xf32>
    tpu.vector_store %arg18[%340, %c0_113], %338 {strides = array<i32>} : memref<8x32xf32, #tpu.memory_space<vmem>>, vector<1x32xf32>,
    %c6_i32_114 = arith.constant 6 : i32
    %c1_i32_115 = arith.constant 1 : i32
    %342 = arith.muli %c6_i32_114, %c1_i32_115 : i32
    %343 = arith.index_cast %342 : i32 to index
    %c0_116 = arith.constant 0 : index
    %344 = vector.load %arg16[%343, %c0_116] : memref<8x128xf32, #tpu.memory_space<vmem>>, vector<1x128xf32>
    %cst_117 = arith.constant dense<0.000000e+00> : vector<1x128xf32>
    %345 = tpu.matmul %338, %201, %cst_117 {dimension_numbers = #tpu.dot_dimension_numbers<[1], [0], [0], [1], [0, 0, 1, 1], [], []>} : vector<1x32xf32>, vector<32x128xf32>, vector<1x128xf32> -> vector<1x128xf32>
    %346 = arith.addf %344, %345 : vector<1x128xf32>
    %347 = arith.negf %346 : vector<1x128xf32>
    %348 = math.exp %347 : vector<1x128xf32>
    %cst_118 = arith.constant 1.000000e+00 : f32
    %349 = vector.broadcast %cst_118 : f32 to vector<1x128xf32>
    %350 = arith.addf %349, %348 : vector<1x128xf32>
    %351 = arith.divf %349, %350 : vector<1x128xf32>
    %352 = math.tanh %346 : vector<1x128xf32>
    %353 = vector.extract_strided_slice %351 {offsets = [0, 0], sizes = [1, 32], strides = [1, 1]} : vector<1x128xf32> to vector<1x32xf32>
    %354 = vector.extract_strided_slice %351 {offsets = [0, 32], sizes = [1, 32], strides = [1, 1]} : vector<1x128xf32> to vector<1x32xf32>
    %355 = vector.extract_strided_slice %352 {offsets = [0, 64], sizes = [1, 32], strides = [1, 1]} : vector<1x128xf32> to vector<1x32xf32>
    %356 = vector.extract_strided_slice %351 {offsets = [0, 96], sizes = [1, 32], strides = [1, 1]} : vector<1x128xf32> to vector<1x32xf32>
    %357 = arith.mulf %354, %336 : vector<1x32xf32>
    %358 = arith.mulf %353, %355 : vector<1x32xf32>
    %359 = arith.addf %357, %358 : vector<1x32xf32>
    %360 = math.tanh %359 : vector<1x32xf32>
    %361 = arith.mulf %356, %360 : vector<1x32xf32>
    %c1_i32_119 = arith.constant 1 : i32
    %362 = arith.muli %c6_i32_114, %c1_i32_119 : i32
    %363 = arith.index_cast %362 : i32 to index
    %c0_120 = arith.constant 0 : index
    %364 = vector.load %arg18[%363, %c0_120] : memref<8x32xf32, #tpu.memory_space<vmem>>, vector<1x32xf32>
    tpu.vector_store %arg18[%363, %c0_120], %361 {strides = array<i32>} : memref<8x32xf32, #tpu.memory_space<vmem>>, vector<1x32xf32>,
    %c7_i32_121 = arith.constant 7 : i32
    %c1_i32_122 = arith.constant 1 : i32
    %365 = arith.muli %c7_i32_121, %c1_i32_122 : i32
    %366 = arith.index_cast %365 : i32 to index
    %c0_123 = arith.constant 0 : index
    %367 = vector.load %arg16[%366, %c0_123] : memref<8x128xf32, #tpu.memory_space<vmem>>, vector<1x128xf32>
    %cst_124 = arith.constant dense<0.000000e+00> : vector<1x128xf32>
    %368 = tpu.matmul %361, %201, %cst_124 {dimension_numbers = #tpu.dot_dimension_numbers<[1], [0], [0], [1], [0, 0, 1, 1], [], []>} : vector<1x32xf32>, vector<32x128xf32>, vector<1x128xf32> -> vector<1x128xf32>
    %369 = arith.addf %367, %368 : vector<1x128xf32>
    %370 = arith.negf %369 : vector<1x128xf32>
    %371 = math.exp %370 : vector<1x128xf32>
    %cst_125 = arith.constant 1.000000e+00 : f32
    %372 = vector.broadcast %cst_125 : f32 to vector<1x128xf32>
    %373 = arith.addf %372, %371 : vector<1x128xf32>
    %374 = arith.divf %372, %373 : vector<1x128xf32>
    %375 = math.tanh %369 : vector<1x128xf32>
    %376 = vector.extract_strided_slice %374 {offsets = [0, 0], sizes = [1, 32], strides = [1, 1]} : vector<1x128xf32> to vector<1x32xf32>
    %377 = vector.extract_strided_slice %374 {offsets = [0, 32], sizes = [1, 32], strides = [1, 1]} : vector<1x128xf32> to vector<1x32xf32>
    %378 = vector.extract_strided_slice %375 {offsets = [0, 64], sizes = [1, 32], strides = [1, 1]} : vector<1x128xf32> to vector<1x32xf32>
    %379 = vector.extract_strided_slice %374 {offsets = [0, 96], sizes = [1, 32], strides = [1, 1]} : vector<1x128xf32> to vector<1x32xf32>
    %380 = arith.mulf %377, %359 : vector<1x32xf32>
    %381 = arith.mulf %376, %378 : vector<1x32xf32>
    %382 = arith.addf %380, %381 : vector<1x32xf32>
    %383 = math.tanh %382 : vector<1x32xf32>
    %384 = arith.mulf %379, %383 : vector<1x32xf32>
    %c1_i32_126 = arith.constant 1 : i32
    %385 = arith.muli %c7_i32_121, %c1_i32_126 : i32
    %386 = arith.index_cast %385 : i32 to index
    %c0_127 = arith.constant 0 : index
    %387 = vector.load %arg18[%386, %c0_127] : memref<8x32xf32, #tpu.memory_space<vmem>>, vector<1x32xf32>
    tpu.vector_store %arg18[%386, %c0_127], %384 {strides = array<i32>} : memref<8x32xf32, #tpu.memory_space<vmem>>, vector<1x32xf32>,
    %c8_i32_128 = arith.constant 8 : i32
    %c0_129 = arith.constant 0 : index
    %c0_130 = arith.constant 0 : index
    %388 = vector.load %arg7[%c0_129, %c0_130] : memref<32x256xf32, #tpu.memory_space<vmem>>, vector<32x256xf32>
    %cst_131 = arith.constant dense<0.000000e+00> : vector<1x256xf32>
    %389 = tpu.matmul %384, %388, %cst_131 {dimension_numbers = #tpu.dot_dimension_numbers<[1], [0], [0], [1], [0, 0, 1, 1], [], []>} : vector<1x32xf32>, vector<32x256xf32>, vector<1x256xf32> -> vector<1x256xf32>
    %c0_132 = arith.constant 0 : index
    %c0_133 = arith.constant 0 : index
    %390 = vector.load %arg9[%c0_132, %c0_133] : memref<1x256xf32, #tpu.memory_space<vmem>>, vector<1x256xf32>
    %391 = arith.addf %389, %390 : vector<1x256xf32>
    %c0_134 = arith.constant 0 : index
    %c0_135 = arith.constant 0 : index
    %392 = vector.load %arg8[%c0_134, %c0_135] : memref<64x256xf32, #tpu.memory_space<vmem>>, vector<64x256xf32>
    %cst_136 = arith.constant 0.000000e+00 : f32
    %393 = vector.broadcast %cst_136 : f32 to vector<1x64xf32>
    %cst_137 = arith.constant 0.000000e+00 : f32
    %394 = vector.broadcast %cst_137 : f32 to vector<1x64xf32>
    %c0_i32_138 = arith.constant 0 : i32
    %cst_139 = arith.constant dense<0.000000e+00> : vector<1x256xf32>
    %395 = tpu.matmul %393, %392, %cst_139 {dimension_numbers = #tpu.dot_dimension_numbers<[1], [0], [0], [1], [0, 0, 1, 1], [], []>} : vector<1x64xf32>, vector<64x256xf32>, vector<1x256xf32> -> vector<1x256xf32>
    %396 = arith.addf %391, %395 : vector<1x256xf32>
    %397 = arith.negf %396 : vector<1x256xf32>
    %398 = math.exp %397 : vector<1x256xf32>
    %cst_140 = arith.constant 1.000000e+00 : f32
    %399 = vector.broadcast %cst_140 : f32 to vector<1x256xf32>
    %400 = arith.addf %399, %398 : vector<1x256xf32>
    %401 = arith.divf %399, %400 : vector<1x256xf32>
    %402 = math.tanh %396 : vector<1x256xf32>
    %403 = vector.extract_strided_slice %401 {offsets = [0, 0], sizes = [1, 64], strides = [1, 1]} : vector<1x256xf32> to vector<1x64xf32>
    %404 = vector.extract_strided_slice %401 {offsets = [0, 64], sizes = [1, 64], strides = [1, 1]} : vector<1x256xf32> to vector<1x64xf32>
    %405 = vector.extract_strided_slice %402 {offsets = [0, 128], sizes = [1, 64], strides = [1, 1]} : vector<1x256xf32> to vector<1x64xf32>
    %406 = vector.extract_strided_slice %401 {offsets = [0, 192], sizes = [1, 64], strides = [1, 1]} : vector<1x256xf32> to vector<1x64xf32>
    %407 = arith.mulf %404, %394 : vector<1x64xf32>
    %408 = arith.mulf %403, %405 : vector<1x64xf32>
    %409 = arith.addf %407, %408 : vector<1x64xf32>
    %410 = math.tanh %409 : vector<1x64xf32>
    %411 = arith.mulf %406, %410 : vector<1x64xf32>
    %c1_i32_141 = arith.constant 1 : i32
    %412 = arith.muli %c0_i32_138, %c1_i32_141 : i32
    %413 = arith.index_cast %412 : i32 to index
    %c0_142 = arith.constant 0 : index
    %414 = vector.load %arg19[%413, %c0_142] : memref<8x64xf32, #tpu.memory_space<vmem>>, vector<1x64xf32>
    tpu.vector_store %arg19[%413, %c0_142], %411 {strides = array<i32>} : memref<8x64xf32, #tpu.memory_space<vmem>>, vector<1x64xf32>,
    %c1_i32_143 = arith.constant 1 : i32
    %cst_144 = arith.constant dense<0.000000e+00> : vector<1x256xf32>
    %415 = tpu.matmul %411, %392, %cst_144 {dimension_numbers = #tpu.dot_dimension_numbers<[1], [0], [0], [1], [0, 0, 1, 1], [], []>} : vector<1x64xf32>, vector<64x256xf32>, vector<1x256xf32> -> vector<1x256xf32>
    %416 = arith.addf %391, %415 : vector<1x256xf32>
    %417 = arith.negf %416 : vector<1x256xf32>
    %418 = math.exp %417 : vector<1x256xf32>
    %cst_145 = arith.constant 1.000000e+00 : f32
    %419 = vector.broadcast %cst_145 : f32 to vector<1x256xf32>
    %420 = arith.addf %419, %418 : vector<1x256xf32>
    %421 = arith.divf %419, %420 : vector<1x256xf32>
    %422 = math.tanh %416 : vector<1x256xf32>
    %423 = vector.extract_strided_slice %421 {offsets = [0, 0], sizes = [1, 64], strides = [1, 1]} : vector<1x256xf32> to vector<1x64xf32>
    %424 = vector.extract_strided_slice %421 {offsets = [0, 64], sizes = [1, 64], strides = [1, 1]} : vector<1x256xf32> to vector<1x64xf32>
    %425 = vector.extract_strided_slice %422 {offsets = [0, 128], sizes = [1, 64], strides = [1, 1]} : vector<1x256xf32> to vector<1x64xf32>
    %426 = vector.extract_strided_slice %421 {offsets = [0, 192], sizes = [1, 64], strides = [1, 1]} : vector<1x256xf32> to vector<1x64xf32>
    %427 = arith.mulf %424, %409 : vector<1x64xf32>
    %428 = arith.mulf %423, %425 : vector<1x64xf32>
    %429 = arith.addf %427, %428 : vector<1x64xf32>
    %430 = math.tanh %429 : vector<1x64xf32>
    %431 = arith.mulf %426, %430 : vector<1x64xf32>
    %c1_i32_146 = arith.constant 1 : i32
    %432 = arith.muli %c1_i32_143, %c1_i32_146 : i32
    %433 = arith.index_cast %432 : i32 to index
    %c0_147 = arith.constant 0 : index
    %434 = vector.load %arg19[%433, %c0_147] : memref<8x64xf32, #tpu.memory_space<vmem>>, vector<1x64xf32>
    tpu.vector_store %arg19[%433, %c0_147], %431 {strides = array<i32>} : memref<8x64xf32, #tpu.memory_space<vmem>>, vector<1x64xf32>,
    %c2_i32_148 = arith.constant 2 : i32
    %cst_149 = arith.constant dense<0.000000e+00> : vector<1x256xf32>
    %435 = tpu.matmul %431, %392, %cst_149 {dimension_numbers = #tpu.dot_dimension_numbers<[1], [0], [0], [1], [0, 0, 1, 1], [], []>} : vector<1x64xf32>, vector<64x256xf32>, vector<1x256xf32> -> vector<1x256xf32>
    %436 = arith.addf %391, %435 : vector<1x256xf32>
    %437 = arith.negf %436 : vector<1x256xf32>
    %438 = math.exp %437 : vector<1x256xf32>
    %cst_150 = arith.constant 1.000000e+00 : f32
    %439 = vector.broadcast %cst_150 : f32 to vector<1x256xf32>
    %440 = arith.addf %439, %438 : vector<1x256xf32>
    %441 = arith.divf %439, %440 : vector<1x256xf32>
    %442 = math.tanh %436 : vector<1x256xf32>
    %443 = vector.extract_strided_slice %441 {offsets = [0, 0], sizes = [1, 64], strides = [1, 1]} : vector<1x256xf32> to vector<1x64xf32>
    %444 = vector.extract_strided_slice %441 {offsets = [0, 64], sizes = [1, 64], strides = [1, 1]} : vector<1x256xf32> to vector<1x64xf32>
    %445 = vector.extract_strided_slice %442 {offsets = [0, 128], sizes = [1, 64], strides = [1, 1]} : vector<1x256xf32> to vector<1x64xf32>
    %446 = vector.extract_strided_slice %441 {offsets = [0, 192], sizes = [1, 64], strides = [1, 1]} : vector<1x256xf32> to vector<1x64xf32>
    %447 = arith.mulf %444, %429 : vector<1x64xf32>
    %448 = arith.mulf %443, %445 : vector<1x64xf32>
    %449 = arith.addf %447, %448 : vector<1x64xf32>
    %450 = math.tanh %449 : vector<1x64xf32>
    %451 = arith.mulf %446, %450 : vector<1x64xf32>
    %c1_i32_151 = arith.constant 1 : i32
    %452 = arith.muli %c2_i32_148, %c1_i32_151 : i32
    %453 = arith.index_cast %452 : i32 to index
    %c0_152 = arith.constant 0 : index
    %454 = vector.load %arg19[%453, %c0_152] : memref<8x64xf32, #tpu.memory_space<vmem>>, vector<1x64xf32>
    tpu.vector_store %arg19[%453, %c0_152], %451 {strides = array<i32>} : memref<8x64xf32, #tpu.memory_space<vmem>>, vector<1x64xf32>,
    %c3_i32_153 = arith.constant 3 : i32
    %cst_154 = arith.constant dense<0.000000e+00> : vector<1x256xf32>
    %455 = tpu.matmul %451, %392, %cst_154 {dimension_numbers = #tpu.dot_dimension_numbers<[1], [0], [0], [1], [0, 0, 1, 1], [], []>} : vector<1x64xf32>, vector<64x256xf32>, vector<1x256xf32> -> vector<1x256xf32>
    %456 = arith.addf %391, %455 : vector<1x256xf32>
    %457 = arith.negf %456 : vector<1x256xf32>
    %458 = math.exp %457 : vector<1x256xf32>
    %cst_155 = arith.constant 1.000000e+00 : f32
    %459 = vector.broadcast %cst_155 : f32 to vector<1x256xf32>
    %460 = arith.addf %459, %458 : vector<1x256xf32>
    %461 = arith.divf %459, %460 : vector<1x256xf32>
    %462 = math.tanh %456 : vector<1x256xf32>
    %463 = vector.extract_strided_slice %461 {offsets = [0, 0], sizes = [1, 64], strides = [1, 1]} : vector<1x256xf32> to vector<1x64xf32>
    %464 = vector.extract_strided_slice %461 {offsets = [0, 64], sizes = [1, 64], strides = [1, 1]} : vector<1x256xf32> to vector<1x64xf32>
    %465 = vector.extract_strided_slice %462 {offsets = [0, 128], sizes = [1, 64], strides = [1, 1]} : vector<1x256xf32> to vector<1x64xf32>
    %466 = vector.extract_strided_slice %461 {offsets = [0, 192], sizes = [1, 64], strides = [1, 1]} : vector<1x256xf32> to vector<1x64xf32>
    %467 = arith.mulf %464, %449 : vector<1x64xf32>
    %468 = arith.mulf %463, %465 : vector<1x64xf32>
    %469 = arith.addf %467, %468 : vector<1x64xf32>
    %470 = math.tanh %469 : vector<1x64xf32>
    %471 = arith.mulf %466, %470 : vector<1x64xf32>
    %c1_i32_156 = arith.constant 1 : i32
    %472 = arith.muli %c3_i32_153, %c1_i32_156 : i32
    %473 = arith.index_cast %472 : i32 to index
    %c0_157 = arith.constant 0 : index
    %474 = vector.load %arg19[%473, %c0_157] : memref<8x64xf32, #tpu.memory_space<vmem>>, vector<1x64xf32>
    tpu.vector_store %arg19[%473, %c0_157], %471 {strides = array<i32>} : memref<8x64xf32, #tpu.memory_space<vmem>>, vector<1x64xf32>,
    %c4_i32_158 = arith.constant 4 : i32
    %cst_159 = arith.constant dense<0.000000e+00> : vector<1x256xf32>
    %475 = tpu.matmul %471, %392, %cst_159 {dimension_numbers = #tpu.dot_dimension_numbers<[1], [0], [0], [1], [0, 0, 1, 1], [], []>} : vector<1x64xf32>, vector<64x256xf32>, vector<1x256xf32> -> vector<1x256xf32>
    %476 = arith.addf %391, %475 : vector<1x256xf32>
    %477 = arith.negf %476 : vector<1x256xf32>
    %478 = math.exp %477 : vector<1x256xf32>
    %cst_160 = arith.constant 1.000000e+00 : f32
    %479 = vector.broadcast %cst_160 : f32 to vector<1x256xf32>
    %480 = arith.addf %479, %478 : vector<1x256xf32>
    %481 = arith.divf %479, %480 : vector<1x256xf32>
    %482 = math.tanh %476 : vector<1x256xf32>
    %483 = vector.extract_strided_slice %481 {offsets = [0, 0], sizes = [1, 64], strides = [1, 1]} : vector<1x256xf32> to vector<1x64xf32>
    %484 = vector.extract_strided_slice %481 {offsets = [0, 64], sizes = [1, 64], strides = [1, 1]} : vector<1x256xf32> to vector<1x64xf32>
    %485 = vector.extract_strided_slice %482 {offsets = [0, 128], sizes = [1, 64], strides = [1, 1]} : vector<1x256xf32> to vector<1x64xf32>
    %486 = vector.extract_strided_slice %481 {offsets = [0, 192], sizes = [1, 64], strides = [1, 1]} : vector<1x256xf32> to vector<1x64xf32>
    %487 = arith.mulf %484, %469 : vector<1x64xf32>
    %488 = arith.mulf %483, %485 : vector<1x64xf32>
    %489 = arith.addf %487, %488 : vector<1x64xf32>
    %490 = math.tanh %489 : vector<1x64xf32>
    %491 = arith.mulf %486, %490 : vector<1x64xf32>
    %c1_i32_161 = arith.constant 1 : i32
    %492 = arith.muli %c4_i32_158, %c1_i32_161 : i32
    %493 = arith.index_cast %492 : i32 to index
    %c0_162 = arith.constant 0 : index
    %494 = vector.load %arg19[%493, %c0_162] : memref<8x64xf32, #tpu.memory_space<vmem>>, vector<1x64xf32>
    tpu.vector_store %arg19[%493, %c0_162], %491 {strides = array<i32>} : memref<8x64xf32, #tpu.memory_space<vmem>>, vector<1x64xf32>,
    %c5_i32_163 = arith.constant 5 : i32
    %cst_164 = arith.constant dense<0.000000e+00> : vector<1x256xf32>
    %495 = tpu.matmul %491, %392, %cst_164 {dimension_numbers = #tpu.dot_dimension_numbers<[1], [0], [0], [1], [0, 0, 1, 1], [], []>} : vector<1x64xf32>, vector<64x256xf32>, vector<1x256xf32> -> vector<1x256xf32>
    %496 = arith.addf %391, %495 : vector<1x256xf32>
    %497 = arith.negf %496 : vector<1x256xf32>
    %498 = math.exp %497 : vector<1x256xf32>
    %cst_165 = arith.constant 1.000000e+00 : f32
    %499 = vector.broadcast %cst_165 : f32 to vector<1x256xf32>
    %500 = arith.addf %499, %498 : vector<1x256xf32>
    %501 = arith.divf %499, %500 : vector<1x256xf32>
    %502 = math.tanh %496 : vector<1x256xf32>
    %503 = vector.extract_strided_slice %501 {offsets = [0, 0], sizes = [1, 64], strides = [1, 1]} : vector<1x256xf32> to vector<1x64xf32>
    %504 = vector.extract_strided_slice %501 {offsets = [0, 64], sizes = [1, 64], strides = [1, 1]} : vector<1x256xf32> to vector<1x64xf32>
    %505 = vector.extract_strided_slice %502 {offsets = [0, 128], sizes = [1, 64], strides = [1, 1]} : vector<1x256xf32> to vector<1x64xf32>
    %506 = vector.extract_strided_slice %501 {offsets = [0, 192], sizes = [1, 64], strides = [1, 1]} : vector<1x256xf32> to vector<1x64xf32>
    %507 = arith.mulf %504, %489 : vector<1x64xf32>
    %508 = arith.mulf %503, %505 : vector<1x64xf32>
    %509 = arith.addf %507, %508 : vector<1x64xf32>
    %510 = math.tanh %509 : vector<1x64xf32>
    %511 = arith.mulf %506, %510 : vector<1x64xf32>
    %c1_i32_166 = arith.constant 1 : i32
    %512 = arith.muli %c5_i32_163, %c1_i32_166 : i32
    %513 = arith.index_cast %512 : i32 to index
    %c0_167 = arith.constant 0 : index
    %514 = vector.load %arg19[%513, %c0_167] : memref<8x64xf32, #tpu.memory_space<vmem>>, vector<1x64xf32>
    tpu.vector_store %arg19[%513, %c0_167], %511 {strides = array<i32>} : memref<8x64xf32, #tpu.memory_space<vmem>>, vector<1x64xf32>,
    %c6_i32_168 = arith.constant 6 : i32
    %cst_169 = arith.constant dense<0.000000e+00> : vector<1x256xf32>
    %515 = tpu.matmul %511, %392, %cst_169 {dimension_numbers = #tpu.dot_dimension_numbers<[1], [0], [0], [1], [0, 0, 1, 1], [], []>} : vector<1x64xf32>, vector<64x256xf32>, vector<1x256xf32> -> vector<1x256xf32>
    %516 = arith.addf %391, %515 : vector<1x256xf32>
    %517 = arith.negf %516 : vector<1x256xf32>
    %518 = math.exp %517 : vector<1x256xf32>
    %cst_170 = arith.constant 1.000000e+00 : f32
    %519 = vector.broadcast %cst_170 : f32 to vector<1x256xf32>
    %520 = arith.addf %519, %518 : vector<1x256xf32>
    %521 = arith.divf %519, %520 : vector<1x256xf32>
    %522 = math.tanh %516 : vector<1x256xf32>
    %523 = vector.extract_strided_slice %521 {offsets = [0, 0], sizes = [1, 64], strides = [1, 1]} : vector<1x256xf32> to vector<1x64xf32>
    %524 = vector.extract_strided_slice %521 {offsets = [0, 64], sizes = [1, 64], strides = [1, 1]} : vector<1x256xf32> to vector<1x64xf32>
    %525 = vector.extract_strided_slice %522 {offsets = [0, 128], sizes = [1, 64], strides = [1, 1]} : vector<1x256xf32> to vector<1x64xf32>
    %526 = vector.extract_strided_slice %521 {offsets = [0, 192], sizes = [1, 64], strides = [1, 1]} : vector<1x256xf32> to vector<1x64xf32>
    %527 = arith.mulf %524, %509 : vector<1x64xf32>
    %528 = arith.mulf %523, %525 : vector<1x64xf32>
    %529 = arith.addf %527, %528 : vector<1x64xf32>
    %530 = math.tanh %529 : vector<1x64xf32>
    %531 = arith.mulf %526, %530 : vector<1x64xf32>
    %c1_i32_171 = arith.constant 1 : i32
    %532 = arith.muli %c6_i32_168, %c1_i32_171 : i32
    %533 = arith.index_cast %532 : i32 to index
    %c0_172 = arith.constant 0 : index
    %534 = vector.load %arg19[%533, %c0_172] : memref<8x64xf32, #tpu.memory_space<vmem>>, vector<1x64xf32>
    tpu.vector_store %arg19[%533, %c0_172], %531 {strides = array<i32>} : memref<8x64xf32, #tpu.memory_space<vmem>>, vector<1x64xf32>,
    %c7_i32_173 = arith.constant 7 : i32
    %cst_174 = arith.constant dense<0.000000e+00> : vector<1x256xf32>
    %535 = tpu.matmul %531, %392, %cst_174 {dimension_numbers = #tpu.dot_dimension_numbers<[1], [0], [0], [1], [0, 0, 1, 1], [], []>} : vector<1x64xf32>, vector<64x256xf32>, vector<1x256xf32> -> vector<1x256xf32>
    %536 = arith.addf %391, %535 : vector<1x256xf32>
    %537 = arith.negf %536 : vector<1x256xf32>
    %538 = math.exp %537 : vector<1x256xf32>
    %cst_175 = arith.constant 1.000000e+00 : f32
    %539 = vector.broadcast %cst_175 : f32 to vector<1x256xf32>
    %540 = arith.addf %539, %538 : vector<1x256xf32>
    %541 = arith.divf %539, %540 : vector<1x256xf32>
    %542 = math.tanh %536 : vector<1x256xf32>
    %543 = vector.extract_strided_slice %541 {offsets = [0, 0], sizes = [1, 64], strides = [1, 1]} : vector<1x256xf32> to vector<1x64xf32>
    %544 = vector.extract_strided_slice %541 {offsets = [0, 64], sizes = [1, 64], strides = [1, 1]} : vector<1x256xf32> to vector<1x64xf32>
    %545 = vector.extract_strided_slice %542 {offsets = [0, 128], sizes = [1, 64], strides = [1, 1]} : vector<1x256xf32> to vector<1x64xf32>
    %546 = vector.extract_strided_slice %541 {offsets = [0, 192], sizes = [1, 64], strides = [1, 1]} : vector<1x256xf32> to vector<1x64xf32>
    %547 = arith.mulf %544, %529 : vector<1x64xf32>
    %548 = arith.mulf %543, %545 : vector<1x64xf32>
    %549 = arith.addf %547, %548 : vector<1x64xf32>
    %550 = math.tanh %549 : vector<1x64xf32>
    %551 = arith.mulf %546, %550 : vector<1x64xf32>
    %c1_i32_176 = arith.constant 1 : i32
    %552 = arith.muli %c7_i32_173, %c1_i32_176 : i32
    %553 = arith.index_cast %552 : i32 to index
    %c0_177 = arith.constant 0 : index
    %554 = vector.load %arg19[%553, %c0_177] : memref<8x64xf32, #tpu.memory_space<vmem>>, vector<1x64xf32>
    tpu.vector_store %arg19[%553, %c0_177], %551 {strides = array<i32>} : memref<8x64xf32, #tpu.memory_space<vmem>>, vector<1x64xf32>,
    %c8_i32_178 = arith.constant 8 : i32
    %c0_179 = arith.constant 0 : index
    %c0_180 = arith.constant 0 : index
    %555 = vector.load %arg19[%c0_179, %c0_180] : memref<8x64xf32, #tpu.memory_space<vmem>>, vector<8x64xf32>
    %c0_181 = arith.constant 0 : index
    %c0_182 = arith.constant 0 : index
    %556 = vector.load %arg10[%c0_181, %c0_182] : memref<64x256xf32, #tpu.memory_space<vmem>>, vector<64x256xf32>
    %cst_183 = arith.constant dense<0.000000e+00> : vector<8x256xf32>
    %557 = tpu.matmul %555, %556, %cst_183 {dimension_numbers = #tpu.dot_dimension_numbers<[1], [0], [0], [1], [0, 0, 1, 1], [], []>} : vector<8x64xf32>, vector<64x256xf32>, vector<8x256xf32> -> vector<8x256xf32>
    %c0_184 = arith.constant 0 : index
    %c0_185 = arith.constant 0 : index
    %558 = vector.load %arg12[%c0_184, %c0_185] : memref<1x256xf32, #tpu.memory_space<vmem>>, vector<1x256xf32>
    %559 = vector.broadcast %558 : vector<1x256xf32> to vector<8x256xf32>
    %560 = arith.addf %557, %559 : vector<8x256xf32>
    %c0_186 = arith.constant 0 : index
    %c0_187 = arith.constant 0 : index
    %561 = vector.load %arg17[%c0_186, %c0_187] : memref<8x256xf32, #tpu.memory_space<vmem>>, vector<8x256xf32>
    tpu.vector_store %arg17[%c0_186, %c0_187], %560 {strides = array<i32>} : memref<8x256xf32, #tpu.memory_space<vmem>>, vector<8x256xf32>,
    %c0_188 = arith.constant 0 : index
    %c0_189 = arith.constant 0 : index
    %562 = vector.load %arg11[%c0_188, %c0_189] : memref<64x256xf32, #tpu.memory_space<vmem>>, vector<64x256xf32>
    %cst_190 = arith.constant 0.000000e+00 : f32
    %563 = vector.broadcast %cst_190 : f32 to vector<1x64xf32>
    %cst_191 = arith.constant 0.000000e+00 : f32
    %564 = vector.broadcast %cst_191 : f32 to vector<1x64xf32>
    %c0_i32_192 = arith.constant 0 : i32
    %c1_i32_193 = arith.constant 1 : i32
    %565 = arith.muli %c0_i32_192, %c1_i32_193 : i32
    %566 = arith.index_cast %565 : i32 to index
    %c0_194 = arith.constant 0 : index
    %567 = vector.load %arg17[%566, %c0_194] : memref<8x256xf32, #tpu.memory_space<vmem>>, vector<1x256xf32>
    %cst_195 = arith.constant dense<0.000000e+00> : vector<1x256xf32>
    %568 = tpu.matmul %563, %562, %cst_195 {dimension_numbers = #tpu.dot_dimension_numbers<[1], [0], [0], [1], [0, 0, 1, 1], [], []>} : vector<1x64xf32>, vector<64x256xf32>, vector<1x256xf32> -> vector<1x256xf32>
    %569 = arith.addf %567, %568 : vector<1x256xf32>
    %570 = arith.negf %569 : vector<1x256xf32>
    %571 = math.exp %570 : vector<1x256xf32>
    %cst_196 = arith.constant 1.000000e+00 : f32
    %572 = vector.broadcast %cst_196 : f32 to vector<1x256xf32>
    %573 = arith.addf %572, %571 : vector<1x256xf32>
    %574 = arith.divf %572, %573 : vector<1x256xf32>
    %575 = math.tanh %569 : vector<1x256xf32>
    %576 = vector.extract_strided_slice %574 {offsets = [0, 0], sizes = [1, 64], strides = [1, 1]} : vector<1x256xf32> to vector<1x64xf32>
    %577 = vector.extract_strided_slice %574 {offsets = [0, 64], sizes = [1, 64], strides = [1, 1]} : vector<1x256xf32> to vector<1x64xf32>
    %578 = vector.extract_strided_slice %575 {offsets = [0, 128], sizes = [1, 64], strides = [1, 1]} : vector<1x256xf32> to vector<1x64xf32>
    %579 = vector.extract_strided_slice %574 {offsets = [0, 192], sizes = [1, 64], strides = [1, 1]} : vector<1x256xf32> to vector<1x64xf32>
    %580 = arith.mulf %577, %564 : vector<1x64xf32>
    %581 = arith.mulf %576, %578 : vector<1x64xf32>
    %582 = arith.addf %580, %581 : vector<1x64xf32>
    %583 = math.tanh %582 : vector<1x64xf32>
    %584 = arith.mulf %579, %583 : vector<1x64xf32>
    %c1_i32_197 = arith.constant 1 : i32
    %585 = arith.muli %c0_i32_192, %c1_i32_197 : i32
    %586 = arith.index_cast %585 : i32 to index
    %c0_198 = arith.constant 0 : index
    %587 = vector.load %arg19[%586, %c0_198] : memref<8x64xf32, #tpu.memory_space<vmem>>, vector<1x64xf32>
    tpu.vector_store %arg19[%586, %c0_198], %584 {strides = array<i32>} : memref<8x64xf32, #tpu.memory_space<vmem>>, vector<1x64xf32>,
    %c1_i32_199 = arith.constant 1 : i32
    %c1_i32_200 = arith.constant 1 : i32
    %588 = arith.muli %c1_i32_199, %c1_i32_200 : i32
    %589 = arith.index_cast %588 : i32 to index
    %c0_201 = arith.constant 0 : index
    %590 = vector.load %arg17[%589, %c0_201] : memref<8x256xf32, #tpu.memory_space<vmem>>, vector<1x256xf32>
    %cst_202 = arith.constant dense<0.000000e+00> : vector<1x256xf32>
    %591 = tpu.matmul %584, %562, %cst_202 {dimension_numbers = #tpu.dot_dimension_numbers<[1], [0], [0], [1], [0, 0, 1, 1], [], []>} : vector<1x64xf32>, vector<64x256xf32>, vector<1x256xf32> -> vector<1x256xf32>
    %592 = arith.addf %590, %591 : vector<1x256xf32>
    %593 = arith.negf %592 : vector<1x256xf32>
    %594 = math.exp %593 : vector<1x256xf32>
    %cst_203 = arith.constant 1.000000e+00 : f32
    %595 = vector.broadcast %cst_203 : f32 to vector<1x256xf32>
    %596 = arith.addf %595, %594 : vector<1x256xf32>
    %597 = arith.divf %595, %596 : vector<1x256xf32>
    %598 = math.tanh %592 : vector<1x256xf32>
    %599 = vector.extract_strided_slice %597 {offsets = [0, 0], sizes = [1, 64], strides = [1, 1]} : vector<1x256xf32> to vector<1x64xf32>
    %600 = vector.extract_strided_slice %597 {offsets = [0, 64], sizes = [1, 64], strides = [1, 1]} : vector<1x256xf32> to vector<1x64xf32>
    %601 = vector.extract_strided_slice %598 {offsets = [0, 128], sizes = [1, 64], strides = [1, 1]} : vector<1x256xf32> to vector<1x64xf32>
    %602 = vector.extract_strided_slice %597 {offsets = [0, 192], sizes = [1, 64], strides = [1, 1]} : vector<1x256xf32> to vector<1x64xf32>
    %603 = arith.mulf %600, %582 : vector<1x64xf32>
    %604 = arith.mulf %599, %601 : vector<1x64xf32>
    %605 = arith.addf %603, %604 : vector<1x64xf32>
    %606 = math.tanh %605 : vector<1x64xf32>
    %607 = arith.mulf %602, %606 : vector<1x64xf32>
    %c1_i32_204 = arith.constant 1 : i32
    %608 = arith.muli %c1_i32_199, %c1_i32_204 : i32
    %609 = arith.index_cast %608 : i32 to index
    %c0_205 = arith.constant 0 : index
    %610 = vector.load %arg19[%609, %c0_205] : memref<8x64xf32, #tpu.memory_space<vmem>>, vector<1x64xf32>
    tpu.vector_store %arg19[%609, %c0_205], %607 {strides = array<i32>} : memref<8x64xf32, #tpu.memory_space<vmem>>, vector<1x64xf32>,
    %c2_i32_206 = arith.constant 2 : i32
    %c1_i32_207 = arith.constant 1 : i32
    %611 = arith.muli %c2_i32_206, %c1_i32_207 : i32
    %612 = arith.index_cast %611 : i32 to index
    %c0_208 = arith.constant 0 : index
    %613 = vector.load %arg17[%612, %c0_208] : memref<8x256xf32, #tpu.memory_space<vmem>>, vector<1x256xf32>
    %cst_209 = arith.constant dense<0.000000e+00> : vector<1x256xf32>
    %614 = tpu.matmul %607, %562, %cst_209 {dimension_numbers = #tpu.dot_dimension_numbers<[1], [0], [0], [1], [0, 0, 1, 1], [], []>} : vector<1x64xf32>, vector<64x256xf32>, vector<1x256xf32> -> vector<1x256xf32>
    %615 = arith.addf %613, %614 : vector<1x256xf32>
    %616 = arith.negf %615 : vector<1x256xf32>
    %617 = math.exp %616 : vector<1x256xf32>
    %cst_210 = arith.constant 1.000000e+00 : f32
    %618 = vector.broadcast %cst_210 : f32 to vector<1x256xf32>
    %619 = arith.addf %618, %617 : vector<1x256xf32>
    %620 = arith.divf %618, %619 : vector<1x256xf32>
    %621 = math.tanh %615 : vector<1x256xf32>
    %622 = vector.extract_strided_slice %620 {offsets = [0, 0], sizes = [1, 64], strides = [1, 1]} : vector<1x256xf32> to vector<1x64xf32>
    %623 = vector.extract_strided_slice %620 {offsets = [0, 64], sizes = [1, 64], strides = [1, 1]} : vector<1x256xf32> to vector<1x64xf32>
    %624 = vector.extract_strided_slice %621 {offsets = [0, 128], sizes = [1, 64], strides = [1, 1]} : vector<1x256xf32> to vector<1x64xf32>
    %625 = vector.extract_strided_slice %620 {offsets = [0, 192], sizes = [1, 64], strides = [1, 1]} : vector<1x256xf32> to vector<1x64xf32>
    %626 = arith.mulf %623, %605 : vector<1x64xf32>
    %627 = arith.mulf %622, %624 : vector<1x64xf32>
    %628 = arith.addf %626, %627 : vector<1x64xf32>
    %629 = math.tanh %628 : vector<1x64xf32>
    %630 = arith.mulf %625, %629 : vector<1x64xf32>
    %c1_i32_211 = arith.constant 1 : i32
    %631 = arith.muli %c2_i32_206, %c1_i32_211 : i32
    %632 = arith.index_cast %631 : i32 to index
    %c0_212 = arith.constant 0 : index
    %633 = vector.load %arg19[%632, %c0_212] : memref<8x64xf32, #tpu.memory_space<vmem>>, vector<1x64xf32>
    tpu.vector_store %arg19[%632, %c0_212], %630 {strides = array<i32>} : memref<8x64xf32, #tpu.memory_space<vmem>>, vector<1x64xf32>,
    %c3_i32_213 = arith.constant 3 : i32
    %c1_i32_214 = arith.constant 1 : i32
    %634 = arith.muli %c3_i32_213, %c1_i32_214 : i32
    %635 = arith.index_cast %634 : i32 to index
    %c0_215 = arith.constant 0 : index
    %636 = vector.load %arg17[%635, %c0_215] : memref<8x256xf32, #tpu.memory_space<vmem>>, vector<1x256xf32>
    %cst_216 = arith.constant dense<0.000000e+00> : vector<1x256xf32>
    %637 = tpu.matmul %630, %562, %cst_216 {dimension_numbers = #tpu.dot_dimension_numbers<[1], [0], [0], [1], [0, 0, 1, 1], [], []>} : vector<1x64xf32>, vector<64x256xf32>, vector<1x256xf32> -> vector<1x256xf32>
    %638 = arith.addf %636, %637 : vector<1x256xf32>
    %639 = arith.negf %638 : vector<1x256xf32>
    %640 = math.exp %639 : vector<1x256xf32>
    %cst_217 = arith.constant 1.000000e+00 : f32
    %641 = vector.broadcast %cst_217 : f32 to vector<1x256xf32>
    %642 = arith.addf %641, %640 : vector<1x256xf32>
    %643 = arith.divf %641, %642 : vector<1x256xf32>
    %644 = math.tanh %638 : vector<1x256xf32>
    %645 = vector.extract_strided_slice %643 {offsets = [0, 0], sizes = [1, 64], strides = [1, 1]} : vector<1x256xf32> to vector<1x64xf32>
    %646 = vector.extract_strided_slice %643 {offsets = [0, 64], sizes = [1, 64], strides = [1, 1]} : vector<1x256xf32> to vector<1x64xf32>
    %647 = vector.extract_strided_slice %644 {offsets = [0, 128], sizes = [1, 64], strides = [1, 1]} : vector<1x256xf32> to vector<1x64xf32>
    %648 = vector.extract_strided_slice %643 {offsets = [0, 192], sizes = [1, 64], strides = [1, 1]} : vector<1x256xf32> to vector<1x64xf32>
    %649 = arith.mulf %646, %628 : vector<1x64xf32>
    %650 = arith.mulf %645, %647 : vector<1x64xf32>
    %651 = arith.addf %649, %650 : vector<1x64xf32>
    %652 = math.tanh %651 : vector<1x64xf32>
    %653 = arith.mulf %648, %652 : vector<1x64xf32>
    %c1_i32_218 = arith.constant 1 : i32
    %654 = arith.muli %c3_i32_213, %c1_i32_218 : i32
    %655 = arith.index_cast %654 : i32 to index
    %c0_219 = arith.constant 0 : index
    %656 = vector.load %arg19[%655, %c0_219] : memref<8x64xf32, #tpu.memory_space<vmem>>, vector<1x64xf32>
    tpu.vector_store %arg19[%655, %c0_219], %653 {strides = array<i32>} : memref<8x64xf32, #tpu.memory_space<vmem>>, vector<1x64xf32>,
    %c4_i32_220 = arith.constant 4 : i32
    %c1_i32_221 = arith.constant 1 : i32
    %657 = arith.muli %c4_i32_220, %c1_i32_221 : i32
    %658 = arith.index_cast %657 : i32 to index
    %c0_222 = arith.constant 0 : index
    %659 = vector.load %arg17[%658, %c0_222] : memref<8x256xf32, #tpu.memory_space<vmem>>, vector<1x256xf32>
    %cst_223 = arith.constant dense<0.000000e+00> : vector<1x256xf32>
    %660 = tpu.matmul %653, %562, %cst_223 {dimension_numbers = #tpu.dot_dimension_numbers<[1], [0], [0], [1], [0, 0, 1, 1], [], []>} : vector<1x64xf32>, vector<64x256xf32>, vector<1x256xf32> -> vector<1x256xf32>
    %661 = arith.addf %659, %660 : vector<1x256xf32>
    %662 = arith.negf %661 : vector<1x256xf32>
    %663 = math.exp %662 : vector<1x256xf32>
    %cst_224 = arith.constant 1.000000e+00 : f32
    %664 = vector.broadcast %cst_224 : f32 to vector<1x256xf32>
    %665 = arith.addf %664, %663 : vector<1x256xf32>
    %666 = arith.divf %664, %665 : vector<1x256xf32>
    %667 = math.tanh %661 : vector<1x256xf32>
    %668 = vector.extract_strided_slice %666 {offsets = [0, 0], sizes = [1, 64], strides = [1, 1]} : vector<1x256xf32> to vector<1x64xf32>
    %669 = vector.extract_strided_slice %666 {offsets = [0, 64], sizes = [1, 64], strides = [1, 1]} : vector<1x256xf32> to vector<1x64xf32>
    %670 = vector.extract_strided_slice %667 {offsets = [0, 128], sizes = [1, 64], strides = [1, 1]} : vector<1x256xf32> to vector<1x64xf32>
    %671 = vector.extract_strided_slice %666 {offsets = [0, 192], sizes = [1, 64], strides = [1, 1]} : vector<1x256xf32> to vector<1x64xf32>
    %672 = arith.mulf %669, %651 : vector<1x64xf32>
    %673 = arith.mulf %668, %670 : vector<1x64xf32>
    %674 = arith.addf %672, %673 : vector<1x64xf32>
    %675 = math.tanh %674 : vector<1x64xf32>
    %676 = arith.mulf %671, %675 : vector<1x64xf32>
    %c1_i32_225 = arith.constant 1 : i32
    %677 = arith.muli %c4_i32_220, %c1_i32_225 : i32
    %678 = arith.index_cast %677 : i32 to index
    %c0_226 = arith.constant 0 : index
    %679 = vector.load %arg19[%678, %c0_226] : memref<8x64xf32, #tpu.memory_space<vmem>>, vector<1x64xf32>
    tpu.vector_store %arg19[%678, %c0_226], %676 {strides = array<i32>} : memref<8x64xf32, #tpu.memory_space<vmem>>, vector<1x64xf32>,
    %c5_i32_227 = arith.constant 5 : i32
    %c1_i32_228 = arith.constant 1 : i32
    %680 = arith.muli %c5_i32_227, %c1_i32_228 : i32
    %681 = arith.index_cast %680 : i32 to index
    %c0_229 = arith.constant 0 : index
    %682 = vector.load %arg17[%681, %c0_229] : memref<8x256xf32, #tpu.memory_space<vmem>>, vector<1x256xf32>
    %cst_230 = arith.constant dense<0.000000e+00> : vector<1x256xf32>
    %683 = tpu.matmul %676, %562, %cst_230 {dimension_numbers = #tpu.dot_dimension_numbers<[1], [0], [0], [1], [0, 0, 1, 1], [], []>} : vector<1x64xf32>, vector<64x256xf32>, vector<1x256xf32> -> vector<1x256xf32>
    %684 = arith.addf %682, %683 : vector<1x256xf32>
    %685 = arith.negf %684 : vector<1x256xf32>
    %686 = math.exp %685 : vector<1x256xf32>
    %cst_231 = arith.constant 1.000000e+00 : f32
    %687 = vector.broadcast %cst_231 : f32 to vector<1x256xf32>
    %688 = arith.addf %687, %686 : vector<1x256xf32>
    %689 = arith.divf %687, %688 : vector<1x256xf32>
    %690 = math.tanh %684 : vector<1x256xf32>
    %691 = vector.extract_strided_slice %689 {offsets = [0, 0], sizes = [1, 64], strides = [1, 1]} : vector<1x256xf32> to vector<1x64xf32>
    %692 = vector.extract_strided_slice %689 {offsets = [0, 64], sizes = [1, 64], strides = [1, 1]} : vector<1x256xf32> to vector<1x64xf32>
    %693 = vector.extract_strided_slice %690 {offsets = [0, 128], sizes = [1, 64], strides = [1, 1]} : vector<1x256xf32> to vector<1x64xf32>
    %694 = vector.extract_strided_slice %689 {offsets = [0, 192], sizes = [1, 64], strides = [1, 1]} : vector<1x256xf32> to vector<1x64xf32>
    %695 = arith.mulf %692, %674 : vector<1x64xf32>
    %696 = arith.mulf %691, %693 : vector<1x64xf32>
    %697 = arith.addf %695, %696 : vector<1x64xf32>
    %698 = math.tanh %697 : vector<1x64xf32>
    %699 = arith.mulf %694, %698 : vector<1x64xf32>
    %c1_i32_232 = arith.constant 1 : i32
    %700 = arith.muli %c5_i32_227, %c1_i32_232 : i32
    %701 = arith.index_cast %700 : i32 to index
    %c0_233 = arith.constant 0 : index
    %702 = vector.load %arg19[%701, %c0_233] : memref<8x64xf32, #tpu.memory_space<vmem>>, vector<1x64xf32>
    tpu.vector_store %arg19[%701, %c0_233], %699 {strides = array<i32>} : memref<8x64xf32, #tpu.memory_space<vmem>>, vector<1x64xf32>,
    %c6_i32_234 = arith.constant 6 : i32
    %c1_i32_235 = arith.constant 1 : i32
    %703 = arith.muli %c6_i32_234, %c1_i32_235 : i32
    %704 = arith.index_cast %703 : i32 to index
    %c0_236 = arith.constant 0 : index
    %705 = vector.load %arg17[%704, %c0_236] : memref<8x256xf32, #tpu.memory_space<vmem>>, vector<1x256xf32>
    %cst_237 = arith.constant dense<0.000000e+00> : vector<1x256xf32>
    %706 = tpu.matmul %699, %562, %cst_237 {dimension_numbers = #tpu.dot_dimension_numbers<[1], [0], [0], [1], [0, 0, 1, 1], [], []>} : vector<1x64xf32>, vector<64x256xf32>, vector<1x256xf32> -> vector<1x256xf32>
    %707 = arith.addf %705, %706 : vector<1x256xf32>
    %708 = arith.negf %707 : vector<1x256xf32>
    %709 = math.exp %708 : vector<1x256xf32>
    %cst_238 = arith.constant 1.000000e+00 : f32
    %710 = vector.broadcast %cst_238 : f32 to vector<1x256xf32>
    %711 = arith.addf %710, %709 : vector<1x256xf32>
    %712 = arith.divf %710, %711 : vector<1x256xf32>
    %713 = math.tanh %707 : vector<1x256xf32>
    %714 = vector.extract_strided_slice %712 {offsets = [0, 0], sizes = [1, 64], strides = [1, 1]} : vector<1x256xf32> to vector<1x64xf32>
    %715 = vector.extract_strided_slice %712 {offsets = [0, 64], sizes = [1, 64], strides = [1, 1]} : vector<1x256xf32> to vector<1x64xf32>
    %716 = vector.extract_strided_slice %713 {offsets = [0, 128], sizes = [1, 64], strides = [1, 1]} : vector<1x256xf32> to vector<1x64xf32>
    %717 = vector.extract_strided_slice %712 {offsets = [0, 192], sizes = [1, 64], strides = [1, 1]} : vector<1x256xf32> to vector<1x64xf32>
    %718 = arith.mulf %715, %697 : vector<1x64xf32>
    %719 = arith.mulf %714, %716 : vector<1x64xf32>
    %720 = arith.addf %718, %719 : vector<1x64xf32>
    %721 = math.tanh %720 : vector<1x64xf32>
    %722 = arith.mulf %717, %721 : vector<1x64xf32>
    %c1_i32_239 = arith.constant 1 : i32
    %723 = arith.muli %c6_i32_234, %c1_i32_239 : i32
    %724 = arith.index_cast %723 : i32 to index
    %c0_240 = arith.constant 0 : index
    %725 = vector.load %arg19[%724, %c0_240] : memref<8x64xf32, #tpu.memory_space<vmem>>, vector<1x64xf32>
    tpu.vector_store %arg19[%724, %c0_240], %722 {strides = array<i32>} : memref<8x64xf32, #tpu.memory_space<vmem>>, vector<1x64xf32>,
    %c7_i32_241 = arith.constant 7 : i32
    %c1_i32_242 = arith.constant 1 : i32
    %726 = arith.muli %c7_i32_241, %c1_i32_242 : i32
    %727 = arith.index_cast %726 : i32 to index
    %c0_243 = arith.constant 0 : index
    %728 = vector.load %arg17[%727, %c0_243] : memref<8x256xf32, #tpu.memory_space<vmem>>, vector<1x256xf32>
    %cst_244 = arith.constant dense<0.000000e+00> : vector<1x256xf32>
    %729 = tpu.matmul %722, %562, %cst_244 {dimension_numbers = #tpu.dot_dimension_numbers<[1], [0], [0], [1], [0, 0, 1, 1], [], []>} : vector<1x64xf32>, vector<64x256xf32>, vector<1x256xf32> -> vector<1x256xf32>
    %730 = arith.addf %728, %729 : vector<1x256xf32>
    %731 = arith.negf %730 : vector<1x256xf32>
    %732 = math.exp %731 : vector<1x256xf32>
    %cst_245 = arith.constant 1.000000e+00 : f32
    %733 = vector.broadcast %cst_245 : f32 to vector<1x256xf32>
    %734 = arith.addf %733, %732 : vector<1x256xf32>
    %735 = arith.divf %733, %734 : vector<1x256xf32>
    %736 = math.tanh %730 : vector<1x256xf32>
    %737 = vector.extract_strided_slice %735 {offsets = [0, 0], sizes = [1, 64], strides = [1, 1]} : vector<1x256xf32> to vector<1x64xf32>
    %738 = vector.extract_strided_slice %735 {offsets = [0, 64], sizes = [1, 64], strides = [1, 1]} : vector<1x256xf32> to vector<1x64xf32>
    %739 = vector.extract_strided_slice %736 {offsets = [0, 128], sizes = [1, 64], strides = [1, 1]} : vector<1x256xf32> to vector<1x64xf32>
    %740 = vector.extract_strided_slice %735 {offsets = [0, 192], sizes = [1, 64], strides = [1, 1]} : vector<1x256xf32> to vector<1x64xf32>
    %741 = arith.mulf %738, %720 : vector<1x64xf32>
    %742 = arith.mulf %737, %739 : vector<1x64xf32>
    %743 = arith.addf %741, %742 : vector<1x64xf32>
    %744 = math.tanh %743 : vector<1x64xf32>
    %745 = arith.mulf %740, %744 : vector<1x64xf32>
    %c1_i32_246 = arith.constant 1 : i32
    %746 = arith.muli %c7_i32_241, %c1_i32_246 : i32
    %747 = arith.index_cast %746 : i32 to index
    %c0_247 = arith.constant 0 : index
    %748 = vector.load %arg19[%747, %c0_247] : memref<8x64xf32, #tpu.memory_space<vmem>>, vector<1x64xf32>
    tpu.vector_store %arg19[%747, %c0_247], %745 {strides = array<i32>} : memref<8x64xf32, #tpu.memory_space<vmem>>, vector<1x64xf32>,
    %c8_i32_248 = arith.constant 8 : i32
    %c0_249 = arith.constant 0 : index
    %c0_250 = arith.constant 0 : index
    %749 = vector.load %arg19[%c0_249, %c0_250] : memref<8x64xf32, #tpu.memory_space<vmem>>, vector<8x64xf32>
    %c0_251 = arith.constant 0 : index
    %c0_252 = arith.constant 0 : index
    %750 = vector.load %arg13[%c0_251, %c0_252] : memref<64x64xf32, #tpu.memory_space<vmem>>, vector<64x64xf32>
    %cst_253 = arith.constant dense<0.000000e+00> : vector<8x64xf32>
    %751 = tpu.matmul %749, %750, %cst_253 {dimension_numbers = #tpu.dot_dimension_numbers<[1], [0], [0], [1], [0, 0, 1, 1], [], []>} : vector<8x64xf32>, vector<64x64xf32>, vector<8x64xf32> -> vector<8x64xf32>
    %c0_254 = arith.constant 0 : index
    %c0_255 = arith.constant 0 : index
    %752 = vector.load %arg14[%c0_254, %c0_255] : memref<1x64xf32, #tpu.memory_space<vmem>>, vector<1x64xf32>
    %753 = vector.broadcast %752 : vector<1x64xf32> to vector<8x64xf32>
    %754 = arith.addf %751, %753 : vector<8x64xf32>
    %c0_256 = arith.constant 0 : index
    %c0_257 = arith.constant 0 : index
    %755 = vector.load %arg15[%c0_256, %c0_257] : memref<8x64xf32, #tpu.memory_space<vmem>>, vector<8x64xf32>
    tpu.vector_store %arg15[%c0_256, %c0_257], %754 {strides = array<i32>} : memref<8x64xf32, #tpu.memory_space<vmem>>, vector<8x64xf32>,
    return
  }
}

</mosaic_0001>

<bundles_post_ra>
// kernel: auto_lstm_forward.1
= control target key start
LH: loop header
LB: loop body
LE: loop exit
PB: predicated region body
PF: predicated region fallthrough
CT: control target
= control target key end

     0   :  { %20 = vsyncpa [#allocation7], 0  ;;  %s6004_s0 = inlined_call_operand.vmem [shape: f32[8,64], index: 0, kind: input, shape index: {}]   ;;  %s6005_s1 = inlined_call_operand.hbm [shape: f32[64,128], index: 1, kind: input, shape index: {}]   ;;  %s6006_s2 = inlined_call_operand.hbm [shape: f32[32,128], index: 2, kind: input, shape index: {}]   ;;  %s6007_s3 = inlined_call_operand.vmem [shape: f32[1,128], index: 3, kind: input, shape index: {}]   ;;  %s6008_s4 = inlined_call_operand.hbm [shape: f32[32,128], index: 4, kind: input, shape index: {}]   ;;  %s6009_s5 = inlined_call_operand.hbm [shape: f32[32,128], index: 5, kind: input, shape index: {}]   ;;  %s6010_s6 = inlined_call_operand.vmem [shape: f32[1,128], index: 6, kind: input, shape index: {}]   ;;  %s6011_s7 = inlined_call_operand.hbm [shape: f32[32,256], index: 7, kind: input, shape index: {}]   ;;  %s6012_s8 = inlined_call_operand.vmem [shape: f32[64,256], index: 8, kind: input, shape index: {}]   ;;  %s6013_s9 = inlined_call_operand.vmem [shape: f32[1,256], index: 9, kind: input, shape index: {}]   ;;  %s6014_s10 = inlined_call_operand.hbm [shape: f32[64,256], index: 10, kind: input, shape index: {}]   ;;  %s6015_s11 = inlined_call_operand.hbm [shape: f32[64,256], index: 11, kind: input, shape index: {}]   ;;  %s6016_s12 = inlined_call_operand.vmem [shape: f32[1,256], index: 12, kind: input, shape index: {}]   ;;  %s6017_s13 = inlined_call_operand.vmem [shape: f32[64,64], index: 13, kind: input, shape index: {}]   ;;  %s6018_s14 = inlined_call_operand.vmem [shape: f32[1,64], index: 14, kind: input, shape index: {}]   ;;  %s6019_s15 = inlined_call_operand.hbm [shape: f32[8,64], index: 15, kind: output, shape index: {}]  }
   0x1   :  { %21 = vsyncpa [#allocation10], 0 }
   0x2   :  { %22 = vsyncpa [#allocation13], 0 }
   0x3   :  { %23 = vsyncpa [#allocation16], 0 }
   0x4   :  { %24 = vsyncpa [#allocation8], 0  ;;  %s5002_s18 = smov [#allocation9]   ;;  %s5003_s20 = smov [#allocation12]  }
   0x5   :  { %s44_s19 = sshll.u32 %s5002_s18, 4  ;;  %s70_s21 = sshll.u32 %s5003_s20, 4  ;;  %s45_s19 = int_to_ptr.vmem [resolvable:$true] %s44_s19  ;;  %s71_s21 = int_to_ptr.vmem [resolvable:$true] %s70_s21 }
   0x6   :  { %s4840_s22 = scalar_lea.vmem %s45_s19, 512  ;;  %p4845_p1 = scmp.lt.s32.totalorder %s45_s19, %s45_s19 }
   0x7   :  { %p4841_p0 = scmp.ne.s32.totalorder %s45_s19, %s4840_s22  ;;  %p4846_p2 = scmp.lt.s32.totalorder %s4840_s22, %s4840_s22 }
   0x9   :  { %p4847_p3 = por %p4846_p2, %p4845_p1 }
   0xb   :  { %p4848_p4 = pnand %p4847_p3, %p4841_p0 }
   0xd   :  { %4851 = shalt.err (!%p4848_p4)
}
   0xe   :  { %s5004_s23 = smov 128   ;;  %s5005_s24 = smov 8  }
   0xf   :  { %50 = dma.hbm_to_vmem [thread:$0]  %s6006_s2, 512, %s45_s19, [#allocation10], %s5004_s23, %s5004_s23, %s5005_s24  }
  0x10   :  { %s4860_s27 = scalar_lea.vmem %s71_s21, 512  ;;  %p4865_p6 = scmp.lt.s32.totalorder %s71_s21, %s71_s21 }
  0x11   :  { %p4861_p5 = scmp.ne.s32.totalorder %s71_s21, %s4860_s27  ;;  %p4866_p7 = scmp.lt.s32.totalorder %s4860_s27, %s4860_s27 }
  0x13   :  { %p4867_p8 = por %p4866_p7, %p4865_p6 }
  0x15   :  { %p4868_p9 = pnand %p4867_p8, %p4861_p5 }
  0x17   :  { %4871 = shalt.err (!%p4868_p9)
}
  0x18   :  { %76 = dma.hbm_to_vmem [thread:$0]  %s6009_s5, 512, %s71_s21, [#allocation13], %s5004_s23, %s5004_s23, %s5005_s24  }
  0x19   :  { %s5006_s30 = smov [#allocation15]   ;;  %s5007_s17 = smov [#allocation6]  }
  0x1a   :  { %s100_s16 = sshll.u32 %s5006_s30, 4  ;;  %s32_s18 = sshll.u32 %s5007_s17, 4  ;;  %s101_s16 = int_to_ptr.vmem [resolvable:$true] %s100_s16  ;;  %s33_s18 = int_to_ptr.vmem [resolvable:$true] %s32_s18 }
  0x1b   :  { %s4880_s2 = scalar_lea.vmem %s101_s16, 2048  ;;  %p4885_p11 = scmp.lt.s32.totalorder %s101_s16, %s101_s16 }
  0x1c   :  { %p4881_p10 = scmp.ne.s32.totalorder %s101_s16, %s4880_s2  ;;  %p4886_p12 = scmp.lt.s32.totalorder %s4880_s2, %s4880_s2 }
  0x1e   :  { %p4887_p13 = por %p4886_p12, %p4885_p11 }
  0x20   :  { %p4888_p0 = pnand %p4887_p13, %p4881_p10 }
  0x22   :  { %4891 = shalt.err (!%p4888_p0)
}
  0x23   :  { %s5008_s19 = smov 256   ;;  %s5009_s20 = smov 16  }
  0x24   :  { %106 = dma.hbm_to_vmem [thread:$0]  %s6014_s10, 2048, %s101_s16, [#allocation16], %s5008_s19, %s5008_s19, %s5009_s20  }
  0x25   :  { %s4900_s21 = scalar_lea.vmem %s33_s18, 1024  ;;  %p4905_p2 = scmp.lt.s32.totalorder %s33_s18, %s33_s18 }
  0x26   :  { %p4901_p1 = scmp.ne.s32.totalorder %s33_s18, %s4900_s21  ;;  %p4906_p3 = scmp.lt.s32.totalorder %s4900_s21, %s4900_s21 }
  0x28   :  { %p4907_p4 = por %p4906_p3, %p4905_p2 }
  0x2a   :  { %p4908_p5 = pnand %p4907_p4, %p4901_p1 }
  0x2c   :  { %4911 = shalt.err (!%p4908_p5)
}
  0x2d   :  { %38 = dma.hbm_to_vmem [thread:$0]  %s6005_s1, 1024, %s33_s18, [#allocation7], %s5004_s23, %s5004_s23, %s5005_s24  }
  0x2e   :  { %s5010_s27 = smov [#allocation11]   ;;  %s5011_s29 = smov [#allocation14]  }
  0x2f   :  { %s58_s28 = sshll.u32 %s5010_s27, 4  ;;  %s84_s30 = sshll.u32 %s5011_s29, 4  ;;  %s59_s28 = int_to_ptr.vmem [resolvable:$true] %s58_s28  ;;  %s85_s30 = int_to_ptr.vmem [resolvable:$true] %s84_s30 }
  0x30   :  { %s4920_s10 = scalar_lea.vmem %s59_s28, 512  ;;  %p4925_p7 = scmp.lt.s32.totalorder %s59_s28, %s59_s28 }
  0x31   :  { %p4921_p6 = scmp.ne.s32.totalorder %s59_s28, %s4920_s10  ;;  %p4926_p8 = scmp.lt.s32.totalorder %s4920_s10, %s4920_s10 }
  0x33   :  { %p4927_p9 = por %p4926_p8, %p4925_p7 }
  0x35   :  { %p4928_p10 = pnand %p4927_p9, %p4921_p6 }
  0x37   :  { %4931 = shalt.err (!%p4928_p10)
}
  0x38   :  { %64 = dma.hbm_to_vmem [thread:$0]  %s6008_s4, 512, %s59_s28, [#allocation10], %s5004_s23, %s5004_s23, %s5005_s24  }
  0x39   :  { %s4940_s1 = scalar_lea.vmem %s85_s30, 1024  ;;  %p4945_p12 = scmp.lt.s32.totalorder %s85_s30, %s85_s30 }
  0x3a   :  { %p4941_p11 = scmp.ne.s32.totalorder %s85_s30, %s4940_s1  ;;  %p4946_p13 = scmp.lt.s32.totalorder %s4940_s1, %s4940_s1 }
  0x3c   :  { %p4947_p0 = por %p4946_p13, %p4945_p12 }
  0x3e   :  { %p4948_p1 = pnand %p4947_p0, %p4941_p11 }
  0x40   :  { %4951 = shalt.err (!%p4948_p1)
}
  0x41   :  { %90 = dma.hbm_to_vmem [thread:$0]  %s6011_s7, 1024, %s85_s30, [#allocation13], %s5008_s19, %s5008_s19, %s5009_s20  }
  0x42   :  { %s5012_s22 = smov [#allocation17]  }
  0x43   :  { %s112_s5 = sshll.u32 %s5012_s22, 4  ;;  %s113_s5 = int_to_ptr.vmem [resolvable:$true] %s112_s5 }
  0x44   :  { %s4960_s21 = scalar_lea.vmem %s113_s5, 2048  ;;  %p4965_p3 = scmp.lt.s32.totalorder %s113_s5, %s113_s5 }
  0x45   :  { %p4961_p2 = scmp.ne.s32.totalorder %s113_s5, %s4960_s21  ;;  %p4966_p4 = scmp.lt.s32.totalorder %s4960_s21, %s4960_s21 }
  0x47   :  { %p4967_p5 = por %p4966_p4, %p4965_p3 }
  0x49   :  { %p4968_p6 = pnand %p4967_p5, %p4961_p2 }
  0x4b   :  { %4971 = shalt.err (!%p4968_p6)
}
  0x4c   :  { %118 = dma.hbm_to_vmem [thread:$0]  %s6015_s11, 2048, %s113_s5, [#allocation16], %s5008_s19, %s5008_s19, %s5009_s20  }
  0x4d   :  { %4992 = dma.done.wait [#allocation7], 1024  }
  0x4e   :  { %4993 = vsyncadd [#allocation7], 4294966272 }
  0x4f   :  { %4994 = dma.done.wait [#allocation10], 1024  }
  0x50   :  { %4995 = vsyncadd [#allocation10], 4294966272 }
  0x51   :  { %4996 = dma.done.wait [#allocation13], 1536  }
  0x52   :  { %4997 = vsyncadd [#allocation13], 4294965760 }
  0x53   :  { %4998 = dma.done.wait [#allocation16], 4096  }
  0x54   :  { %4999 = vsyncadd [#allocation16], 4294963200  ;;  %v5013_v0 = vmov 0.0   ;;  %vm5014_vm0 = vmmov 0   ;;  %v154_v1 = vld [vmem:[#allocation6 + $0x38] sm:$0xff]  ;;  %v153_v2 = vld [vmem:[#allocation6 + $0x30] sm:$0xff] }
  0x55   :  { %4302 = vmatprep.subr.mxu0 %v5013_v0  ;;  %4318 = vmatprep.mubr.msk.f32.mxu0 %vm5014_vm0, %v5013_v0  ;;  %v152_v3 = vld [vmem:[#allocation6 + $0x28] sm:$0xff]  ;;  %v5148_v4 = vld [vmem:[#allocation9 + $0x18] sm:$0xff]  ;;  %v5150_v5 = vld [vmem:[#allocation9 + $0x10] sm:$0xff]  ;;  %vm162_vm1 = vcmask 523264   ;;  %s5015_s19 = smov 64   ;;  %vm345_vm2 = vcmask 253952  }
  0x56   :  { %4321 = vmatprep.subr.mxu1 %v5013_v0  ;;  %4329 = vmatprep.mubr.msk.f32.mxu1 %vm5014_vm0, %v5013_v0  ;;  %v151_v6 = vld [vmem:[#allocation6 + $0x20] sm:$0xff]  ;;  %v5155_v7 = vld [vmem:[#allocation9 + $0x8] sm:$0xff]  ;;  %v150_v8 = vld [vmem:[#allocation6 + $0x18] sm:$0xff]  ;;  %vm242_vm3 = vcmask 261120   ;;  %vm2190_vm4 = vcmask 516096  }
  0x57   :  { %4303 = vmatpush3.msra.mxu0 %v154_v1  ;;  %4322 = vmatpush3.msra.mxu1 %v5148_v4  ;;  %v5160_v9 = vld [vmem:[#allocation9] sm:$0xff]  ;;  %v149_v10 = vld [vmem:[#allocation6 + $0x10] sm:$0xff]  ;;  %v148_v11 = vld [vmem:[#allocation6 + $0x8] sm:$0xff] }
  0x58   :  { %4304 = vmatprep.subr.mxu0 %v5013_v0  ;;  %4323 = vmatprep.subr.mxu1 %v5013_v0  ;;  %v147_v12 = vld [vmem:[#allocation6] sm:$0xff]  ;;  %v146_v13 = vld [vmem:[%s6004_s0] sm:$0xff] }
  0x59   :  { %4305 = vmatpush3.msra.mxu0 %v153_v2  ;;  %4324 = vmatpush3.msra.mxu1 %v5150_v5  ;;  %v4123_v16 = vld [vmem:[%s6007_s3] ss:$0 sm:$0xff]  ;;  %s5016_s3 = smov 32  }
  0x5a   :  { %4306 = vmatprep.subr.mxu0 %v5013_v0  ;;  %4325 = vmatprep.subr.mxu1 %v5013_v0 }
  0x5b   :  { %4307 = vmatpush3.msra.mxu0 %v152_v3  ;;  %4326 = vmatpush3.msra.mxu1 %v5155_v7 }
  0x5c   :  { %4308 = vmatprep.subr.mxu0 %v5013_v0  ;;  %4327 = vmatprep.subr.mxu1 %v5013_v0 }
  0x5d   :  { %4309 = vmatpush3.msra.mxu0 %v151_v6  ;;  %4328 = vmatpush3.msra.mxu1 %v5160_v9 }
  0x5e   :  { %4310 = vmatprep.subr.mxu0 %v5013_v0  ;;  %4330 = vmatmul.mubr.f32.vlgmr.msra.gmra.mxu1 %v5013_v0 }
  0x5f   :  { %4311 = vmatpush3.msra.mxu0 %v150_v8  ;;  %4332 = vmatprep.subr.mxu1 %v5013_v0 }
  0x60   :  { %4312 = vmatprep.subr.mxu0 %v5013_v0  ;;  %4333 = vmatpush3.msra.mxu1 %v5148_v4 }
  0x61   :  { %4313 = vmatpush3.msra.mxu0 %v149_v10  ;;  %4334 = vmatprep.subr.mxu1 %v5013_v0 }
  0x62   :  { %4314 = vmatprep.subr.mxu0 %v5013_v0  ;;  %4335 = vmatpush3.msra.mxu1 %v5150_v5 }
  0x63   :  { %4315 = vmatpush3.msra.mxu0 %v148_v11  ;;  %4336 = vmatprep.subr.mxu1 %v5013_v0 }
  0x64   :  { %4316 = vmatprep.subr.mxu0 %v5013_v0  ;;  %4337 = vmatpush3.msra.mxu1 %v5155_v7 }
  0x65   :  { %4317 = vmatpush3.msra.mxu0 %v147_v12  ;;  %4340 = vmatprep.mubr.msk.f32.mxu1 %vm5014_vm0, %v5013_v0 }
  0x66   :  { %4319 = vmatmul.mubr.msk.f32.vlgmr.msra.gmra.mxu0 %vm162_vm1, %v146_v13  ;;  %4338 = vmatprep.subr.mxu1 %v5013_v0 }
  0x67   :  { %4343 = vmatprep.subr.mxu0 %v5013_v0  ;;  %4339 = vmatpush3.msra.mxu1 %v5160_v9 }
  0x68   :  { %4344 = vmatpush3.msra.mxu0 %v5148_v4  ;;  %4351 = vmatprep.mubr.msk.f32.mxu0 %vm5014_vm0, %v5013_v0 }
  0x69   :  { %4345 = vmatprep.subr.mxu0 %v5013_v0  ;;  %4354 = vmatprep.subr.mxu1 %v5013_v0 }
  0x6a   :  { %4346 = vmatpush3.msra.mxu0 %v5150_v5 }
  0x6b   :  { %4347 = vmatprep.subr.mxu0 %v5013_v0 }
  0x6c   :  { %4348 = vmatpush3.msra.mxu0 %v5155_v7 }
  0x6d   :  { %4349 = vmatprep.subr.mxu0 %v5013_v0 }
  0x6e   :  { %4350 = vmatpush3.msra.mxu0 %v5160_v9 }
  0x6f   :  { %4365 = vmatprep.subr.mxu0 %v5013_v0 }
 0x11e   :  { %v312_v14 = vpop.f32.mrf.mxu1 }
 0x120   :  { %v4331_v15 = vpop.f32.mrf.mxu1 }
 0x126   :  { %v232_v17 = vpop.f32.mrf.mxu0 }
 0x127   :  { %v233_v18 = vadd.f32 %v4123_v16, %v232_v17 }
 0x128   :  { %v4320_v19 = vpop.f32.mrf.mxu0 }
 0x129   :  { %236 = vst [vmem:[#allocation2] sm:$0xff] %v233_v18 }
 0x130   :  { %v241_v20 = vld [vmem:[#allocation2] sm:$0x1]  ;;  %v347_v36 = vld [vmem:[#allocation2 + $0x1] sm:$0x1]  ;;  %v450_v54 = vld [vmem:[#allocation2 + $0x2] sm:$0x1] }
 0x131   :  { %v316_v21 = vadd.f32 %v312_v14, %v241_v20  ;;  %v553_v13 = vld [vmem:[#allocation2 + $0x3] sm:$0x1] }
 0x133   :  { %4544 = vtanh.f32 %v316_v21  ;;  %v4125_v23 = vmul.f32 -1.442695, %v316_v21 }
 0x135   :  { %4546 = vpow2.f32 %v4125_v23 }
 0x140   :  { %v4545_v22 = vpop.eup %4544 }
 0x141   :  { %326 = vrot.lane.b32.xlu0 %v4545_v22, %s5015_s19 }
 0x142   :  { %v4547_v24 = vpop.eup %4546 }
 0x143   :  { %v320_v25 = vadd.f32 1.0, %v4547_v24 }
 0x145   :  { %4548 = vrcp.f32 %v320_v25 }
 0x152   :  { %v4549_v26 = vpop.eup %4548 }
 0x153   :  { %v324_v29 = vmul.f32 0.0, %v4549_v26 }
 0x1b3   :  { %v327_v27 = vpop.permute.xlu0 %326 }
 0x1b4   :  { %v329_v28 = vmul.f32 %v4549_v26, %v327_v27 }
 0x1b6   :  { %331 = vrot.lane.b32.xlu0 %v329_v28, %s5016_s3 }
 0x228   :  { %v332_v30 = vpop.permute.xlu0 %331 }
 0x229   :  { %v334_v31 = vadd.f32 %v332_v30, %v324_v29 }
 0x22b   :  { %4550 = vtanh.f32 %v334_v31 }
 0x238   :  { %v4551_v32 = vpop.eup %4550 }
 0x239   :  { %337 = vrot.lane.b32.xlu1 %v4551_v32, %s5015_s19 }
 0x2ab   :  { %v338_v33 = vpop.permute.xlu1 %337 }
 0x2ac   :  { %v340_v34 = vmul.f32 %v4549_v26, %v338_v33 }
 0x2ae   :  { %342 = vrot.lane.b32.xlu1 %v340_v34, %s5016_s3 }
 0x320   :  { %v343_v35 = vpop.permute.xlu1 %342 }
 0x321   :  { %346 = vst.msk [vmem:[#allocation4] sm:$0x1] %vm345_vm2, %v343_v35  ;;  %4341 = vmatmul.mubr.msk.f32.vlgmr.msra.gmra.mxu1 %vm242_vm3, %v343_v35 }
 0x322   :  { %4355 = vmatpush3.msra.mxu1 %v5148_v4  ;;  %4362 = vmatprep.mubr.msk.f32.mxu1 %vm5014_vm0, %v5013_v0 }
 0x323   :  { %4356 = vmatprep.subr.mxu1 %v5013_v0 }
 0x324   :  { %4357 = vmatpush3.msra.mxu1 %v5150_v5 }
 0x325   :  { %4358 = vmatprep.subr.mxu1 %v5013_v0 }
 0x326   :  { %4359 = vmatpush3.msra.mxu1 %v5155_v7 }
 0x327   :  { %4360 = vmatprep.subr.mxu1 %v5013_v0 }
 0x328   :  { %4361 = vmatpush3.msra.mxu1 %v5160_v9 }
 0x329   :  { %4376 = vmatprep.subr.mxu1 %v5013_v0 }
 0x3e1   :  { %v416_v37 = vpop.f32.mrf.mxu1 }
 0x3e2   :  { %v420_v38 = vadd.f32 %v416_v37, %v347_v36 }
 0x3e3   :  { %v4342_v39 = vpop.f32.mrf.mxu1 }
 0x3e4   :  { %4552 = vtanh.f32 %v420_v38  ;;  %v4127_v41 = vmul.f32 -1.442695, %v420_v38 }
 0x3e6   :  { %4554 = vpow2.f32 %v4127_v41 }
 0x3f1   :  { %v4553_v40 = vpop.eup %4552 }
 0x3f2   :  { %430 = vrot.lane.b32.xlu0 %v4553_v40, %s5015_s19 }
 0x3f3   :  { %v4555_v42 = vpop.eup %4554 }
 0x3f4   :  { %v424_v43 = vadd.f32 1.0, %v4555_v42 }
 0x3f6   :  { %4556 = vrcp.f32 %v424_v43 }
 0x403   :  { %v4557_v44 = vpop.eup %4556 }
 0x404   :  { %v428_v47 = vmul.f32 %v4557_v44, %v334_v31  ;;  %v656_v31 = vld [vmem:[#allocation2 + $0x4] sm:$0x1] }
 0x464   :  { %v431_v45 = vpop.permute.xlu0 %430 }
 0x465   :  { %v433_v46 = vmul.f32 %v4557_v44, %v431_v45 }
 0x467   :  { %435 = vrot.lane.b32.xlu1 %v433_v46, %s5016_s3 }
 0x4d9   :  { %v436_v48 = vpop.permute.xlu1 %435 }
 0x4da   :  { %v438_v49 = vadd.f32 %v436_v48, %v428_v47 }
 0x4dc   :  { %4558 = vtanh.f32 %v438_v49 }
 0x4e9   :  { %v4559_v50 = vpop.eup %4558 }
 0x4ea   :  { %441 = vrot.lane.b32.xlu0 %v4559_v50, %s5015_s19 }
 0x55c   :  { %v442_v51 = vpop.permute.xlu0 %441 }
 0x55d   :  { %v444_v52 = vmul.f32 %v4557_v44, %v442_v51 }
 0x55f   :  { %446 = vrot.lane.b32.xlu1 %v444_v52, %s5016_s3 }
 0x5d1   :  { %v447_v53 = vpop.permute.xlu1 %446 }
 0x5d2   :  { %449 = vst.msk [vmem:[#allocation4 + $0x1] sm:$0x1] %vm345_vm2, %v447_v53  ;;  %4352 = vmatmul.mubr.msk.f32.vlgmr.msra.gmra.mxu0 %vm242_vm3, %v447_v53 }
 0x5d3   :  { %4366 = vmatpush3.msra.mxu0 %v5148_v4  ;;  %4373 = vmatprep.mubr.msk.f32.mxu0 %vm5014_vm0, %v5013_v0 }
 0x5d4   :  { %4367 = vmatprep.subr.mxu0 %v5013_v0 }
 0x5d5   :  { %4368 = vmatpush3.msra.mxu0 %v5150_v5 }
 0x5d6   :  { %4369 = vmatprep.subr.mxu0 %v5013_v0 }
 0x5d7   :  { %4370 = vmatpush3.msra.mxu0 %v5155_v7 }
 0x5d8   :  { %4371 = vmatprep.subr.mxu0 %v5013_v0 }
 0x5d9   :  { %4372 = vmatpush3.msra.mxu0 %v5160_v9 }
 0x5da   :  { %4387 = vmatprep.subr.mxu0 %v5013_v0 }
 0x692   :  { %v519_v55 = vpop.f32.mrf.mxu0 }
 0x693   :  { %v523_v56 = vadd.f32 %v519_v55, %v450_v54 }
 0x694   :  { %v4353_v57 = vpop.f32.mrf.mxu0 }
 0x695   :  { %4560 = vtanh.f32 %v523_v56  ;;  %v4129_v59 = vmul.f32 -1.442695, %v523_v56 }
 0x697   :  { %4562 = vpow2.f32 %v4129_v59 }
 0x6a2   :  { %v4561_v58 = vpop.eup %4560 }
 0x6a3   :  { %533 = vrot.lane.b32.xlu0 %v4561_v58, %s5015_s19 }
 0x6a4   :  { %v4563_v60 = vpop.eup %4562 }
 0x6a5   :  { %v527_v61 = vadd.f32 1.0, %v4563_v60 }
 0x6a7   :  { %4564 = vrcp.f32 %v527_v61 }
 0x6b4   :  { %v4565_v62 = vpop.eup %4564 }
 0x6b5   :  { %v531_v2 = vmul.f32 %v4565_v62, %v438_v49  ;;  %v759_v49 = vld [vmem:[#allocation2 + $0x5] sm:$0x1] }
 0x715   :  { %v534_v63 = vpop.permute.xlu0 %533 }
 0x716   :  { %v536_v1 = vmul.f32 %v4565_v62, %v534_v63  ;;  %v862_v63 = vld [vmem:[#allocation2 + $0x6] sm:$0x1] }
 0x718   :  { %538 = vrot.lane.b32.xlu1 %v536_v1, %s5016_s3 }
 0x78a   :  { %v539_v3 = vpop.permute.xlu1 %538 }
 0x78b   :  { %v541_v6 = vadd.f32 %v539_v3, %v531_v2 }
 0x78d   :  { %4566 = vtanh.f32 %v541_v6 }
 0x79a   :  { %v4567_v8 = vpop.eup %4566 }
 0x79b   :  { %544 = vrot.lane.b32.xlu0 %v4567_v8, %s5015_s19 }
 0x80d   :  { %v545_v10 = vpop.permute.xlu0 %544 }
 0x80e   :  { %v547_v11 = vmul.f32 %v4565_v62, %v545_v10 }
 0x810   :  { %549 = vrot.lane.b32.xlu1 %v547_v11, %s5016_s3 }
 0x882   :  { %v550_v12 = vpop.permute.xlu1 %549 }
 0x883   :  { %552 = vst.msk [vmem:[#allocation4 + $0x2] sm:$0x1] %vm345_vm2, %v550_v12  ;;  %4363 = vmatmul.mubr.msk.f32.vlgmr.msra.gmra.mxu1 %vm242_vm3, %v550_v12 }
 0x884   :  { %4377 = vmatpush3.msra.mxu1 %v5148_v4  ;;  %4384 = vmatprep.mubr.msk.f32.mxu1 %vm5014_vm0, %v5013_v0 }
 0x885   :  { %4378 = vmatprep.subr.mxu1 %v5013_v0 }
 0x886   :  { %4379 = vmatpush3.msra.mxu1 %v5150_v5 }
 0x887   :  { %4380 = vmatprep.subr.mxu1 %v5013_v0 }
 0x888   :  { %4381 = vmatpush3.msra.mxu1 %v5155_v7 }
 0x889   :  { %4382 = vmatprep.subr.mxu1 %v5013_v0 }
 0x88a   :  { %4383 = vmatpush3.msra.mxu1 %v5160_v9 }
 0x88b   :  { %4398 = vmatprep.subr.mxu1 %v5013_v0 }
 0x943   :  { %v622_v14 = vpop.f32.mrf.mxu1 }
 0x944   :  { %v626_v15 = vadd.f32 %v622_v14, %v553_v13 }
 0x945   :  { %v4364_v16 = vpop.f32.mrf.mxu1 }
 0x946   :  { %4568 = vtanh.f32 %v626_v15  ;;  %v4131_v18 = vmul.f32 -1.442695, %v626_v15 }
 0x948   :  { %4570 = vpow2.f32 %v4131_v18 }
 0x953   :  { %v4569_v17 = vpop.eup %4568 }
 0x954   :  { %636 = vrot.lane.b32.xlu0 %v4569_v17, %s5015_s19 }
 0x955   :  { %v4571_v19 = vpop.eup %4570 }
 0x956   :  { %v630_v20 = vadd.f32 1.0, %v4571_v19 }
 0x958   :  { %4572 = vrcp.f32 %v630_v20 }
 0x965   :  { %v4573_v21 = vpop.eup %4572 }
 0x966   :  { %v634_v24 = vmul.f32 %v4573_v21, %v541_v6 }
 0x9c6   :  { %v637_v22 = vpop.permute.xlu0 %636 }
 0x9c7   :  { %v639_v23 = vmul.f32 %v4573_v21, %v637_v22  ;;  %v965_v22 = vld [vmem:[#allocation2 + $0x7] sm:$0x1] }
 0x9c9   :  { %641 = vrot.lane.b32.xlu1 %v639_v23, %s5016_s3 }
 0xa3b   :  { %v642_v25 = vpop.permute.xlu1 %641 }
 0xa3c   :  { %v644_v26 = vadd.f32 %v642_v25, %v634_v24 }
 0xa3e   :  { %4574 = vtanh.f32 %v644_v26 }
 0xa4b   :  { %v4575_v27 = vpop.eup %4574 }
 0xa4c   :  { %647 = vrot.lane.b32.xlu0 %v4575_v27, %s5015_s19 }
 0xabe   :  { %v648_v28 = vpop.permute.xlu0 %647 }
 0xabf   :  { %v650_v29 = vmul.f32 %v4573_v21, %v648_v28 }
 0xac1   :  { %652 = vrot.lane.b32.xlu1 %v650_v29, %s5016_s3 }
 0xb33   :  { %v653_v30 = vpop.permute.xlu1 %652 }
 0xb34   :  { %655 = vst.msk [vmem:[#allocation4 + $0x3] sm:$0x1] %vm345_vm2, %v653_v30  ;;  %4374 = vmatmul.mubr.msk.f32.vlgmr.msra.gmra.mxu0 %vm242_vm3, %v653_v30 }
 0xb35   :  { %4388 = vmatpush3.msra.mxu0 %v5148_v4  ;;  %4395 = vmatprep.mubr.msk.f32.mxu0 %vm5014_vm0, %v5013_v0 }
 0xb36   :  { %4389 = vmatprep.subr.mxu0 %v5013_v0 }
 0xb37   :  { %4390 = vmatpush3.msra.mxu0 %v5150_v5 }
 0xb38   :  { %4391 = vmatprep.subr.mxu0 %v5013_v0 }
 0xb39   :  { %4392 = vmatpush3.msra.mxu0 %v5155_v7 }
 0xb3a   :  { %4393 = vmatprep.subr.mxu0 %v5013_v0 }
 0xb3b   :  { %4394 = vmatpush3.msra.mxu0 %v5160_v9 }
 0xb3c   :  { %4409 = vmatprep.subr.mxu0 %v5013_v0 }
 0xbf4   :  { %v725_v32 = vpop.f32.mrf.mxu0 }
 0xbf5   :  { %v729_v33 = vadd.f32 %v725_v32, %v656_v31 }
 0xbf6   :  { %v4375_v34 = vpop.f32.mrf.mxu0 }
 0xbf7   :  { %4576 = vtanh.f32 %v729_v33  ;;  %v4133_v36 = vmul.f32 -1.442695, %v729_v33 }
 0xbf9   :  { %4578 = vpow2.f32 %v4133_v36 }
 0xc04   :  { %v4577_v35 = vpop.eup %4576 }
 0xc05   :  { %739 = vrot.lane.b32.xlu0 %v4577_v35, %s5015_s19 }
 0xc06   :  { %v4579_v37 = vpop.eup %4578 }
 0xc07   :  { %v733_v38 = vadd.f32 1.0, %v4579_v37  ;;  %v1072_v37 = vld [vmem:[#allocation11 + $0x18] sm:$0xff] }
 0xc09   :  { %4580 = vrcp.f32 %v733_v38  ;;  %v1071_v38 = vld [vmem:[#allocation11 + $0x10] sm:$0xff] }
 0xc16   :  { %v4581_v39 = vpop.eup %4580 }
 0xc17   :  { %v737_v42 = vmul.f32 %v4581_v39, %v644_v26 }
 0xc77   :  { %v740_v40 = vpop.permute.xlu0 %739 }
 0xc78   :  { %v742_v41 = vmul.f32 %v4581_v39, %v740_v40  ;;  %v1069_v40 = vld [vmem:[#allocation11] sm:$0xff] }
 0xc7a   :  { %744 = vrot.lane.b32.xlu1 %v742_v41, %s5016_s3  ;;  %v5301_v41 = vld [vmem:[#allocation12 + $0x18] sm:$0xff] }
 0xcec   :  { %v745_v43 = vpop.permute.xlu1 %744 }
 0xced   :  { %v747_v44 = vadd.f32 %v745_v43, %v737_v42  ;;  %v5303_v42 = vld [vmem:[#allocation12 + $0x10] sm:$0xff] }
 0xcef   :  { %4582 = vtanh.f32 %v747_v44 }
 0xcfc   :  { %v4583_v45 = vpop.eup %4582 }
 0xcfd   :  { %750 = vrot.lane.b32.xlu0 %v4583_v45, %s5015_s19 }
 0xd6f   :  { %v751_v46 = vpop.permute.xlu0 %750 }
 0xd70   :  { %v753_v47 = vmul.f32 %v4581_v39, %v751_v46  ;;  %v1070_v39 = vld [vmem:[#allocation11 + $0x8] sm:$0xff]  ;;  %v5312_v46 = vld [vmem:[#allocation12] sm:$0xff] }
 0xd72   :  { %755 = vrot.lane.b32.xlu1 %v753_v47, %s5016_s3 }
 0xde4   :  { %v756_v48 = vpop.permute.xlu1 %755 }
 0xde5   :  { %758 = vst.msk [vmem:[#allocation4 + $0x4] sm:$0x1] %vm345_vm2, %v756_v48  ;;  %4385 = vmatmul.mubr.msk.f32.vlgmr.msra.gmra.mxu1 %vm242_vm3, %v756_v48 }
 0xde6   :  { %4399 = vmatpush3.msra.mxu1 %v5148_v4  ;;  %4406 = vmatprep.mubr.msk.f32.mxu1 %vm5014_vm0, %v5013_v0 }
 0xde7   :  { %4400 = vmatprep.subr.mxu1 %v5013_v0 }
 0xde8   :  { %4401 = vmatpush3.msra.mxu1 %v5150_v5 }
 0xde9   :  { %4402 = vmatprep.subr.mxu1 %v5013_v0 }
 0xdea   :  { %4403 = vmatpush3.msra.mxu1 %v5155_v7 }
 0xdeb   :  { %4404 = vmatprep.subr.mxu1 %v5013_v0 }
 0xdec   :  { %4405 = vmatpush3.msra.mxu1 %v5160_v9 }
 0xded   :  { %4420 = vmatprep.subr.mxu1 %v5013_v0 }
 0xea5   :  { %v828_v50 = vpop.f32.mrf.mxu1 }
 0xea6   :  { %v832_v4 = vadd.f32 %v828_v50, %v759_v49 }
 0xea7   :  { %v4386_v51 = vpop.f32.mrf.mxu1 }
 0xea8   :  { %4584 = vtanh.f32 %v832_v4  ;;  %v4135_v53 = vmul.f32 -1.442695, %v832_v4  ;;  %v4140_v4 = vld [vmem:[%s6010_s6] ss:$0 sm:$0xff] }
 0xeaa   :  { %4586 = vpow2.f32 %v4135_v53 }
 0xeb5   :  { %v4585_v52 = vpop.eup %4584 }
 0xeb6   :  { %842 = vrot.lane.b32.xlu0 %v4585_v52, %s5015_s19 }
 0xeb7   :  { %v4587_v5 = vpop.eup %4586 }
 0xeb8   :  { %v836_v54 = vadd.f32 1.0, %v4587_v5 }
 0xeba   :  { %4588 = vrcp.f32 %v836_v54 }
 0xec7   :  { %v4589_v7 = vpop.eup %4588 }
 0xec8   :  { %v840_v9 = vmul.f32 %v4589_v7, %v747_v44  ;;  %v5308_v44 = vld [vmem:[#allocation12 + $0x8] sm:$0xff] }
 0xf28   :  { %v843_v55 = vpop.permute.xlu0 %842 }
 0xf29   :  { %v845_v56 = vmul.f32 %v4589_v7, %v843_v55 }
 0xf2b   :  { %847 = vrot.lane.b32.xlu1 %v845_v56, %s5016_s3 }
 0xf9d   :  { %v848_v57 = vpop.permute.xlu1 %847 }
 0xf9e   :  { %v850_v58 = vadd.f32 %v848_v57, %v840_v9 }
 0xfa0   :  { %4590 = vtanh.f32 %v850_v58 }
 0xfad   :  { %v4591_v59 = vpop.eup %4590 }
 0xfae   :  { %853 = vrot.lane.b32.xlu0 %v4591_v59, %s5015_s19 }
0x1020   :  { %v854_v60 = vpop.permute.xlu0 %853 }
0x1021   :  { %v856_v61 = vmul.f32 %v4589_v7, %v854_v60 }
0x1023   :  { %858 = vrot.lane.b32.xlu1 %v856_v61, %s5016_s3 }
0x1095   :  { %v859_v62 = vpop.permute.xlu1 %858 }
0x1096   :  { %861 = vst.msk [vmem:[#allocation4 + $0x5] sm:$0x1] %vm345_vm2, %v859_v62  ;;  %4396 = vmatmul.mubr.msk.f32.vlgmr.msra.gmra.mxu0 %vm242_vm3, %v859_v62 }
0x1097   :  { %4417 = vmatprep.mubr.msk.f32.mxu0 %vm5014_vm0, %v5013_v0  ;;  %4410 = vmatpush3.msra.mxu0 %v1072_v37 }
0x1098   :  { %4411 = vmatprep.subr.mxu0 %v5013_v0 }
0x1099   :  { %4412 = vmatpush3.msra.mxu0 %v1071_v38 }
0x109a   :  { %4413 = vmatprep.subr.mxu0 %v5013_v0 }
0x109b   :  { %4414 = vmatpush3.msra.mxu0 %v1070_v39 }
0x109c   :  { %4415 = vmatprep.subr.mxu0 %v5013_v0 }
0x109d   :  { %4416 = vmatpush3.msra.mxu0 %v1069_v40 }
0x109e   :  { %4431 = vmatprep.subr.mxu0 %v5013_v0 }
0x1156   :  { %v931_v1 = vpop.f32.mrf.mxu0 }
0x1157   :  { %v935_v2 = vadd.f32 %v931_v1, %v862_v63 }
0x1158   :  { %v4397_v3 = vpop.f32.mrf.mxu0 }
0x1159   :  { %4592 = vtanh.f32 %v935_v2  ;;  %v4137_v8 = vmul.f32 -1.442695, %v935_v2 }
0x115b   :  { %4594 = vpow2.f32 %v4137_v8 }
0x1166   :  { %v4593_v6 = vpop.eup %4592 }
0x1167   :  { %945 = vrot.lane.b32.xlu0 %v4593_v6, %s5015_s19 }
0x1168   :  { %v4595_v10 = vpop.eup %4594 }
0x1169   :  { %v939_v11 = vadd.f32 1.0, %v4595_v10 }
0x116b   :  { %4596 = vrcp.f32 %v939_v11 }
0x1178   :  { %v4597_v12 = vpop.eup %4596 }
0x1179   :  { %v943_v15 = vmul.f32 %v4597_v12, %v850_v58 }
0x11d9   :  { %v946_v13 = vpop.permute.xlu0 %945 }
0x11da   :  { %v948_v14 = vmul.f32 %v4597_v12, %v946_v13 }
0x11dc   :  { %950 = vrot.lane.b32.xlu1 %v948_v14, %s5016_s3 }
0x124e   :  { %v951_v16 = vpop.permute.xlu1 %950 }
0x124f   :  { %v953_v17 = vadd.f32 %v951_v16, %v943_v15 }
0x1251   :  { %4598 = vtanh.f32 %v953_v17 }
0x125e   :  { %v4599_v18 = vpop.eup %4598 }
0x125f   :  { %956 = vrot.lane.b32.xlu0 %v4599_v18, %s5015_s19 }
0x12d1   :  { %v957_v19 = vpop.permute.xlu0 %956 }
0x12d2   :  { %v959_v20 = vmul.f32 %v4597_v12, %v957_v19 }
0x12d4   :  { %961 = vrot.lane.b32.xlu1 %v959_v20, %s5016_s3 }
0x1346   :  { %v962_v21 = vpop.permute.xlu1 %961 }
0x1347   :  { %964 = vst.msk [vmem:[#allocation4 + $0x6] sm:$0x1] %vm345_vm2, %v962_v21  ;;  %4407 = vmatmul.mubr.msk.f32.vlgmr.msra.gmra.mxu1 %vm242_vm3, %v962_v21 }
0x1348   :  { %4428 = vmatprep.mubr.msk.f32.mxu1 %vm5014_vm0, %v5013_v0  ;;  %4421 = vmatpush3.msra.mxu1 %v5301_v41 }
0x1349   :  { %4422 = vmatprep.subr.mxu1 %v5013_v0 }
0x134a   :  { %4423 = vmatpush3.msra.mxu1 %v5303_v42 }
0x134b   :  { %4424 = vmatprep.subr.mxu1 %v5013_v0 }
0x134c   :  { %4425 = vmatpush3.msra.mxu1 %v5308_v44 }
0x134d   :  { %4426 = vmatprep.subr.mxu1 %v5013_v0 }
0x134e   :  { %4427 = vmatpush3.msra.mxu1 %v5312_v46 }
0x134f   :  { %4429 = vmatmul.mubr.f32.vlgmr.msra.gmra.mxu1 %v5013_v0  ;;  %4442 = vmatprep.subr.mxu1 %v5013_v0 }
0x1350   :  { %4443 = vmatpush3.msra.mxu1 %v5301_v41  ;;  %4450 = vmatprep.mubr.msk.f32.mxu1 %vm5014_vm0, %v5013_v0 }
0x1351   :  { %4444 = vmatprep.subr.mxu1 %v5013_v0 }
0x1352   :  { %4445 = vmatpush3.msra.mxu1 %v5303_v42 }
0x1353   :  { %4446 = vmatprep.subr.mxu1 %v5013_v0 }
0x1354   :  { %4447 = vmatpush3.msra.mxu1 %v5308_v44 }
0x1355   :  { %4448 = vmatprep.subr.mxu1 %v5013_v0 }
0x1356   :  { %4449 = vmatpush3.msra.mxu1 %v5312_v46 }
0x1357   :  { %4464 = vmatprep.subr.mxu1 %v5013_v0 }
0x1407   :  { %v1034_v23 = vpop.f32.mrf.mxu1 }
0x1408   :  { %v1038_v24 = vadd.f32 %v1034_v23, %v965_v22 }
0x1409   :  { %v4408_v25 = vpop.f32.mrf.mxu1 }
0x140a   :  { %4600 = vtanh.f32 %v1038_v24  ;;  %v4139_v27 = vmul.f32 -1.442695, %v1038_v24 }
0x140c   :  { %4602 = vpow2.f32 %v4139_v27 }
0x140f   :  { %v1225_v49 = vpop.f32.mrf.mxu1 }
0x1411   :  { %v4430_v50 = vpop.f32.mrf.mxu1 }
0x1417   :  { %v4601_v26 = vpop.eup %4600 }
0x1418   :  { %1048 = vrot.lane.b32.xlu0 %v4601_v26, %s5015_s19 }
0x1419   :  { %v4603_v28 = vpop.eup %4602 }
0x141a   :  { %v1042_v29 = vadd.f32 1.0, %v4603_v28 }
0x141c   :  { %4604 = vrcp.f32 %v1042_v29 }
0x1429   :  { %v4605_v30 = vpop.eup %4604 }
0x142a   :  { %v1046_v33 = vmul.f32 %v4605_v30, %v953_v17 }
0x148a   :  { %v1049_v31 = vpop.permute.xlu0 %1048 }
0x148b   :  { %v1051_v32 = vmul.f32 %v4605_v30, %v1049_v31 }
0x148d   :  { %1053 = vrot.lane.b32.xlu1 %v1051_v32, %s5016_s3 }
0x14ff   :  { %v1054_v34 = vpop.permute.xlu1 %1053 }
0x1500   :  { %v1056_v35 = vadd.f32 %v1054_v34, %v1046_v33 }
0x1502   :  { %4606 = vtanh.f32 %v1056_v35 }
0x150f   :  { %v4607_v36 = vpop.eup %4606 }
0x1510   :  { %1059 = vrot.lane.b32.xlu0 %v4607_v36, %s5015_s19 }
0x1582   :  { %v1060_v43 = vpop.permute.xlu0 %1059 }
0x1583   :  { %v1062_v45 = vmul.f32 %v4605_v30, %v1060_v43 }
0x1585   :  { %1064 = vrot.lane.b32.xlu1 %v1062_v45, %s5016_s3 }
0x15f7   :  { %v1065_v47 = vpop.permute.xlu1 %1064 }
0x15f8   :  { %1067 = vst.msk [vmem:[#allocation4 + $0x7] sm:$0x1] %vm345_vm2, %v1065_v47 }
0x15ff   :  { %v1068_v48 = vld [vmem:[#allocation4] sm:$0xff] }
0x1600   :  { %4418 = vmatmul.mubr.msk.f32.vlgmr.msra.gmra.mxu0 %vm242_vm3, %v1068_v48 }
0x1601   :  { %4432 = vmatpush3.msra.mxu0 %v5301_v41  ;;  %4439 = vmatprep.mubr.msk.f32.mxu0 %vm5014_vm0, %v5013_v0 }
0x1602   :  { %4433 = vmatprep.subr.mxu0 %v5013_v0 }
0x1603   :  { %4434 = vmatpush3.msra.mxu0 %v5303_v42 }
0x1604   :  { %4435 = vmatprep.subr.mxu0 %v5013_v0 }
0x1605   :  { %4436 = vmatpush3.msra.mxu0 %v5308_v44 }
0x1606   :  { %4437 = vmatprep.subr.mxu0 %v5013_v0 }
0x1607   :  { %4438 = vmatpush3.msra.mxu0 %v5312_v46 }
0x1608   :  { %4453 = vmatprep.subr.mxu0 %v5013_v0 }
0x16c0   :  { %v1149_v51 = vpop.f32.mrf.mxu0 }
0x16c1   :  { %v1150_v52 = vadd.f32 %v4140_v4, %v1149_v51 }
0x16c2   :  { %v4419_v53 = vpop.f32.mrf.mxu0 }
0x16c3   :  { %1153 = vst [vmem:[#allocation2] sm:$0xff] %v1150_v52 }
0x16ca   :  { %v1158_v5 = vld [vmem:[#allocation2] sm:$0x1]  ;;  %v1259_v6 = vld [vmem:[#allocation2 + $0x1] sm:$0x1]  ;;  %v1362_v26 = vld [vmem:[#allocation2 + $0x2] sm:$0x1] }
0x16cb   :  { %v1229_v54 = vadd.f32 %v1225_v49, %v1158_v5  ;;  %v1465_v48 = vld [vmem:[#allocation2 + $0x3] sm:$0x1] }
0x16cd   :  { %4608 = vtanh.f32 %v1229_v54  ;;  %v4142_v55 = vmul.f32 -1.442695, %v1229_v54 }
0x16cf   :  { %4610 = vpow2.f32 %v4142_v55 }
0x16da   :  { %v4609_v7 = vpop.eup %4608 }
0x16db   :  { %1239 = vrot.lane.b32.xlu0 %v4609_v7, %s5015_s19 }
0x16dc   :  { %v4611_v56 = vpop.eup %4610 }
0x16dd   :  { %v1233_v9 = vadd.f32 1.0, %v4611_v56 }
0x16df   :  { %4612 = vrcp.f32 %v1233_v9 }
0x16ec   :  { %v4613_v57 = vpop.eup %4612 }
0x16ed   :  { %v1237_v60 = vmul.f32 0.0, %v4613_v57 }
0x174d   :  { %v1240_v58 = vpop.permute.xlu0 %1239 }
0x174e   :  { %v1242_v59 = vmul.f32 %v4613_v57, %v1240_v58 }
0x1750   :  { %1244 = vrot.lane.b32.xlu1 %v1242_v59, %s5016_s3 }
0x17c2   :  { %v1245_v61 = vpop.permute.xlu1 %1244 }
0x17c3   :  { %v1247_v62 = vadd.f32 %v1245_v61, %v1237_v60 }
0x17c5   :  { %4614 = vtanh.f32 %v1247_v62 }
0x17d2   :  { %v4615_v63 = vpop.eup %4614 }
0x17d3   :  { %1250 = vrot.lane.b32.xlu0 %v4615_v63, %s5015_s19 }
0x1845   :  { %v1251_v1 = vpop.permute.xlu0 %1250 }
0x1846   :  { %v1253_v2 = vmul.f32 %v4613_v57, %v1251_v1 }
0x1848   :  { %1255 = vrot.lane.b32.xlu1 %v1253_v2, %s5016_s3 }
0x18ba   :  { %v1256_v3 = vpop.permute.xlu1 %1255 }
0x18bb   :  { %1258 = vst.msk [vmem:[#allocation4] sm:$0x1] %vm345_vm2, %v1256_v3  ;;  %4440 = vmatmul.mubr.msk.f32.vlgmr.msra.gmra.mxu0 %vm242_vm3, %v1256_v3 }
0x18bc   :  { %4454 = vmatpush3.msra.mxu0 %v5301_v41  ;;  %4461 = vmatprep.mubr.msk.f32.mxu0 %vm5014_vm0, %v5013_v0 }
0x18bd   :  { %4455 = vmatprep.subr.mxu0 %v5013_v0 }
0x18be   :  { %4456 = vmatpush3.msra.mxu0 %v5303_v42 }
0x18bf   :  { %4457 = vmatprep.subr.mxu0 %v5013_v0 }
0x18c0   :  { %4458 = vmatpush3.msra.mxu0 %v5308_v44 }
0x18c1   :  { %4459 = vmatprep.subr.mxu0 %v5013_v0 }
0x18c2   :  { %4460 = vmatpush3.msra.mxu0 %v5312_v46 }
0x18c3   :  { %4475 = vmatprep.subr.mxu0 %v5013_v0 }
0x197b   :  { %v1328_v8 = vpop.f32.mrf.mxu0 }
0x197c   :  { %v1332_v10 = vadd.f32 %v1328_v8, %v1259_v6 }
0x197d   :  { %v4441_v11 = vpop.f32.mrf.mxu0 }
0x197e   :  { %4616 = vtanh.f32 %v1332_v10  ;;  %v4144_v13 = vmul.f32 -1.442695, %v1332_v10 }
0x1980   :  { %4618 = vpow2.f32 %v4144_v13 }
0x198b   :  { %v4617_v12 = vpop.eup %4616 }
0x198c   :  { %1342 = vrot.lane.b32.xlu0 %v4617_v12, %s5015_s19 }
0x198d   :  { %v4619_v14 = vpop.eup %4618 }
0x198e   :  { %v1336_v15 = vadd.f32 1.0, %v4619_v14 }
0x1990   :  { %4620 = vrcp.f32 %v1336_v15 }
0x199d   :  { %v4621_v16 = vpop.eup %4620 }
0x199e   :  { %v1340_v19 = vmul.f32 %v4621_v16, %v1247_v62  ;;  %v1568_v62 = vld [vmem:[#allocation2 + $0x4] sm:$0x1] }
0x19fe   :  { %v1343_v17 = vpop.permute.xlu0 %1342 }
0x19ff   :  { %v1345_v18 = vmul.f32 %v4621_v16, %v1343_v17 }
0x1a01   :  { %1347 = vrot.lane.b32.xlu1 %v1345_v18, %s5016_s3 }
0x1a73   :  { %v1348_v20 = vpop.permute.xlu1 %1347 }
0x1a74   :  { %v1350_v21 = vadd.f32 %v1348_v20, %v1340_v19 }
0x1a76   :  { %4622 = vtanh.f32 %v1350_v21 }
0x1a83   :  { %v4623_v22 = vpop.eup %4622 }
0x1a84   :  { %1353 = vrot.lane.b32.xlu0 %v4623_v22, %s5015_s19 }
0x1af6   :  { %v1354_v23 = vpop.permute.xlu0 %1353 }
0x1af7   :  { %v1356_v24 = vmul.f32 %v4621_v16, %v1354_v23 }
0x1af9   :  { %1358 = vrot.lane.b32.xlu1 %v1356_v24, %s5016_s3 }
0x1b6b   :  { %v1359_v25 = vpop.permute.xlu1 %1358 }
0x1b6c   :  { %1361 = vst.msk [vmem:[#allocation4 + $0x1] sm:$0x1] %vm345_vm2, %v1359_v25  ;;  %4451 = vmatmul.mubr.msk.f32.vlgmr.msra.gmra.mxu1 %vm242_vm3, %v1359_v25 }
0x1b6d   :  { %4465 = vmatpush3.msra.mxu1 %v5301_v41  ;;  %4472 = vmatprep.mubr.msk.f32.mxu1 %vm5014_vm0, %v5013_v0 }
0x1b6e   :  { %4466 = vmatprep.subr.mxu1 %v5013_v0 }
0x1b6f   :  { %4467 = vmatpush3.msra.mxu1 %v5303_v42 }
0x1b70   :  { %4468 = vmatprep.subr.mxu1 %v5013_v0 }
0x1b71   :  { %4469 = vmatpush3.msra.mxu1 %v5308_v44 }
0x1b72   :  { %4470 = vmatprep.subr.mxu1 %v5013_v0 }
0x1b73   :  { %4471 = vmatpush3.msra.mxu1 %v5312_v46 }
0x1b74   :  { %4486 = vmatprep.subr.mxu1 %v5013_v0 }
0x1c2c   :  { %v1431_v27 = vpop.f32.mrf.mxu1 }
0x1c2d   :  { %v1435_v28 = vadd.f32 %v1431_v27, %v1362_v26 }
0x1c2e   :  { %v4452_v29 = vpop.f32.mrf.mxu1 }
0x1c2f   :  { %4624 = vtanh.f32 %v1435_v28  ;;  %v4146_v31 = vmul.f32 -1.442695, %v1435_v28 }
0x1c31   :  { %4626 = vpow2.f32 %v4146_v31 }
0x1c3c   :  { %v4625_v30 = vpop.eup %4624 }
0x1c3d   :  { %1445 = vrot.lane.b32.xlu0 %v4625_v30, %s5015_s19 }
0x1c3e   :  { %v4627_v32 = vpop.eup %4626 }
0x1c3f   :  { %v1439_v33 = vadd.f32 1.0, %v4627_v32 }
0x1c41   :  { %4628 = vrcp.f32 %v1439_v33 }
0x1c4e   :  { %v4629_v34 = vpop.eup %4628 }
0x1c4f   :  { %v1443_v37 = vmul.f32 %v4629_v34, %v1350_v21  ;;  %v1671_v21 = vld [vmem:[#allocation2 + $0x5] sm:$0x1] }
0x1caf   :  { %v1446_v35 = vpop.permute.xlu0 %1445 }
0x1cb0   :  { %v1448_v36 = vmul.f32 %v4629_v34, %v1446_v35  ;;  %v1774_v35 = vld [vmem:[#allocation2 + $0x6] sm:$0x1] }
0x1cb2   :  { %1450 = vrot.lane.b32.xlu1 %v1448_v36, %s5016_s3 }
0x1d24   :  { %v1451_v38 = vpop.permute.xlu1 %1450 }
0x1d25   :  { %v1453_v39 = vadd.f32 %v1451_v38, %v1443_v37 }
0x1d27   :  { %4630 = vtanh.f32 %v1453_v39 }
0x1d34   :  { %v4631_v40 = vpop.eup %4630 }
0x1d35   :  { %1456 = vrot.lane.b32.xlu0 %v4631_v40, %s5015_s19 }
0x1da7   :  { %v1457_v43 = vpop.permute.xlu0 %1456 }
0x1da8   :  { %v1459_v45 = vmul.f32 %v4629_v34, %v1457_v43 }
0x1daa   :  { %1461 = vrot.lane.b32.xlu1 %v1459_v45, %s5016_s3 }
0x1e1c   :  { %v1462_v47 = vpop.permute.xlu1 %1461 }
0x1e1d   :  { %1464 = vst.msk [vmem:[#allocation4 + $0x2] sm:$0x1] %vm345_vm2, %v1462_v47  ;;  %4462 = vmatmul.mubr.msk.f32.vlgmr.msra.gmra.mxu0 %vm242_vm3, %v1462_v47 }
0x1e1e   :  { %4476 = vmatpush3.msra.mxu0 %v5301_v41  ;;  %4483 = vmatprep.mubr.msk.f32.mxu0 %vm5014_vm0, %v5013_v0 }
0x1e1f   :  { %4477 = vmatprep.subr.mxu0 %v5013_v0 }
0x1e20   :  { %4478 = vmatpush3.msra.mxu0 %v5303_v42 }
0x1e21   :  { %4479 = vmatprep.subr.mxu0 %v5013_v0 }
0x1e22   :  { %4480 = vmatpush3.msra.mxu0 %v5308_v44 }
0x1e23   :  { %4481 = vmatprep.subr.mxu0 %v5013_v0 }
0x1e24   :  { %4482 = vmatpush3.msra.mxu0 %v5312_v46 }
0x1e25   :  { %4497 = vmatprep.subr.mxu0 %v5013_v0 }
0x1edd   :  { %v1534_v49 = vpop.f32.mrf.mxu0 }
0x1ede   :  { %v1538_v50 = vadd.f32 %v1534_v49, %v1465_v48 }
0x1edf   :  { %v4463_v4 = vpop.f32.mrf.mxu0 }
0x1ee0   :  { %4632 = vtanh.f32 %v1538_v50  ;;  %v4148_v52 = vmul.f32 -1.442695, %v1538_v50 }
0x1ee2   :  { %4634 = vpow2.f32 %v4148_v52 }
0x1eed   :  { %v4633_v51 = vpop.eup %4632 }
0x1eee   :  { %1548 = vrot.lane.b32.xlu0 %v4633_v51, %s5015_s19 }
0x1eef   :  { %v4635_v53 = vpop.eup %4634 }
0x1ef0   :  { %v1542_v5 = vadd.f32 1.0, %v4635_v53 }
0x1ef2   :  { %4636 = vrcp.f32 %v1542_v5 }
0x1eff   :  { %v4637_v54 = vpop.eup %4636 }
0x1f00   :  { %v1546_v56 = vmul.f32 %v4637_v54, %v1453_v39 }
0x1f60   :  { %v1549_v7 = vpop.permute.xlu0 %1548 }
0x1f61   :  { %v1551_v55 = vmul.f32 %v4637_v54, %v1549_v7  ;;  %v1877_v7 = vld [vmem:[#allocation2 + $0x7] sm:$0x1] }
0x1f63   :  { %1553 = vrot.lane.b32.xlu1 %v1551_v55, %s5016_s3 }
0x1fd5   :  { %v1554_v9 = vpop.permute.xlu1 %1553 }
0x1fd6   :  { %v1556_v57 = vadd.f32 %v1554_v9, %v1546_v56 }
0x1fd8   :  { %4638 = vtanh.f32 %v1556_v57 }
0x1fe5   :  { %v4639_v58 = vpop.eup %4638 }
0x1fe6   :  { %1559 = vrot.lane.b32.xlu0 %v4639_v58, %s5015_s19 }
0x2058   :  { %v1560_v59 = vpop.permute.xlu0 %1559 }
0x2059   :  { %v1562_v60 = vmul.f32 %v4637_v54, %v1560_v59 }
0x205b   :  { %1564 = vrot.lane.b32.xlu1 %v1562_v60, %s5016_s3 }
0x20cd   :  { %v1565_v61 = vpop.permute.xlu1 %1564 }
0x20ce   :  { %1567 = vst.msk [vmem:[#allocation4 + $0x3] sm:$0x1] %vm345_vm2, %v1565_v61  ;;  %4473 = vmatmul.mubr.msk.f32.vlgmr.msra.gmra.mxu1 %vm242_vm3, %v1565_v61 }
0x20cf   :  { %4487 = vmatpush3.msra.mxu1 %v5301_v41  ;;  %4494 = vmatprep.mubr.msk.f32.mxu1 %vm5014_vm0, %v5013_v0 }
0x20d0   :  { %4488 = vmatprep.subr.mxu1 %v5013_v0 }
0x20d1   :  { %4489 = vmatpush3.msra.mxu1 %v5303_v42 }
0x20d2   :  { %4490 = vmatprep.subr.mxu1 %v5013_v0 }
0x20d3   :  { %4491 = vmatpush3.msra.mxu1 %v5308_v44 }
0x20d4   :  { %4492 = vmatprep.subr.mxu1 %v5013_v0 }
0x20d5   :  { %4493 = vmatpush3.msra.mxu1 %v5312_v46 }
0x218e   :  { %v1637_v63 = vpop.f32.mrf.mxu1 }
0x218f   :  { %v1641_v1 = vadd.f32 %v1637_v63, %v1568_v62 }
0x2190   :  { %v4474_v2 = vpop.f32.mrf.mxu1 }
0x2191   :  { %4640 = vtanh.f32 %v1641_v1  ;;  %v4150_v6 = vmul.f32 -1.442695, %v1641_v1 }
0x2193   :  { %4642 = vpow2.f32 %v4150_v6  ;;  %v5446_v6 = vld [vmem:[%s6012_s8 + $0x78] sm:$0xff] }
0x219e   :  { %v4641_v3 = vpop.eup %4640 }
0x219f   :  { %1651 = vrot.lane.b32.xlu0 %v4641_v3, %s5015_s19 }
0x21a0   :  { %v4643_v8 = vpop.eup %4642 }
0x21a1   :  { %v1645_v10 = vadd.f32 1.0, %v4643_v8  ;;  %v5451_v8 = vld [vmem:[%s6012_s8 + $0x70] sm:$0xff] }
0x21a3   :  { %4644 = vrcp.f32 %v1645_v10  ;;  %v5456_v10 = vld [vmem:[%s6012_s8 + $0x68] sm:$0xff] }
0x21b0   :  { %v4645_v11 = vpop.eup %4644 }
0x21b1   :  { %v1649_v14 = vmul.f32 %v4645_v11, %v1556_v57 }
0x2211   :  { %v1652_v12 = vpop.permute.xlu0 %1651 }
0x2212   :  { %v1654_v13 = vmul.f32 %v4645_v11, %v1652_v12  ;;  %v5468_v12 = vld [vmem:[%s6012_s8 + $0x58] sm:$0xff] }
0x2214   :  { %1656 = vrot.lane.b32.xlu1 %v1654_v13, %s5016_s3  ;;  %v1987_v13 = vld [vmem:[#allocation14 + $0x38] sm:$0xff] }
0x2215   :  { %2026 = vmatprep.subr.mxu1 %v1987_v13 }
0x2286   :  { %v1657_v15 = vpop.permute.xlu1 %1656 }
0x2287   :  { %v1659_v16 = vadd.f32 %v1657_v15, %v1649_v14  ;;  %v5474_v14 = vld [vmem:[%s6012_s8 + $0x50] sm:$0xff]  ;;  %v1986_v15 = vld [vmem:[#allocation14 + $0x30] sm:$0xff] }
0x2289   :  { %4646 = vtanh.f32 %v1659_v16 }
0x2296   :  { %v4647_v17 = vpop.eup %4646 }
0x2297   :  { %1662 = vrot.lane.b32.xlu0 %v4647_v17, %s5015_s19  ;;  %v1985_v17 = vld [vmem:[#allocation14 + $0x28] sm:$0xff] }
0x2309   :  { %v1663_v18 = vpop.permute.xlu0 %1662 }
0x230a   :  { %v1665_v19 = vmul.f32 %v4645_v11, %v1663_v18  ;;  %v5462_v11 = vld [vmem:[%s6012_s8 + $0x60] sm:$0xff]  ;;  %v1984_v18 = vld [vmem:[#allocation14 + $0x20] sm:$0xff] }
0x230c   :  { %1667 = vrot.lane.b32.xlu1 %v1665_v19, %s5016_s3  ;;  %v5486_v19 = vld [vmem:[%s6012_s8 + $0x40] sm:$0xff] }
0x237e   :  { %v1668_v20 = vpop.permute.xlu1 %1667 }
0x237f   :  { %1670 = vst.msk [vmem:[#allocation4 + $0x4] sm:$0x1] %vm345_vm2, %v1668_v20  ;;  %4484 = vmatmul.mubr.msk.f32.vlgmr.msra.gmra.mxu0 %vm242_vm3, %v1668_v20  ;;  %v1983_v20 = vld [vmem:[#allocation14 + $0x18] sm:$0xff] }
0x2380   :  { %4498 = vmatpush3.msra.mxu0 %v5301_v41  ;;  %4505 = vmatprep.mubr.msk.f32.mxu0 %vm5014_vm0, %v5013_v0 }
0x2381   :  { %4499 = vmatprep.subr.mxu0 %v5013_v0 }
0x2382   :  { %4500 = vmatpush3.msra.mxu0 %v5303_v42 }
0x2383   :  { %4501 = vmatprep.subr.mxu0 %v5013_v0 }
0x2384   :  { %4502 = vmatpush3.msra.mxu0 %v5308_v44 }
0x2385   :  { %4503 = vmatprep.subr.mxu0 %v5013_v0 }
0x2386   :  { %4504 = vmatpush3.msra.mxu0 %v5312_v46 }
0x2387   :  { %2107 = vmatprep.subr.mxu0 %v5446_v6 }
0x243f   :  { %v1740_v22 = vpop.f32.mrf.mxu0 }
0x2440   :  { %v1744_v23 = vadd.f32 %v1740_v22, %v1671_v21  ;;  %v5492_v21 = vld [vmem:[%s6012_s8 + $0x38] sm:$0xff] }
0x2441   :  { %v4485_v24 = vpop.f32.mrf.mxu0  ;;  %v1982_v22 = vld [vmem:[#allocation14 + $0x10] sm:$0xff] }
0x2442   :  { %4648 = vtanh.f32 %v1744_v23  ;;  %v4152_v25 = vmul.f32 -1.442695, %v1744_v23  ;;  %v1981_v23 = vld [vmem:[#allocation14 + $0x8] sm:$0xff] }
0x2443   :  { %v5498_v24 = vld [vmem:[%s6012_s8 + $0x30] sm:$0xff] }
0x2444   :  { %4650 = vpow2.f32 %v4152_v25  ;;  %v5504_v25 = vld [vmem:[%s6012_s8 + $0x28] sm:$0xff] }
0x244f   :  { %v4649_v41 = vpop.eup %4648 }
0x2450   :  { %1754 = vrot.lane.b32.xlu0 %v4649_v41, %s5015_s19  ;;  %v1980_v41 = vld [vmem:[#allocation14] sm:$0xff] }
0x2451   :  { %v4651_v26 = vpop.eup %4650 }
0x2452   :  { %v1748_v42 = vadd.f32 1.0, %v4651_v26  ;;  %v5510_v26 = vld [vmem:[%s6012_s8 + $0x20] sm:$0xff] }
0x2454   :  { %4652 = vrcp.f32 %v1748_v42 }
0x2461   :  { %v4653_v27 = vpop.eup %4652 }
0x2462   :  { %v1752_v29 = vmul.f32 %v4653_v27, %v1659_v16  ;;  %v5480_v16 = vld [vmem:[%s6012_s8 + $0x48] sm:$0xff] }
0x24c2   :  { %v1755_v28 = vpop.permute.xlu0 %1754 }
0x24c3   :  { %v1757_v44 = vmul.f32 %v4653_v27, %v1755_v28  ;;  %v5523_v28 = vld [vmem:[%s6012_s8 + $0x10] sm:$0xff] }
0x24c5   :  { %1759 = vrot.lane.b32.xlu1 %v1757_v44, %s5016_s3  ;;  %v5529_v44 = vld [vmem:[%s6012_s8 + $0x8] sm:$0xff] }
0x2537   :  { %v1760_v46 = vpop.permute.xlu1 %1759 }
0x2538   :  { %v1762_v30 = vadd.f32 %v1760_v46, %v1752_v29  ;;  %v5536_v29 = vld [vmem:[%s6012_s8] sm:$0xff] }
0x253a   :  { %4654 = vtanh.f32 %v1762_v30 }
0x2547   :  { %v4655_v31 = vpop.eup %4654 }
0x2548   :  { %1765 = vrot.lane.b32.xlu0 %v4655_v31, %s5015_s19 }
0x25ba   :  { %v1766_v32 = vpop.permute.xlu0 %1765 }
0x25bb   :  { %v1768_v33 = vmul.f32 %v4653_v27, %v1766_v32  ;;  %v5516_v27 = vld [vmem:[%s6012_s8 + $0x18] sm:$0xff]  ;;  %v1990_v32 = vlaneseq }
0x25bd   :  { %1770 = vrot.lane.b32.xlu1 %v1768_v33, %s5016_s3  ;;  %v5581_v33 = vshrl.u32 %v1990_v32, 7 }
0x262f   :  { %v1771_v34 = vpop.permute.xlu1 %1770 }
0x2630   :  { %1773 = vst.msk [vmem:[#allocation4 + $0x5] sm:$0x1] %vm345_vm2, %v1771_v34  ;;  %4495 = vmatmul.mubr.msk.f32.vlgmr.msra.gmra.mxu1 %vm242_vm3, %v1771_v34  ;;  %v1992_v34 = vsub.s32 0, %v5581_v33 }
0x2631   :  { %2066 = vmatprep.mubr.f32.mxu1 %v5013_v0  ;;  %2027 = vmatpush1.msra.mxu1 %v1986_v15 }
0x2632   :  { %2028 = vmatprep.subr.mxu1 %v1985_v17 }
0x2633   :  { %2029 = vmatpush1.msra.mxu1 %v1984_v18 }
0x2634   :  { %2030 = vmatprep.subr.mxu1 %v1983_v20 }
0x2635   :  { %2031 = vmatpush1.msra.mxu1 %v1982_v22 }
0x2636   :  { %2032 = vmatprep.subr.mxu1 %v1981_v23 }
0x2637   :  { %2033 = vmatpush1.msra.mxu1 %v1980_v41 }
0x2638   :  { %2210 = vmatprep.subr.mxu1 %v5446_v6 }
0x26f0   :  { %v1843_v36 = vpop.f32.mrf.mxu1 }
0x26f1   :  { %v1847_v37 = vadd.f32 %v1843_v36, %v1774_v35  ;;  %v1988_v35 = vld [vmem:[%s6013_s9] sm:$0x3] }
0x26f2   :  { %v4496_v38 = vpop.f32.mrf.mxu1  ;;  %v1993_v36 = vrot.slane %v1988_v35, %v1992_v34 }
0x26f3   :  { %4656 = vtanh.f32 %v1847_v37  ;;  %v4154_v40 = vmul.f32 -1.442695, %v1847_v37 }
0x26f5   :  { %4658 = vpow2.f32 %v4154_v40 }
0x2700   :  { %v4657_v39 = vpop.eup %4656 }
0x2701   :  { %1857 = vrot.lane.b32.xlu0 %v4657_v39, %s5015_s19 }
0x2702   :  { %v4659_v43 = vpop.eup %4658 }
0x2703   :  { %v1851_v45 = vadd.f32 1.0, %v4659_v43 }
0x2705   :  { %4660 = vrcp.f32 %v1851_v45  ;;  %v1996_v45 = vsub.s32 1, %v5581_v33 }
0x2712   :  { %v4661_v47 = vpop.eup %4660 }
0x2713   :  { %v1855_v50 = vmul.f32 %v4661_v47, %v1762_v30 }
0x2773   :  { %v1858_v48 = vpop.permute.xlu0 %1857 }
0x2774   :  { %v1860_v49 = vmul.f32 %v4661_v47, %v1858_v48 }
0x2776   :  { %1862 = vrot.lane.b32.xlu1 %v1860_v49, %s5016_s3 }
0x27e8   :  { %v1863_v4 = vpop.permute.xlu1 %1862 }
0x27e9   :  { %v1865_v51 = vadd.f32 %v1863_v4, %v1855_v50 }
0x27eb   :  { %4662 = vtanh.f32 %v1865_v51 }
0x27f8   :  { %v4663_v52 = vpop.eup %4662 }
0x27f9   :  { %1868 = vrot.lane.b32.xlu0 %v4663_v52, %s5015_s19 }
0x286b   :  { %v1869_v53 = vpop.permute.xlu0 %1868 }
0x286c   :  { %v1871_v5 = vmul.f32 %v4661_v47, %v1869_v53  ;;  %v1997_v47 = vrot.slane %v1988_v35, %v1996_v45 }
0x286e   :  { %1873 = vrot.lane.b32.xlu1 %v1871_v5, %s5016_s3 }
0x28e0   :  { %v1874_v54 = vpop.permute.xlu1 %1873 }
0x28e1   :  { %1876 = vst.msk [vmem:[#allocation4 + $0x6] sm:$0x1] %vm345_vm2, %v1874_v54  ;;  %4506 = vmatmul.mubr.msk.f32.vlgmr.msra.gmra.mxu0 %vm242_vm3, %v1874_v54 }
0x28e2   :  { %2155 = vmatprep.mubr.f32.mxu0 %v5013_v0  ;;  %2108 = vmatpush1.msra.mxu0 %v5451_v8 }
0x28e3   :  { %2109 = vmatprep.subr.mxu0 %v5456_v10 }
0x28e4   :  { %2110 = vmatpush1.msra.mxu0 %v5462_v11 }
0x28e5   :  { %2111 = vmatprep.subr.mxu0 %v5468_v12 }
0x28e6   :  { %2112 = vmatpush1.msra.mxu0 %v5474_v14 }
0x28e7   :  { %2113 = vmatprep.subr.mxu0 %v5480_v16 }
0x28e8   :  { %2114 = vmatpush1.msra.mxu0 %v5486_v19 }
0x28e9   :  { %2115 = vmatprep.subr.mxu0 %v5492_v21 }
0x28ea   :  { %2116 = vmatpush1.msra.mxu0 %v5498_v24 }
0x28eb   :  { %2117 = vmatprep.subr.mxu0 %v5504_v25 }
0x28ec   :  { %2118 = vmatpush1.msra.mxu0 %v5510_v26 }
0x28ed   :  { %2119 = vmatprep.subr.mxu0 %v5516_v27 }
0x28ee   :  { %2120 = vmatpush1.msra.mxu0 %v5523_v28 }
0x28ef   :  { %2121 = vmatprep.subr.mxu0 %v5529_v44 }
0x28f0   :  { %2122 = vmatpush1.msra.mxu0 %v5536_v29 }
0x28f1   :  { %2156 = vmatmul.mubr.f32.vlgmr.msra.gmra.mxu0 %v5013_v0  ;;  %2312 = vmatprep.subr.mxu0 %v5446_v6 }
0x28f2   :  { %2313 = vmatpush1.msra.mxu0 %v5451_v8  ;;  %2360 = vmatprep.mubr.f32.mxu0 %v5013_v0 }
0x28f3   :  { %2314 = vmatprep.subr.mxu0 %v5456_v10 }
0x28f4   :  { %2315 = vmatpush1.msra.mxu0 %v5462_v11 }
0x28f5   :  { %2316 = vmatprep.subr.mxu0 %v5468_v12 }
0x28f6   :  { %2317 = vmatpush1.msra.mxu0 %v5474_v14 }
0x28f7   :  { %2318 = vmatprep.subr.mxu0 %v5480_v16 }
0x28f8   :  { %2319 = vmatpush1.msra.mxu0 %v5486_v19 }
0x28f9   :  { %2320 = vmatprep.subr.mxu0 %v5492_v21 }
0x28fa   :  { %2321 = vmatpush1.msra.mxu0 %v5498_v24 }
0x28fb   :  { %2322 = vmatprep.subr.mxu0 %v5504_v25 }
0x28fc   :  { %2323 = vmatpush1.msra.mxu0 %v5510_v26 }
0x28fd   :  { %2324 = vmatprep.subr.mxu0 %v5516_v27 }
0x28fe   :  { %2325 = vmatpush1.msra.mxu0 %v5523_v28 }
0x28ff   :  { %2326 = vmatprep.subr.mxu0 %v5529_v44 }
0x2900   :  { %2327 = vmatpush1.msra.mxu0 %v5536_v29 }
0x2901   :  { %2516 = vmatprep.subr.mxu0 %v5446_v6 }
0x29a1   :  { %v1946_v55 = vpop.f32.mrf.mxu0 }
0x29a2   :  { %v1950_v56 = vadd.f32 %v1946_v55, %v1877_v7 }
0x29a3   :  { %v4507_v9 = vpop.f32.mrf.mxu0 }
0x29a4   :  { %4664 = vtanh.f32 %v1950_v56  ;;  %v4156_v58 = vmul.f32 -1.442695, %v1950_v56 }
0x29a6   :  { %4666 = vpow2.f32 %v4156_v58 }
0x29b1   :  { %v4665_v57 = vpop.eup %4664  ;;  %v2157_v39 = vpop.f32.mrf.mxu0 }
0x29b2   :  { %1960 = vrot.lane.b32.xlu0 %v4665_v57, %s5015_s19 }
0x29b3   :  { %v4667_v59 = vpop.eup %4666  ;;  %v2159_v50 = vpop.f32.mrf.mxu0 }
0x29b4   :  { %v1954_v60 = vadd.f32 1.0, %v4667_v59 }
0x29b6   :  { %4668 = vrcp.f32 %v1954_v60 }
0x29c3   :  { %v5438_v61 = vpop.eup %4668 }
0x29c4   :  { %v1958_v1 = vmul.f32 %v5438_v61, %v1865_v51 }
0x2a24   :  { %v1961_v62 = vpop.permute.xlu0 %1960 }
0x2a25   :  { %v1963_v63 = vmul.f32 %v5438_v61, %v1961_v62 }
0x2a27   :  { %1965 = vrot.lane.b32.xlu1 %v1963_v63, %s5016_s3 }
0x2a99   :  { %v1966_v2 = vpop.permute.xlu1 %1965 }
0x2a9a   :  { %v1968_v3 = vadd.f32 %v1966_v2, %v1958_v1 }
0x2a9c   :  { %4670 = vtanh.f32 %v1968_v3 }
0x2aa9   :  { %v4671_v42 = vpop.eup %4670 }
0x2aaa   :  { %1971 = vrot.lane.b32.xlu0 %v4671_v42, %s5015_s19 }
0x2b1c   :  { %v1972_v46 = vpop.permute.xlu0 %1971 }
0x2b1d   :  { %v1974_v30 = vmul.f32 %v5438_v61, %v1972_v46 }
0x2b1f   :  { %1976 = vrot.lane.b32.xlu1 %v1974_v30, %s5016_s3 }
0x2b91   :  { %v1977_v31 = vpop.permute.xlu1 %1976 }
0x2b92   :  { %1979 = vst.msk [vmem:[#allocation4 + $0x7] sm:$0x1] %vm345_vm2, %v1977_v31  ;;  %4157 = vmatmul.mubr.msk.f32.vlgmr.msra.gmra.mxu1 %vm242_vm3, %v1977_v31 }
0x2b93   :  { %2211 = vmatpush1.msra.mxu1 %v5451_v8  ;;  %2258 = vmatprep.mubr.f32.mxu1 %v5013_v0 }
0x2b94   :  { %2212 = vmatprep.subr.mxu1 %v5456_v10 }
0x2b95   :  { %2213 = vmatpush1.msra.mxu1 %v5462_v11 }
0x2b96   :  { %2214 = vmatprep.subr.mxu1 %v5468_v12 }
0x2b97   :  { %2215 = vmatpush1.msra.mxu1 %v5474_v14 }
0x2b98   :  { %2216 = vmatprep.subr.mxu1 %v5480_v16 }
0x2b99   :  { %2217 = vmatpush1.msra.mxu1 %v5486_v19 }
0x2b9a   :  { %2218 = vmatprep.subr.mxu1 %v5492_v21 }
0x2b9b   :  { %2219 = vmatpush1.msra.mxu1 %v5498_v24 }
0x2b9c   :  { %2220 = vmatprep.subr.mxu1 %v5504_v25 }
0x2b9d   :  { %2221 = vmatpush1.msra.mxu1 %v5510_v26 }
0x2b9e   :  { %2222 = vmatprep.subr.mxu1 %v5516_v27 }
0x2b9f   :  { %2223 = vmatpush1.msra.mxu1 %v5523_v28 }
0x2ba0   :  { %2224 = vmatprep.subr.mxu1 %v5529_v44 }
0x2ba1   :  { %2225 = vmatpush1.msra.mxu1 %v5536_v29 }
0x2ba2   :  { %2414 = vmatprep.subr.mxu1 %v5446_v6 }
0x2c52   :  { %v2068_v37 = vpop.f32.mrf.mxu1 }
0x2c53   :  { %v5589_v38 = vadd.f32 %v2068_v37, %v1993_v36 }
0x2c54   :  { %v2070_v48 = vpop.f32.mrf.mxu1 }
0x2c55   :  { %v2162_v40 = vadd.f32 %v2157_v39, %v5589_v38  ;;  %v5595_v49 = vadd.f32 %v2070_v48, %v1997_v47 }
0x2c57   :  { %v4158_v43 = vmul.f32 -1.442695, %v2162_v40  ;;  %v2163_v4 = vadd.f32 %v2159_v50, %v5595_v49 }
0x2c59   :  { %4672 = vpow2.f32 %v4158_v43  ;;  %v4159_v7 = vmul.f32 -1.442695, %v2163_v4 }
0x2c5a   :  { %4674 = vtanh.f32 %v2163_v4 }
0x2c66   :  { %v4673_v51 = vpop.eup %4672 }
0x2c67   :  { %v2170_v52 = vadd.f32 1.0, %v4673_v51  ;;  %v4675_v53 = vpop.eup %4674 }
0x2c69   :  { %4676 = vrcp.f32 %v2170_v52 }
0x2c6a   :  { %4678 = vpow2.f32 %v4159_v7 }
0x2c76   :  { %v4677_v5 = vpop.eup %4676 }
0x2c77   :  { %v2178_v54 = vmul.f32 %v4677_v5, %v4675_v53  ;;  %v4679_v55 = vpop.eup %4678  ;;  %v2177_v9 = vmul.f32 0.0, %v4677_v5 }
0x2c78   :  { %v2171_v56 = vadd.f32 1.0, %v4679_v55 }
0x2c79   :  { %2180 = vrot.lane.b32.xlu0 %v2178_v54, %s5015_s19 }
0x2c7a   :  { %4680 = vrcp.f32 %v2171_v56 }
0x2c87   :  { %v4681_v59 = vpop.eup %4680 }
0x2ceb   :  { %v2181_v57 = vpop.permute.xlu0 %2180 }
0x2cec   :  { %v2183_v58 = vadd.f32 %v2181_v57, %v2177_v9 }
0x2cee   :  { %4682 = vtanh.f32 %v2183_v58 }
0x2cfb   :  { %v4683_v60 = vpop.eup %4682 }
0x2cfc   :  { %v2185_v61 = vmul.f32 %v4683_v60, %v4681_v59 }
0x2cfe   :  { %2187 = vrot.lane.b32.xlu1 %v2185_v61, %s5015_s19 }
0x2d70   :  { %v2188_v62 = vpop.permute.xlu1 %2187 }
0x2d71   :  { %2191 = vst.msk [vmem:[#allocation5] sm:$0x1] %vm2190_vm4, %v2188_v62  ;;  %4160 = vmatmul.mubr.msk.f32.vlgmr.msra.gmra.mxu1 %vm162_vm1, %v2188_v62 }
0x2d72   :  { %2415 = vmatpush1.msra.mxu1 %v5451_v8  ;;  %2462 = vmatprep.mubr.f32.mxu1 %v5013_v0 }
0x2d73   :  { %2416 = vmatprep.subr.mxu1 %v5456_v10 }
0x2d74   :  { %2417 = vmatpush1.msra.mxu1 %v5462_v11 }
0x2d75   :  { %2418 = vmatprep.subr.mxu1 %v5468_v12 }
0x2d76   :  { %2419 = vmatpush1.msra.mxu1 %v5474_v14 }
0x2d77   :  { %2420 = vmatprep.subr.mxu1 %v5480_v16 }
0x2d78   :  { %2421 = vmatpush1.msra.mxu1 %v5486_v19 }
0x2d79   :  { %2422 = vmatprep.subr.mxu1 %v5492_v21 }
0x2d7a   :  { %2423 = vmatpush1.msra.mxu1 %v5498_v24 }
0x2d7b   :  { %2424 = vmatprep.subr.mxu1 %v5504_v25 }
0x2d7c   :  { %2425 = vmatpush1.msra.mxu1 %v5510_v26 }
0x2d7d   :  { %2426 = vmatprep.subr.mxu1 %v5516_v27 }
0x2d7e   :  { %2427 = vmatpush1.msra.mxu1 %v5523_v28 }
0x2d7f   :  { %2428 = vmatprep.subr.mxu1 %v5529_v44 }
0x2d80   :  { %2429 = vmatpush1.msra.mxu1 %v5536_v29 }
0x2d81   :  { %2618 = vmatprep.subr.mxu1 %v5446_v6 }
0x2e31   :  { %v2260_v63 = vpop.f32.mrf.mxu1 }
0x2e32   :  { %v2265_v1 = vadd.f32 %v2260_v63, %v5589_v38 }
0x2e33   :  { %v2262_v3 = vpop.f32.mrf.mxu1 }
0x2e34   :  { %v4161_v2 = vmul.f32 -1.442695, %v2265_v1  ;;  %v2266_v13 = vadd.f32 %v2262_v3, %v5595_v49 }
0x2e36   :  { %4684 = vpow2.f32 %v4161_v2  ;;  %v4162_v23 = vmul.f32 -1.442695, %v2266_v13 }
0x2e37   :  { %4686 = vtanh.f32 %v2266_v13 }
0x2e43   :  { %v4685_v15 = vpop.eup %4684 }
0x2e44   :  { %v2273_v17 = vadd.f32 1.0, %v4685_v15  ;;  %v4687_v18 = vpop.eup %4686 }
0x2e46   :  { %4688 = vrcp.f32 %v2273_v17 }
0x2e47   :  { %4690 = vpow2.f32 %v4162_v23 }
0x2e53   :  { %v4689_v20 = vpop.eup %4688 }
0x2e54   :  { %v2281_v22 = vmul.f32 %v4689_v20, %v4687_v18  ;;  %v4691_v41 = vpop.eup %4690  ;;  %v2280_v46 = vmul.f32 %v4689_v20, %v2183_v58 }
0x2e55   :  { %v2274_v42 = vadd.f32 1.0, %v4691_v41 }
0x2e56   :  { %2283 = vrot.lane.b32.xlu0 %v2281_v22, %s5015_s19 }
0x2e57   :  { %4692 = vrcp.f32 %v2274_v42 }
0x2e64   :  { %v4693_v32 = vpop.eup %4692 }
0x2ec8   :  { %v2284_v30 = vpop.permute.xlu0 %2283 }
0x2ec9   :  { %v2286_v31 = vadd.f32 %v2284_v30, %v2280_v46 }
0x2ecb   :  { %4694 = vtanh.f32 %v2286_v31 }
0x2ed8   :  { %v4695_v35 = vpop.eup %4694 }
0x2ed9   :  { %v2288_v36 = vmul.f32 %v4695_v35, %v4693_v32 }
0x2edb   :  { %2290 = vrot.lane.b32.xlu1 %v2288_v36, %s5015_s19 }
0x2f4d   :  { %v2291_v37 = vpop.permute.xlu1 %2290 }
0x2f4e   :  { %2293 = vst.msk [vmem:[#allocation5 + $0x1] sm:$0x1] %vm2190_vm4, %v2291_v37  ;;  %4163 = vmatmul.mubr.msk.f32.vlgmr.msra.gmra.mxu0 %vm162_vm1, %v2291_v37 }
0x2f4f   :  { %2517 = vmatpush1.msra.mxu0 %v5451_v8  ;;  %2564 = vmatprep.mubr.f32.mxu0 %v5013_v0 }
0x2f50   :  { %2518 = vmatprep.subr.mxu0 %v5456_v10 }
0x2f51   :  { %2519 = vmatpush1.msra.mxu0 %v5462_v11 }
0x2f52   :  { %2520 = vmatprep.subr.mxu0 %v5468_v12 }
0x2f53   :  { %2521 = vmatpush1.msra.mxu0 %v5474_v14 }
0x2f54   :  { %2522 = vmatprep.subr.mxu0 %v5480_v16 }
0x2f55   :  { %2523 = vmatpush1.msra.mxu0 %v5486_v19 }
0x2f56   :  { %2524 = vmatprep.subr.mxu0 %v5492_v21 }
0x2f57   :  { %2525 = vmatpush1.msra.mxu0 %v5498_v24 }
0x2f58   :  { %2526 = vmatprep.subr.mxu0 %v5504_v25 }
0x2f59   :  { %2527 = vmatpush1.msra.mxu0 %v5510_v26 }
0x2f5a   :  { %2528 = vmatprep.subr.mxu0 %v5516_v27 }
0x2f5b   :  { %2529 = vmatpush1.msra.mxu0 %v5523_v28 }
0x2f5c   :  { %2530 = vmatprep.subr.mxu0 %v5529_v44 }
0x2f5d   :  { %2531 = vmatpush1.msra.mxu0 %v5536_v29 }
0x2f5e   :  { %2720 = vmatprep.subr.mxu0 %v5446_v6 }
0x300e   :  { %v2362_v39 = vpop.f32.mrf.mxu0 }
0x300f   :  { %v2367_v40 = vadd.f32 %v2362_v39, %v5589_v38 }
0x3010   :  { %v2364_v47 = vpop.f32.mrf.mxu0 }
0x3011   :  { %v4164_v43 = vmul.f32 -1.442695, %v2367_v40  ;;  %v2368_v48 = vadd.f32 %v2364_v47, %v5595_v49 }
0x3013   :  { %4696 = vpow2.f32 %v4164_v43  ;;  %v4165_v5 = vmul.f32 -1.442695, %v2368_v48 }
0x3014   :  { %4698 = vtanh.f32 %v2368_v48 }
0x3020   :  { %v4697_v50 = vpop.eup %4696 }
0x3021   :  { %v2375_v4 = vadd.f32 1.0, %v4697_v50  ;;  %v4699_v51 = vpop.eup %4698 }
0x3023   :  { %4700 = vrcp.f32 %v2375_v4 }
0x3024   :  { %4702 = vpow2.f32 %v4165_v5 }
0x3030   :  { %v4701_v52 = vpop.eup %4700 }
0x3031   :  { %v2383_v53 = vmul.f32 %v4701_v52, %v4699_v51  ;;  %v4703_v54 = vpop.eup %4702  ;;  %v2382_v55 = vmul.f32 %v4701_v52, %v2286_v31 }
0x3032   :  { %v2376_v7 = vadd.f32 1.0, %v4703_v54 }
0x3033   :  { %2385 = vrot.lane.b32.xlu0 %v2383_v53, %s5015_s19 }
0x3034   :  { %4704 = vrcp.f32 %v2376_v7 }
0x3041   :  { %v4705_v57 = vpop.eup %4704 }
0x30a5   :  { %v2386_v56 = vpop.permute.xlu0 %2385 }
0x30a6   :  { %v2388_v9 = vadd.f32 %v2386_v56, %v2382_v55 }
0x30a8   :  { %4706 = vtanh.f32 %v2388_v9 }
0x30b5   :  { %v4707_v58 = vpop.eup %4706 }
0x30b6   :  { %v2390_v59 = vmul.f32 %v4707_v58, %v4705_v57 }
0x30b8   :  { %2392 = vrot.lane.b32.xlu1 %v2390_v59, %s5015_s19 }
0x312a   :  { %v2393_v60 = vpop.permute.xlu1 %2392 }
0x312b   :  { %2395 = vst.msk [vmem:[#allocation5 + $0x2] sm:$0x1] %vm2190_vm4, %v2393_v60  ;;  %4166 = vmatmul.mubr.msk.f32.vlgmr.msra.gmra.mxu1 %vm162_vm1, %v2393_v60 }
0x312c   :  { %2619 = vmatpush1.msra.mxu1 %v5451_v8  ;;  %2666 = vmatprep.mubr.f32.mxu1 %v5013_v0 }
0x312d   :  { %2620 = vmatprep.subr.mxu1 %v5456_v10 }
0x312e   :  { %2621 = vmatpush1.msra.mxu1 %v5462_v11 }
0x312f   :  { %2622 = vmatprep.subr.mxu1 %v5468_v12 }
0x3130   :  { %2623 = vmatpush1.msra.mxu1 %v5474_v14 }
0x3131   :  { %2624 = vmatprep.subr.mxu1 %v5480_v16 }
0x3132   :  { %2625 = vmatpush1.msra.mxu1 %v5486_v19 }
0x3133   :  { %2626 = vmatprep.subr.mxu1 %v5492_v21 }
0x3134   :  { %2627 = vmatpush1.msra.mxu1 %v5498_v24 }
0x3135   :  { %2628 = vmatprep.subr.mxu1 %v5504_v25 }
0x3136   :  { %2629 = vmatpush1.msra.mxu1 %v5510_v26 }
0x3137   :  { %2630 = vmatprep.subr.mxu1 %v5516_v27 }
0x3138   :  { %2631 = vmatpush1.msra.mxu1 %v5523_v28 }
0x3139   :  { %2632 = vmatprep.subr.mxu1 %v5529_v44 }
0x313a   :  { %2633 = vmatpush1.msra.mxu1 %v5536_v29 }
0x313b   :  { %2822 = vmatprep.subr.mxu1 %v5446_v6 }
0x31eb   :  { %v2464_v61 = vpop.f32.mrf.mxu1 }
0x31ec   :  { %v2469_v62 = vadd.f32 %v2464_v61, %v5589_v38 }
0x31ed   :  { %v2466_v1 = vpop.f32.mrf.mxu1 }
0x31ee   :  { %v4167_v63 = vmul.f32 -1.442695, %v2469_v62  ;;  %v2470_v2 = vadd.f32 %v2466_v1, %v5595_v49 }
0x31f0   :  { %4708 = vpow2.f32 %v4167_v63  ;;  %v4168_v20 = vmul.f32 -1.442695, %v2470_v2 }
0x31f1   :  { %4710 = vtanh.f32 %v2470_v2 }
0x31fd   :  { %v4709_v3 = vpop.eup %4708 }
0x31fe   :  { %v2477_v13 = vadd.f32 1.0, %v4709_v3  ;;  %v4711_v15 = vpop.eup %4710 }
0x3200   :  { %4712 = vrcp.f32 %v2477_v13 }
0x3201   :  { %4714 = vpow2.f32 %v4168_v20 }
0x320d   :  { %v4713_v17 = vpop.eup %4712 }
0x320e   :  { %v2485_v18 = vmul.f32 %v4713_v17, %v4711_v15  ;;  %v4715_v6 = vpop.eup %4714  ;;  %v2484_v23 = vmul.f32 %v4713_v17, %v2388_v9 }
0x320f   :  { %v2478_v22 = vadd.f32 1.0, %v4715_v6 }
0x3210   :  { %2487 = vrot.lane.b32.xlu0 %v2485_v18, %s5015_s19 }
0x3211   :  { %4716 = vrcp.f32 %v2478_v22 }
0x321e   :  { %v4717_v46 = vpop.eup %4716 }
0x3282   :  { %v2488_v41 = vpop.permute.xlu0 %2487 }
0x3283   :  { %v2490_v42 = vadd.f32 %v2488_v41, %v2484_v23 }
0x3285   :  { %4718 = vtanh.f32 %v2490_v42 }
0x3292   :  { %v4719_v30 = vpop.eup %4718 }
0x3293   :  { %v2492_v31 = vmul.f32 %v4719_v30, %v4717_v46 }
0x3295   :  { %2494 = vrot.lane.b32.xlu1 %v2492_v31, %s5015_s19 }
0x3307   :  { %v2495_v32 = vpop.permute.xlu1 %2494 }
0x3308   :  { %2497 = vst.msk [vmem:[#allocation5 + $0x3] sm:$0x1] %vm2190_vm4, %v2495_v32  ;;  %4169 = vmatmul.mubr.msk.f32.vlgmr.msra.gmra.mxu0 %vm162_vm1, %v2495_v32 }
0x3309   :  { %2721 = vmatpush1.msra.mxu0 %v5451_v8  ;;  %2768 = vmatprep.mubr.f32.mxu0 %v5013_v0 }
0x330a   :  { %2722 = vmatprep.subr.mxu0 %v5456_v10 }
0x330b   :  { %2723 = vmatpush1.msra.mxu0 %v5462_v11 }
0x330c   :  { %2724 = vmatprep.subr.mxu0 %v5468_v12 }
0x330d   :  { %2725 = vmatpush1.msra.mxu0 %v5474_v14 }
0x330e   :  { %2726 = vmatprep.subr.mxu0 %v5480_v16 }
0x330f   :  { %2727 = vmatpush1.msra.mxu0 %v5486_v19 }
0x3310   :  { %2728 = vmatprep.subr.mxu0 %v5492_v21 }
0x3311   :  { %2729 = vmatpush1.msra.mxu0 %v5498_v24 }
0x3312   :  { %2730 = vmatprep.subr.mxu0 %v5504_v25 }
0x3313   :  { %2731 = vmatpush1.msra.mxu0 %v5510_v26 }
0x3314   :  { %2732 = vmatprep.subr.mxu0 %v5516_v27 }
0x3315   :  { %2733 = vmatpush1.msra.mxu0 %v5523_v28 }
0x3316   :  { %2734 = vmatprep.subr.mxu0 %v5529_v44 }
0x3317   :  { %2735 = vmatpush1.msra.mxu0 %v5536_v29 }
0x33c8   :  { %v2566_v35 = vpop.f32.mrf.mxu0 }
0x33c9   :  { %v2571_v36 = vadd.f32 %v2566_v35, %v5589_v38 }
0x33ca   :  { %v2568_v39 = vpop.f32.mrf.mxu0 }
0x33cb   :  { %v4170_v37 = vmul.f32 -1.442695, %v2571_v36  ;;  %v2572_v40 = vadd.f32 %v2568_v39, %v5595_v49 }
0x33cd   :  { %4720 = vpow2.f32 %v4170_v37  ;;  %v4171_v51 = vmul.f32 -1.442695, %v2572_v40 }
0x33ce   :  { %4722 = vtanh.f32 %v2572_v40 }
0x33da   :  { %v4721_v43 = vpop.eup %4720 }
0x33db   :  { %v2579_v47 = vadd.f32 1.0, %v4721_v43  ;;  %v4723_v48 = vpop.eup %4722 }
0x33dd   :  { %4724 = vrcp.f32 %v2579_v47 }
0x33de   :  { %4726 = vpow2.f32 %v4171_v51 }
0x33ea   :  { %v4725_v50 = vpop.eup %4724 }
0x33eb   :  { %v2587_v4 = vmul.f32 %v4725_v50, %v4723_v48  ;;  %v4727_v52 = vpop.eup %4726  ;;  %v2586_v5 = vmul.f32 %v4725_v50, %v2490_v42 }
0x33ec   :  { %v2580_v53 = vadd.f32 1.0, %v4727_v52 }
0x33ed   :  { %2589 = vrot.lane.b32.xlu0 %v2587_v4, %s5015_s19 }
0x33ee   :  { %4728 = vrcp.f32 %v2580_v53  ;;  %v2922_v53 = vld [vmem:[#allocation15 + $0x78] sm:$0xff] }
0x33ef   :  { %2954 = vmatprep.subr.mxu0 %v2922_v53 }
0x33fb   :  { %v4729_v55 = vpop.eup %4728 }
0x345f   :  { %v2590_v54 = vpop.permute.xlu0 %2589 }
0x3460   :  { %v2592_v7 = vadd.f32 %v2590_v54, %v2586_v5  ;;  %v2921_v5 = vld [vmem:[#allocation15 + $0x70] sm:$0xff]  ;;  %v2920_v54 = vld [vmem:[#allocation15 + $0x68] sm:$0xff] }
0x3462   :  { %4730 = vtanh.f32 %v2592_v7 }
0x346f   :  { %v4731_v56 = vpop.eup %4730 }
0x3470   :  { %v2594_v9 = vmul.f32 %v4731_v56, %v4729_v55  ;;  %v5728_v55 = vld [vmem:[#allocation17 + $0x70] sm:$0xff]  ;;  %v5731_v56 = vld [vmem:[#allocation17 + $0x68] sm:$0xff] }
0x3472   :  { %2596 = vrot.lane.b32.xlu1 %v2594_v9, %s5015_s19  ;;  %v2917_v9 = vld [vmem:[#allocation15 + $0x50] sm:$0xff] }
0x34e4   :  { %v2597_v57 = vpop.permute.xlu1 %2596 }
0x34e5   :  { %2599 = vst.msk [vmem:[#allocation5 + $0x4] sm:$0x1] %vm2190_vm4, %v2597_v57  ;;  %4172 = vmatmul.mubr.msk.f32.vlgmr.msra.gmra.mxu1 %vm162_vm1, %v2597_v57  ;;  %v5734_v57 = vld [vmem:[#allocation17 + $0x60] sm:$0xff] }
0x34e6   :  { %2823 = vmatpush1.msra.mxu1 %v5451_v8  ;;  %2870 = vmatprep.mubr.f32.mxu1 %v5013_v0 }
0x34e7   :  { %2824 = vmatprep.subr.mxu1 %v5456_v10 }
0x34e8   :  { %2825 = vmatpush1.msra.mxu1 %v5462_v11 }
0x34e9   :  { %2826 = vmatprep.subr.mxu1 %v5468_v12 }
0x34ea   :  { %2827 = vmatpush1.msra.mxu1 %v5474_v14 }
0x34eb   :  { %2828 = vmatprep.subr.mxu1 %v5480_v16 }
0x34ec   :  { %2829 = vmatpush1.msra.mxu1 %v5486_v19 }
0x34ed   :  { %2830 = vmatprep.subr.mxu1 %v5492_v21 }
0x34ee   :  { %2831 = vmatpush1.msra.mxu1 %v5498_v24 }
0x34ef   :  { %2832 = vmatprep.subr.mxu1 %v5504_v25 }
0x34f0   :  { %2833 = vmatpush1.msra.mxu1 %v5510_v26 }
0x34f1   :  { %2834 = vmatprep.subr.mxu1 %v5516_v27 }
0x34f2   :  { %2835 = vmatpush1.msra.mxu1 %v5523_v28 }
0x34f3   :  { %2836 = vmatprep.subr.mxu1 %v5529_v44 }
0x34f4   :  { %2837 = vmatpush1.msra.mxu1 %v5536_v29 }
0x35a5   :  { %v2668_v8 = vpop.f32.mrf.mxu1 }
0x35a6   :  { %v2673_v10 = vadd.f32 %v2668_v8, %v5589_v38  ;;  %v5736_v8 = vld [vmem:[#allocation17 + $0x58] sm:$0xff] }
0x35a7   :  { %v2670_v12 = vpop.f32.mrf.mxu1 }
0x35a8   :  { %v4173_v11 = vmul.f32 -1.442695, %v2673_v10  ;;  %v2674_v14 = vadd.f32 %v2670_v12, %v5595_v49  ;;  %v2916_v10 = vld [vmem:[#allocation15 + $0x48] sm:$0xff]  ;;  %v2915_v12 = vld [vmem:[#allocation15 + $0x40] sm:$0xff] }
0x35aa   :  { %4732 = vpow2.f32 %v4173_v11  ;;  %v4174_v26 = vmul.f32 -1.442695, %v2674_v14  ;;  %v5739_v11 = vld [vmem:[#allocation17 + $0x50] sm:$0xff] }
0x35ab   :  { %4734 = vtanh.f32 %v2674_v14 }
0x35b7   :  { %v4733_v16 = vpop.eup %4732 }
0x35b8   :  { %v2681_v19 = vadd.f32 1.0, %v4733_v16  ;;  %v4735_v21 = vpop.eup %4734 }
0x35ba   :  { %4736 = vrcp.f32 %v2681_v19 }
0x35bb   :  { %4738 = vpow2.f32 %v4174_v26  ;;  %v2914_v26 = vld [vmem:[#allocation15 + $0x38] sm:$0xff] }
0x35c7   :  { %v4737_v24 = vpop.eup %4736 }
0x35c8   :  { %v2689_v25 = vmul.f32 %v4737_v24, %v4735_v21  ;;  %v4739_v27 = vpop.eup %4738  ;;  %v2688_v44 = vmul.f32 %v4737_v24, %v2592_v7  ;;  %v5726_v7 = vld [vmem:[#allocation17 + $0x78] sm:$0xff] }
0x35c9   :  { %v2682_v28 = vadd.f32 1.0, %v4739_v27  ;;  %3044 = vmatprep.subr.mxu1 %v5726_v7  ;;  %v5744_v27 = vld [vmem:[#allocation17 + $0x48] sm:$0xff] }
0x35ca   :  { %2691 = vrot.lane.b32.xlu0 %v2689_v25, %s5015_s19 }
0x35cb   :  { %4740 = vrcp.f32 %v2682_v28  ;;  %v2913_v28 = vld [vmem:[#allocation15 + $0x30] sm:$0xff] }
0x35d8   :  { %v4741_v59 = vpop.eup %4740 }
0x363c   :  { %v2692_v29 = vpop.permute.xlu0 %2691 }
0x363d   :  { %v2694_v58 = vadd.f32 %v2692_v29, %v2688_v44  ;;  %v5747_v44 = vld [vmem:[#allocation17 + $0x40] sm:$0xff]  ;;  %v2912_v29 = vld [vmem:[#allocation15 + $0x28] sm:$0xff] }
0x363f   :  { %4742 = vtanh.f32 %v2694_v58 }
0x364c   :  { %v4743_v60 = vpop.eup %4742 }
0x364d   :  { %v2696_v61 = vmul.f32 %v4743_v60, %v4741_v59  ;;  %v2911_v59 = vld [vmem:[#allocation15 + $0x20] sm:$0xff]  ;;  %v5752_v60 = vld [vmem:[#allocation17 + $0x30] sm:$0xff] }
0x364f   :  { %2698 = vrot.lane.b32.xlu1 %v2696_v61, %s5015_s19  ;;  %v2910_v61 = vld [vmem:[#allocation15 + $0x18] sm:$0xff] }
0x36c1   :  { %v2699_v62 = vpop.permute.xlu1 %2698 }
0x36c2   :  { %2701 = vst.msk [vmem:[#allocation5 + $0x5] sm:$0x1] %vm2190_vm4, %v2699_v62  ;;  %4175 = vmatmul.mubr.msk.f32.vlgmr.msra.gmra.mxu0 %vm162_vm1, %v2699_v62  ;;  %v5755_v62 = vld [vmem:[#allocation17 + $0x28] sm:$0xff] }
0x36c3   :  { %3002 = vmatprep.mubr.f32.mxu0 %v5013_v0  ;;  %2955 = vmatpush1.msra.mxu0 %v2921_v5 }
0x36c4   :  { %2956 = vmatprep.subr.mxu0 %v2920_v54 }
0x3782   :  { %v2770_v63 = vpop.f32.mrf.mxu0 }
0x3783   :  { %v2775_v1 = vadd.f32 %v2770_v63, %v5589_v38  ;;  %v2909_v63 = vld [vmem:[#allocation15 + $0x10] sm:$0xff] }
0x3784   :  { %v2772_v3 = vpop.f32.mrf.mxu0 }
0x3785   :  { %v4176_v2 = vmul.f32 -1.442695, %v2775_v1  ;;  %v2776_v13 = vadd.f32 %v2772_v3, %v5595_v49  ;;  %v5757_v1 = vld [vmem:[#allocation17 + $0x20] sm:$0xff]  ;;  %v5760_v3 = vld [vmem:[#allocation17 + $0x18] sm:$0xff] }
0x3787   :  { %4744 = vpow2.f32 %v4176_v2  ;;  %v4177_v22 = vmul.f32 -1.442695, %v2776_v13  ;;  %v2908_v2 = vld [vmem:[#allocation15 + $0x8] sm:$0xff] }
0x3788   :  { %4746 = vtanh.f32 %v2776_v13  ;;  %v2907_v13 = vld [vmem:[#allocation15] sm:$0xff] }
0x3794   :  { %v4745_v15 = vpop.eup %4744 }
0x3795   :  { %v2783_v17 = vadd.f32 1.0, %v4745_v15  ;;  %v4747_v18 = vpop.eup %4746  ;;  %v5763_v15 = vld [vmem:[#allocation17 + $0x10] sm:$0xff] }
0x3797   :  { %4748 = vrcp.f32 %v2783_v17  ;;  %v5768_v17 = vld [vmem:[#allocation17 + $0x8] sm:$0xff] }
0x3798   :  { %4750 = vpow2.f32 %v4177_v22 }
0x37a4   :  { %v4749_v20 = vpop.eup %4748 }
0x37a5   :  { %v2791_v6 = vmul.f32 %v4749_v20, %v4747_v18  ;;  %v4751_v23 = vpop.eup %4750  ;;  %v2790_v42 = vmul.f32 %v4749_v20, %v2694_v58  ;;  %v5749_v58 = vld [vmem:[#allocation17 + $0x38] sm:$0xff]  ;;  %v5770_v18 = vld [vmem:[#allocation17] sm:$0xff] }
0x37a6   :  { %v2784_v41 = vadd.f32 1.0, %v4751_v23 }
0x37a7   :  { %2793 = vrot.lane.b32.xlu0 %v2791_v6, %s5015_s19 }
0x37a8   :  { %4752 = vrcp.f32 %v2784_v41 }
0x37b5   :  { %v4753_v31 = vpop.eup %4752 }
0x3819   :  { %v2794_v46 = vpop.permute.xlu0 %2793 }
0x381a   :  { %v2796_v30 = vadd.f32 %v2794_v46, %v2790_v42  ;;  %v2923_v42 = vld [vmem:[%s6016_s12] sm:$0x3]  ;;  %v5017_v46 = vmov 1966171168  }
0x381c   :  { %4754 = vtanh.f32 %v2796_v30 }
0x3829   :  { %v4755_v32 = vpop.eup %4754 }
0x382a   :  { %v2798_v35 = vmul.f32 %v4755_v32, %v4753_v31  ;;  %v2928_v32 = vrot.slane %v2923_v42, %v1992_v34 }
0x382c   :  { %2800 = vrot.lane.b32.xlu1 %v2798_v35, %s5015_s19 }
0x389e   :  { %v2801_v36 = vpop.permute.xlu1 %2800 }
0x389f   :  { %2803 = vst.msk [vmem:[#allocation5 + $0x6] sm:$0x1] %vm2190_vm4, %v2801_v36  ;;  %4178 = vmatmul.mubr.msk.f32.vlgmr.msra.gmra.mxu1 %vm162_vm1, %v2801_v36  ;;  %v2932_v36 = vrot.slane %v2923_v42, %v1996_v45 }
0x38a0   :  { %3092 = vmatprep.mubr.f32.mxu1 %v5013_v0  ;;  %3045 = vmatpush1.msra.mxu1 %v5728_v55 }
0x38a1   :  { %3046 = vmatprep.subr.mxu1 %v5731_v56 }
0x38a2   :  { %3047 = vmatpush1.msra.mxu1 %v5734_v57 }
0x38a3   :  { %3048 = vmatprep.subr.mxu1 %v5736_v8 }
0x38a4   :  { %3049 = vmatpush1.msra.mxu1 %v5739_v11 }
0x38a5   :  { %3050 = vmatprep.subr.mxu1 %v5744_v27 }
0x38a6   :  { %3051 = vmatpush1.msra.mxu1 %v5747_v44 }
0x38a7   :  { %3052 = vmatprep.subr.mxu1 %v5749_v58 }
0x38a8   :  { %3053 = vmatpush1.msra.mxu1 %v5752_v60 }
0x38a9   :  { %3054 = vmatprep.subr.mxu1 %v5755_v62 }
0x38aa   :  { %3055 = vmatpush1.msra.mxu1 %v5757_v1 }
0x38ab   :  { %3056 = vmatprep.subr.mxu1 %v5760_v3 }
0x38ac   :  { %3057 = vmatpush1.msra.mxu1 %v5763_v15 }
0x38ad   :  { %3058 = vmatprep.subr.mxu1 %v5768_v17 }
0x38ae   :  { %3059 = vmatpush1.msra.mxu1 %v5770_v18 }
0x38af   :  { %3093 = vmatmul.mubr.f32.vlgmr.msra.gmra.mxu1 %v5013_v0  ;;  %3292 = vmatprep.subr.mxu1 %v5726_v7 }
0x38b0   :  { %3293 = vmatpush1.msra.mxu1 %v5728_v55  ;;  %3340 = vmatprep.mubr.f32.mxu1 %v5013_v0 }
0x38b1   :  { %3294 = vmatprep.subr.mxu1 %v5731_v56 }
0x38b2   :  { %3295 = vmatpush1.msra.mxu1 %v5734_v57 }
0x38b3   :  { %3296 = vmatprep.subr.mxu1 %v5736_v8 }
0x38b4   :  { %3297 = vmatpush1.msra.mxu1 %v5739_v11 }
0x38b5   :  { %3298 = vmatprep.subr.mxu1 %v5744_v27 }
0x38b6   :  { %3299 = vmatpush1.msra.mxu1 %v5747_v44 }
0x38b7   :  { %3300 = vmatprep.subr.mxu1 %v5749_v58 }
0x38b8   :  { %3301 = vmatpush1.msra.mxu1 %v5752_v60 }
0x38b9   :  { %3302 = vmatprep.subr.mxu1 %v5755_v62 }
0x38ba   :  { %3303 = vmatpush1.msra.mxu1 %v5757_v1 }
0x38bb   :  { %3304 = vmatprep.subr.mxu1 %v5760_v3 }
0x38bc   :  { %3305 = vmatpush1.msra.mxu1 %v5763_v15 }
0x38bd   :  { %3306 = vmatprep.subr.mxu1 %v5768_v17 }
0x38be   :  { %3307 = vmatpush1.msra.mxu1 %v5770_v18 }
0x38bf   :  { %3540 = vmatprep.subr.mxu1 %v5726_v7 }
0x395f   :  { %v2872_v37 = vpop.f32.mrf.mxu1 }
0x3960   :  { %v2877_v39 = vadd.f32 %v2872_v37, %v5589_v38  ;;  %v2919_v38 = vld [vmem:[#allocation15 + $0x60] sm:$0xff] }
0x3961   :  { %v2874_v43 = vpop.f32.mrf.mxu1  ;;  %2957 = vmatpush1.msra.mxu0 %v2919_v38 }
0x3962   :  { %v4179_v40 = vmul.f32 -1.442695, %v2877_v39  ;;  %v2878_v47 = vadd.f32 %v2874_v43, %v5595_v49  ;;  %v2918_v49 = vld [vmem:[#allocation15 + $0x58] sm:$0xff] }
0x3963   :  { %2958 = vmatprep.subr.mxu0 %v2918_v49 }
0x3964   :  { %4756 = vpow2.f32 %v4179_v40  ;;  %2959 = vmatpush1.msra.mxu0 %v2917_v9  ;;  %v4180_v14 = vmul.f32 -1.442695, %v2878_v47 }
0x3965   :  { %4758 = vtanh.f32 %v2878_v47  ;;  %2960 = vmatprep.subr.mxu0 %v2916_v10 }
0x3966   :  { %2961 = vmatpush1.msra.mxu0 %v2915_v12 }
0x3967   :  { %2962 = vmatprep.subr.mxu0 %v2914_v26 }
0x3968   :  { %2963 = vmatpush1.msra.mxu0 %v2913_v28 }
0x3969   :  { %2964 = vmatprep.subr.mxu0 %v2912_v29 }
0x396a   :  { %2965 = vmatpush1.msra.mxu0 %v2911_v59 }
0x396b   :  { %2966 = vmatprep.subr.mxu0 %v2910_v61 }
0x396c   :  { %2967 = vmatpush1.msra.mxu0 %v2909_v63 }
0x396d   :  { %2968 = vmatprep.subr.mxu0 %v2908_v2 }
0x396e   :  { %2969 = vmatpush1.msra.mxu0 %v2907_v13 }
0x396f   :  { %3168 = vmatprep.subr.mxu0 %v5726_v7  ;;  %v3094_v31 = vpop.f32.mrf.mxu1 }
0x3971   :  { %v4757_v48 = vpop.eup %4756  ;;  %v3096_v39 = vpop.f32.mrf.mxu1 }
0x3972   :  { %v2885_v50 = vadd.f32 1.0, %v4757_v48  ;;  %v4759_v4 = vpop.eup %4758 }
0x3974   :  { %4760 = vrcp.f32 %v2885_v50  ;;  %v3101_v50 = vcombine.low %v3094_v31, %v3096_v39 }
0x3975   :  { %4762 = vpow2.f32 %v4180_v14 }
0x3981   :  { %v4761_v51 = vpop.eup %4760 }
0x3982   :  { %v2893_v52 = vmul.f32 %v4761_v51, %v4759_v4  ;;  %v4763_v16 = vpop.eup %4762  ;;  %v2892_v21 = vmul.f32 %v4761_v51, %v2796_v30  ;;  %v3103_v30 = vunpack.c.l.s4 %v5017_v46 }
0x3983   :  { %v2886_v19 = vadd.f32 1.0, %v4763_v16 }
0x3984   :  { %2895 = vrot.lane.b32.xlu0 %v2893_v52, %s5015_s19  ;;  %v3104_v35 = vunpack.c.0.s8 %v3103_v30 }
0x3985   :  { %4764 = vrcp.f32 %v2886_v19 }
0x3986   :  { %v5822_v47 = vsub.s32 %v3104_v35, %v5581_v33 }
0x3988   :  { %v3108_v4 = vrot.slane %v3101_v50, %v5822_v47 }
0x398a   :  { %v3115_v51 = vrot.slane %v3108_v4, %v5822_v47 }
0x3992   :  { %v4765_v20 = vpop.eup %4764 }
0x39f6   :  { %v2896_v24 = vpop.permute.xlu0 %2895 }
0x39f7   :  { %v2898_v25 = vadd.f32 %v2896_v24, %v2892_v21 }
0x39f9   :  { %4766 = vtanh.f32 %v2898_v25 }
0x3a06   :  { %v4767_v6 = vpop.eup %4766 }
0x3a07   :  { %v2900_v22 = vmul.f32 %v4767_v6, %v4765_v20 }
0x3a09   :  { %2902 = vrot.lane.b32.xlu1 %v2900_v22, %s5015_s19 }
0x3a7b   :  { %v2903_v23 = vpop.permute.xlu1 %2902 }
0x3a7c   :  { %2905 = vst.msk [vmem:[#allocation5 + $0x7] sm:$0x1] %vm2190_vm4, %v2903_v23 }
0x3a83   :  { %v2906_v41 = vld [vmem:[#allocation5] sm:$0xff] }
0x3a84   :  { %4181 = vmatmul.mubr.msk.f32.vlgmr.msra.gmra.mxu0 %vm162_vm1, %v2906_v41 }
0x3a85   :  { %3169 = vmatpush1.msra.mxu0 %v5728_v55  ;;  %3216 = vmatprep.mubr.f32.mxu0 %v5013_v0 }
0x3a86   :  { %3170 = vmatprep.subr.mxu0 %v5731_v56 }
0x3a87   :  { %3171 = vmatpush1.msra.mxu0 %v5734_v57 }
0x3a88   :  { %3172 = vmatprep.subr.mxu0 %v5736_v8 }
0x3a89   :  { %3173 = vmatpush1.msra.mxu0 %v5739_v11 }
0x3a8a   :  { %3174 = vmatprep.subr.mxu0 %v5744_v27 }
0x3a8b   :  { %3175 = vmatpush1.msra.mxu0 %v5747_v44 }
0x3a8c   :  { %3176 = vmatprep.subr.mxu0 %v5749_v58 }
0x3a8d   :  { %3177 = vmatpush1.msra.mxu0 %v5752_v60 }
0x3a8e   :  { %3178 = vmatprep.subr.mxu0 %v5755_v62 }
0x3a8f   :  { %3179 = vmatpush1.msra.mxu0 %v5757_v1 }
0x3a90   :  { %3180 = vmatprep.subr.mxu0 %v5760_v3 }
0x3a91   :  { %3181 = vmatpush1.msra.mxu0 %v5763_v15 }
0x3a92   :  { %3182 = vmatprep.subr.mxu0 %v5768_v17 }
0x3a93   :  { %3183 = vmatpush1.msra.mxu0 %v5770_v18 }
0x3a94   :  { %3416 = vmatprep.subr.mxu0 %v5726_v7 }
0x3b44   :  { %v3004_v37 = vpop.f32.mrf.mxu0 }
0x3b45   :  { %v3005_v40 = vadd.f32 %v3004_v37, %v2928_v32 }
0x3b46   :  { %v3006_v43 = vpop.f32.mrf.mxu0 }
0x3b47   :  { %3009 = vst [vmem:[#allocation3] sm:$0xff] %v3005_v40  ;;  %v3007_v48 = vadd.f32 %v3006_v43, %v2932_v36 }
0x3b49   :  { %3010 = vst [vmem:[#allocation3 + $0x8] sm:$0xff] %v3007_v48 }
0x3b50   :  { %v3027_v34 = vld [vmem:[#allocation3] ss:$8 sm:$0x3]  ;;  %v3148_v61 = vld [vmem:[#allocation3 + $0x1] ss:$8 sm:$0x3] }
0x3b51   :  { %v3117_v52 = vadd.f32 %v3115_v51, %v3027_v34  ;;  %v3272_v4 = vld [vmem:[#allocation3 + $0x2] ss:$8 sm:$0x3] }
0x3b53   :  { %v4182_v53 = vmul.f32 -1.442695, %v3117_v52 }
0x3b55   :  { %4768 = vpow2.f32 %v4182_v53 }
0x3b56   :  { %4770 = vtanh.f32 %v3117_v52 }
0x3b62   :  { %v4769_v45 = vpop.eup %4768 }
0x3b63   :  { %v3121_v5 = vadd.f32 1.0, %v4769_v45  ;;  %v4771_v54 = vpop.eup %4770 }
0x3b64   :  { %v3127_v38 = vrot.slane %v4771_v54, 1 }
0x3b65   :  { %4772 = vrcp.f32 %v3121_v5 }
0x3b72   :  { %v4773_v33 = vpop.eup %4772 }
0x3b73   :  { %3137 = vrot.lane.b32.xlu1 %v4773_v33, %s5015_s19  ;;  %v3129_v49 = vmul.f32 %v4773_v33, %v3127_v38  ;;  %v3125_v9 = vmul.f32 0.0, %v4773_v33 }
0x3b75   :  { %3131 = vrot.lane.b32.xlu0 %v3129_v49, %s5015_s19 }
0x3be5   :  { %v3138_v16 = vpop.permute.xlu1 %3137 }
0x3be6   :  { %v3139_v19 = vrot.slane %v3138_v16, 1 }
0x3be7   :  { %v3132_v10 = vpop.permute.xlu0 %3131 }
0x3be8   :  { %v3134_v12 = vadd.f32 %v3132_v10, %v3125_v9 }
0x3bea   :  { %4774 = vtanh.f32 %v3134_v12 }
0x3bf7   :  { %v4775_v14 = vpop.eup %4774 }
0x3bf8   :  { %3142 = vrot.lane.b32.xlu0 %v4775_v14, %s5015_s19 }
0x3c6a   :  { %v3143_v21 = vpop.permute.xlu0 %3142 }
0x3c6b   :  { %v3145_v24 = vmul.f32 %v3143_v21, %v3139_v19 }
0x3c6d   :  { %3146 = vst.msk [vmem:[#allocation5] sm:$0x1] %vm2190_vm4, %v3145_v24  ;;  %4183 = vmatmul.mubr.msk.f32.vlgmr.msra.gmra.mxu0 %vm162_vm1, %v3145_v24 }
0x3c6e   :  { %3417 = vmatpush1.msra.mxu0 %v5728_v55  ;;  %3464 = vmatprep.mubr.f32.mxu0 %v5013_v0 }
0x3c6f   :  { %3418 = vmatprep.subr.mxu0 %v5731_v56 }
0x3c70   :  { %3419 = vmatpush1.msra.mxu0 %v5734_v57 }
0x3c71   :  { %3420 = vmatprep.subr.mxu0 %v5736_v8 }
0x3c72   :  { %3421 = vmatpush1.msra.mxu0 %v5739_v11 }
0x3c73   :  { %3422 = vmatprep.subr.mxu0 %v5744_v27 }
0x3c74   :  { %3423 = vmatpush1.msra.mxu0 %v5747_v44 }
0x3c75   :  { %3424 = vmatprep.subr.mxu0 %v5749_v58 }
0x3c76   :  { %3425 = vmatpush1.msra.mxu0 %v5752_v60 }
0x3c77   :  { %3426 = vmatprep.subr.mxu0 %v5755_v62 }
0x3c78   :  { %3427 = vmatpush1.msra.mxu0 %v5757_v1 }
0x3c79   :  { %3428 = vmatprep.subr.mxu0 %v5760_v3 }
0x3c7a   :  { %3429 = vmatpush1.msra.mxu0 %v5763_v15 }
0x3c7b   :  { %3430 = vmatprep.subr.mxu0 %v5768_v17 }
0x3c7c   :  { %3431 = vmatpush1.msra.mxu0 %v5770_v18 }
0x3c7d   :  { %3664 = vmatprep.subr.mxu0 %v5726_v7 }
0x3d2d   :  { %v3218_v25 = vpop.f32.mrf.mxu0 }
0x3d2f   :  { %v3220_v26 = vpop.f32.mrf.mxu0 }
0x3d30   :  { %v3225_v28 = vcombine.low %v3218_v25, %v3220_v26 }
0x3d32   :  { %v3232_v29 = vrot.slane %v3225_v28, %v5822_v47 }
0x3d34   :  { %v3239_v59 = vrot.slane %v3232_v29, %v5822_v47  ;;  %v3396_v29 = vld [vmem:[#allocation3 + $0x3] ss:$8 sm:$0x3] }
0x3d36   :  { %v3241_v63 = vadd.f32 %v3239_v59, %v3148_v61 }
0x3d38   :  { %v4184_v2 = vmul.f32 -1.442695, %v3241_v63 }
0x3d3a   :  { %4776 = vpow2.f32 %v4184_v2 }
0x3d3b   :  { %4778 = vtanh.f32 %v3241_v63 }
0x3d47   :  { %v4777_v13 = vpop.eup %4776 }
0x3d48   :  { %v3245_v20 = vadd.f32 1.0, %v4777_v13  ;;  %v4779_v6 = vpop.eup %4778 }
0x3d49   :  { %v3251_v22 = vrot.slane %v4779_v6, 1 }
0x3d4a   :  { %4780 = vrcp.f32 %v3245_v20 }
0x3d57   :  { %v4781_v23 = vpop.eup %4780 }
0x3d58   :  { %3261 = vrot.lane.b32.xlu0 %v4781_v23, %s5015_s19  ;;  %v3253_v41 = vmul.f32 %v4781_v23, %v3251_v22  ;;  %v3249_v42 = vmul.f32 %v4781_v23, %v3134_v12 }
0x3d5a   :  { %3255 = vrot.lane.b32.xlu1 %v3253_v41, %s5015_s19 }
0x3dca   :  { %v3262_v32 = vpop.permute.xlu0 %3261 }
0x3dcb   :  { %v3263_v35 = vrot.slane %v3262_v32, 1 }
0x3dcc   :  { %v3256_v46 = vpop.permute.xlu1 %3255 }
0x3dcd   :  { %v3258_v30 = vadd.f32 %v3256_v46, %v3249_v42 }
0x3dcf   :  { %4782 = vtanh.f32 %v3258_v30 }
0x3ddc   :  { %v4783_v31 = vpop.eup %4782 }
0x3ddd   :  { %3266 = vrot.lane.b32.xlu1 %v4783_v31, %s5015_s19 }
0x3e4f   :  { %v3267_v36 = vpop.permute.xlu1 %3266 }
0x3e50   :  { %v3269_v37 = vmul.f32 %v3267_v36, %v3263_v35 }
0x3e52   :  { %3270 = vst.msk [vmem:[#allocation5 + $0x1] sm:$0x1] %vm2190_vm4, %v3269_v37  ;;  %4185 = vmatmul.mubr.msk.f32.vlgmr.msra.gmra.mxu1 %vm162_vm1, %v3269_v37 }
0x3e53   :  { %3541 = vmatpush1.msra.mxu1 %v5728_v55  ;;  %3588 = vmatprep.mubr.f32.mxu1 %v5013_v0 }
0x3e54   :  { %3542 = vmatprep.subr.mxu1 %v5731_v56 }
0x3e55   :  { %3543 = vmatpush1.msra.mxu1 %v5734_v57 }
0x3e56   :  { %3544 = vmatprep.subr.mxu1 %v5736_v8 }
0x3e57   :  { %3545 = vmatpush1.msra.mxu1 %v5739_v11 }
0x3e58   :  { %3546 = vmatprep.subr.mxu1 %v5744_v27 }
0x3e59   :  { %3547 = vmatpush1.msra.mxu1 %v5747_v44 }
0x3e5a   :  { %3548 = vmatprep.subr.mxu1 %v5749_v58 }
0x3e5b   :  { %3549 = vmatpush1.msra.mxu1 %v5752_v60 }
0x3e5c   :  { %3550 = vmatprep.subr.mxu1 %v5755_v62 }
0x3e5d   :  { %3551 = vmatpush1.msra.mxu1 %v5757_v1 }
0x3e5e   :  { %3552 = vmatprep.subr.mxu1 %v5760_v3 }
0x3e5f   :  { %3553 = vmatpush1.msra.mxu1 %v5763_v15 }
0x3e60   :  { %3554 = vmatprep.subr.mxu1 %v5768_v17 }
0x3e61   :  { %3555 = vmatpush1.msra.mxu1 %v5770_v18 }
0x3e62   :  { %3788 = vmatprep.subr.mxu1 %v5726_v7 }
0x3f12   :  { %v3342_v39 = vpop.f32.mrf.mxu1 }
0x3f14   :  { %v3344_v40 = vpop.f32.mrf.mxu1 }
0x3f15   :  { %v3349_v43 = vcombine.low %v3342_v39, %v3344_v40 }
0x3f17   :  { %v3356_v48 = vrot.slane %v3349_v43, %v5822_v47  ;;  %v3520_v43 = vld [vmem:[#allocation3 + $0x4] ss:$8 sm:$0x3] }
0x3f19   :  { %v3363_v50 = vrot.slane %v3356_v48, %v5822_v47 }
0x3f1b   :  { %v3365_v51 = vadd.f32 %v3363_v50, %v3272_v4 }
0x3f1d   :  { %v4186_v34 = vmul.f32 -1.442695, %v3365_v51 }
0x3f1f   :  { %4784 = vpow2.f32 %v4186_v34 }
0x3f20   :  { %4786 = vtanh.f32 %v3365_v51 }
0x3f2c   :  { %v4785_v52 = vpop.eup %4784 }
0x3f2d   :  { %v3369_v53 = vadd.f32 1.0, %v4785_v52  ;;  %v4787_v45 = vpop.eup %4786 }
0x3f2e   :  { %v3375_v5 = vrot.slane %v4787_v45, 1 }
0x3f2f   :  { %4788 = vrcp.f32 %v3369_v53 }
0x3f3c   :  { %v4789_v54 = vpop.eup %4788 }
0x3f3d   :  { %3385 = vrot.lane.b32.xlu1 %v4789_v54, %s5015_s19  ;;  %v3377_v38 = vmul.f32 %v4789_v54, %v3375_v5  ;;  %v3373_v33 = vmul.f32 %v4789_v54, %v3258_v30 }
0x3f3f   :  { %3379 = vrot.lane.b32.xlu0 %v3377_v38, %s5015_s19 }
0x3faf   :  { %v3386_v12 = vpop.permute.xlu1 %3385 }
0x3fb0   :  { %v3387_v14 = vrot.slane %v3386_v12, 1 }
0x3fb1   :  { %v3380_v49 = vpop.permute.xlu0 %3379 }
0x3fb2   :  { %v3382_v9 = vadd.f32 %v3380_v49, %v3373_v33 }
0x3fb4   :  { %4790 = vtanh.f32 %v3382_v9 }
0x3fc1   :  { %v4791_v10 = vpop.eup %4790 }
0x3fc2   :  { %3390 = vrot.lane.b32.xlu0 %v4791_v10, %s5015_s19 }
0x4034   :  { %v3391_v16 = vpop.permute.xlu0 %3390 }
0x4035   :  { %v3393_v19 = vmul.f32 %v3391_v16, %v3387_v14 }
0x4037   :  { %3394 = vst.msk [vmem:[#allocation5 + $0x2] sm:$0x1] %vm2190_vm4, %v3393_v19  ;;  %4187 = vmatmul.mubr.msk.f32.vlgmr.msra.gmra.mxu0 %vm162_vm1, %v3393_v19 }
0x4038   :  { %3665 = vmatpush1.msra.mxu0 %v5728_v55  ;;  %3712 = vmatprep.mubr.f32.mxu0 %v5013_v0 }
0x4039   :  { %3666 = vmatprep.subr.mxu0 %v5731_v56 }
0x403a   :  { %3667 = vmatpush1.msra.mxu0 %v5734_v57 }
0x403b   :  { %3668 = vmatprep.subr.mxu0 %v5736_v8 }
0x403c   :  { %3669 = vmatpush1.msra.mxu0 %v5739_v11 }
0x403d   :  { %3670 = vmatprep.subr.mxu0 %v5744_v27 }
0x403e   :  { %3671 = vmatpush1.msra.mxu0 %v5747_v44 }
0x403f   :  { %3672 = vmatprep.subr.mxu0 %v5749_v58 }
0x4040   :  { %3673 = vmatpush1.msra.mxu0 %v5752_v60 }
0x4041   :  { %3674 = vmatprep.subr.mxu0 %v5755_v62 }
0x4042   :  { %3675 = vmatpush1.msra.mxu0 %v5757_v1 }
0x4043   :  { %3676 = vmatprep.subr.mxu0 %v5760_v3 }
0x4044   :  { %3677 = vmatpush1.msra.mxu0 %v5763_v15 }
0x4045   :  { %3678 = vmatprep.subr.mxu0 %v5768_v17 }
0x4046   :  { %3679 = vmatpush1.msra.mxu0 %v5770_v18 }
0x4047   :  { %3912 = vmatprep.subr.mxu0 %v5726_v7 }
0x40f7   :  { %v3466_v21 = vpop.f32.mrf.mxu0 }
0x40f9   :  { %v3468_v24 = vpop.f32.mrf.mxu0 }
0x40fa   :  { %v3473_v25 = vcombine.low %v3466_v21, %v3468_v24 }
0x40fc   :  { %v3480_v26 = vrot.slane %v3473_v25, %v5822_v47 }
0x40fe   :  { %v3487_v28 = vrot.slane %v3480_v26, %v5822_v47 }
0x4100   :  { %v3489_v59 = vadd.f32 %v3487_v28, %v3396_v29 }
0x4102   :  { %v4188_v61 = vmul.f32 -1.442695, %v3489_v59 }
0x4104   :  { %4792 = vpow2.f32 %v4188_v61 }
0x4105   :  { %4794 = vtanh.f32 %v3489_v59 }
0x4111   :  { %v4793_v63 = vpop.eup %4792 }
0x4112   :  { %v3493_v2 = vadd.f32 1.0, %v4793_v63  ;;  %v4795_v13 = vpop.eup %4794 }
0x4113   :  { %v3499_v20 = vrot.slane %v4795_v13, 1 }
0x4114   :  { %4796 = vrcp.f32 %v3493_v2  ;;  %v3768_v2 = vld [vmem:[#allocation3 + $0x6] ss:$8 sm:$0x3] }
0x4121   :  { %v4797_v6 = vpop.eup %4796 }
0x4122   :  { %3509 = vrot.lane.b32.xlu0 %v4797_v6, %s5015_s19  ;;  %v3501_v7 = vmul.f32 %v4797_v6, %v3499_v20  ;;  %v3497_v22 = vmul.f32 %v4797_v6, %v3382_v9 }
0x4124   :  { %3503 = vrot.lane.b32.xlu1 %v3501_v7, %s5015_s19 }
0x4194   :  { %v3510_v46 = vpop.permute.xlu0 %3509 }
0x4195   :  { %v3511_v30 = vrot.slane %v3510_v46, 1 }
0x4196   :  { %v3504_v23 = vpop.permute.xlu1 %3503 }
0x4197   :  { %v3506_v41 = vadd.f32 %v3504_v23, %v3497_v22 }
0x4199   :  { %4798 = vtanh.f32 %v3506_v41 }
0x41a6   :  { %v4799_v42 = vpop.eup %4798 }
0x41a7   :  { %3514 = vrot.lane.b32.xlu1 %v4799_v42, %s5015_s19 }
0x4219   :  { %v3515_v31 = vpop.permute.xlu1 %3514 }
0x421a   :  { %v3517_v32 = vmul.f32 %v3515_v31, %v3511_v30 }
0x421c   :  { %3518 = vst.msk [vmem:[#allocation5 + $0x3] sm:$0x1] %vm2190_vm4, %v3517_v32  ;;  %4189 = vmatmul.mubr.msk.f32.vlgmr.msra.gmra.mxu1 %vm162_vm1, %v3517_v32 }
0x421d   :  { %3789 = vmatpush1.msra.mxu1 %v5728_v55  ;;  %3836 = vmatprep.mubr.f32.mxu1 %v5013_v0 }
0x421e   :  { %3790 = vmatprep.subr.mxu1 %v5731_v56 }
0x421f   :  { %3791 = vmatpush1.msra.mxu1 %v5734_v57 }
0x4220   :  { %3792 = vmatprep.subr.mxu1 %v5736_v8 }
0x4221   :  { %3793 = vmatpush1.msra.mxu1 %v5739_v11 }
0x4222   :  { %3794 = vmatprep.subr.mxu1 %v5744_v27 }
0x4223   :  { %3795 = vmatpush1.msra.mxu1 %v5747_v44 }
0x4224   :  { %3796 = vmatprep.subr.mxu1 %v5749_v58 }
0x4225   :  { %3797 = vmatpush1.msra.mxu1 %v5752_v60 }
0x4226   :  { %3798 = vmatprep.subr.mxu1 %v5755_v62 }
0x4227   :  { %3799 = vmatpush1.msra.mxu1 %v5757_v1 }
0x4228   :  { %3800 = vmatprep.subr.mxu1 %v5760_v3 }
0x4229   :  { %3801 = vmatpush1.msra.mxu1 %v5763_v15 }
0x422a   :  { %3802 = vmatprep.subr.mxu1 %v5768_v17 }
0x422b   :  { %3803 = vmatpush1.msra.mxu1 %v5770_v18 }
0x422c   :  { %4508 = vmatprep.subr.mxu1 %v5013_v0 }
0x42dc   :  { %v3590_v35 = vpop.f32.mrf.mxu1 }
0x42de   :  { %v3592_v36 = vpop.f32.mrf.mxu1 }
0x42df   :  { %v3597_v37 = vcombine.low %v3590_v35, %v3592_v36 }
0x42e1   :  { %v3604_v39 = vrot.slane %v3597_v37, %v5822_v47 }
0x42e3   :  { %v3611_v40 = vrot.slane %v3604_v39, %v5822_v47 }
0x42e5   :  { %v3613_v48 = vadd.f32 %v3611_v40, %v3520_v43 }
0x42e7   :  { %v4190_v50 = vmul.f32 -1.442695, %v3613_v48 }
0x42e9   :  { %4800 = vpow2.f32 %v4190_v50 }
0x42ea   :  { %4802 = vtanh.f32 %v3613_v48 }
0x42f6   :  { %v4801_v4 = vpop.eup %4800 }
0x42f7   :  { %v3617_v51 = vadd.f32 1.0, %v4801_v4  ;;  %v4803_v34 = vpop.eup %4802 }
0x42f8   :  { %v3623_v52 = vrot.slane %v4803_v34, 1 }
0x42f9   :  { %4804 = vrcp.f32 %v3617_v51  ;;  %v3892_v51 = vld [vmem:[#allocation3 + $0x7] ss:$8 sm:$0x3] }
0x4306   :  { %v4805_v53 = vpop.eup %4804 }
0x4307   :  { %3633 = vrot.lane.b32.xlu1 %v4805_v53, %s5015_s19  ;;  %v3625_v45 = vmul.f32 %v4805_v53, %v3623_v52  ;;  %v3621_v5 = vmul.f32 %v4805_v53, %v3506_v41 }
0x4309   :  { %3627 = vrot.lane.b32.xlu0 %v3625_v45, %s5015_s19 }
0x4379   :  { %v3634_v49 = vpop.permute.xlu1 %3633 }
0x437a   :  { %v3635_v9 = vrot.slane %v3634_v49, 1  ;;  %v4022_v49 = vld [vmem:[%s6017_s13 + $0x30] sm:$0xff] }
0x437b   :  { %v3628_v54 = vpop.permute.xlu0 %3627 }
0x437c   :  { %v3630_v38 = vadd.f32 %v3628_v54, %v3621_v5 }
0x437e   :  { %4806 = vtanh.f32 %v3630_v38 }
0x438b   :  { %v4807_v33 = vpop.eup %4806 }
0x438c   :  { %3638 = vrot.lane.b32.xlu0 %v4807_v33, %s5015_s19 }
0x43fe   :  { %v3639_v10 = vpop.permute.xlu0 %3638 }
0x43ff   :  { %v3641_v12 = vmul.f32 %v3639_v10, %v3635_v9  ;;  %v4021_v9 = vld [vmem:[%s6017_s13 + $0x28] sm:$0xff] }
0x4401   :  { %3642 = vst.msk [vmem:[#allocation5 + $0x4] sm:$0x1] %vm2190_vm4, %v3641_v12  ;;  %4191 = vmatmul.mubr.msk.f32.vlgmr.msra.gmra.mxu0 %vm162_vm1, %v3641_v12 }
0x4402   :  { %3913 = vmatpush1.msra.mxu0 %v5728_v55  ;;  %3960 = vmatprep.mubr.f32.mxu0 %v5013_v0 }
0x4403   :  { %3914 = vmatprep.subr.mxu0 %v5731_v56 }
0x4404   :  { %3915 = vmatpush1.msra.mxu0 %v5734_v57 }
0x4405   :  { %3916 = vmatprep.subr.mxu0 %v5736_v8 }
0x4406   :  { %3917 = vmatpush1.msra.mxu0 %v5739_v11 }
0x4407   :  { %3918 = vmatprep.subr.mxu0 %v5744_v27  ;;  %v3644_v27 = vld [vmem:[#allocation3 + $0x5] ss:$8 sm:$0x3] }
0x4408   :  { %3919 = vmatpush1.msra.mxu0 %v5747_v44 }
0x4409   :  { %3920 = vmatprep.subr.mxu0 %v5749_v58 }
0x440a   :  { %3921 = vmatpush1.msra.mxu0 %v5752_v60 }
0x440b   :  { %3922 = vmatprep.subr.mxu0 %v5755_v62 }
0x440c   :  { %3923 = vmatpush1.msra.mxu0 %v5757_v1 }
0x440d   :  { %3924 = vmatprep.subr.mxu0 %v5760_v3 }
0x440e   :  { %3925 = vmatpush1.msra.mxu0 %v5763_v15 }
0x440f   :  { %3926 = vmatprep.subr.mxu0 %v5768_v17 }
0x4410   :  { %3927 = vmatpush1.msra.mxu0 %v5770_v18 }
0x44c1   :  { %v3714_v55 = vpop.f32.mrf.mxu0 }
0x44c3   :  { %v3716_v56 = vpop.f32.mrf.mxu0 }
0x44c4   :  { %v3721_v57 = vcombine.low %v3714_v55, %v3716_v56  ;;  %v4020_v56 = vld [vmem:[%s6017_s13 + $0x20] sm:$0xff] }
0x44c6   :  { %v3728_v8 = vrot.slane %v3721_v57, %v5822_v47  ;;  %v4019_v57 = vld [vmem:[%s6017_s13 + $0x18] sm:$0xff] }
0x44c8   :  { %v3735_v11 = vrot.slane %v3728_v8, %v5822_v47  ;;  %v4018_v8 = vld [vmem:[%s6017_s13 + $0x10] sm:$0xff] }
0x44ca   :  { %v3737_v44 = vadd.f32 %v3735_v11, %v3644_v27  ;;  %v4017_v11 = vld [vmem:[%s6017_s13 + $0x8] sm:$0xff]  ;;  %v4016_v27 = vld [vmem:[%s6017_s13] sm:$0xff] }
0x44cc   :  { %v4192_v58 = vmul.f32 -1.442695, %v3737_v44 }
0x44ce   :  { %4808 = vpow2.f32 %v4192_v58 }
0x44cf   :  { %4810 = vtanh.f32 %v3737_v44 }
0x44db   :  { %v4809_v60 = vpop.eup %4808 }
0x44dc   :  { %v3741_v62 = vadd.f32 1.0, %v4809_v60  ;;  %v4811_v1 = vpop.eup %4810 }
0x44dd   :  { %v3747_v3 = vrot.slane %v4811_v1, 1 }
0x44de   :  { %4812 = vrcp.f32 %v3741_v62 }
0x44eb   :  { %v4813_v15 = vpop.eup %4812 }
0x44ec   :  { %3757 = vrot.lane.b32.xlu0 %v4813_v15, %s5015_s19  ;;  %v3749_v17 = vmul.f32 %v4813_v15, %v3747_v3  ;;  %v3745_v18 = vmul.f32 %v4813_v15, %v3630_v38  ;;  %v4197_v15 = vld [vmem:[%s6018_s14] ss:$0 sm:$0xff] }
0x44ee   :  { %3751 = vrot.lane.b32.xlu1 %v3749_v17, %s5015_s19 }
0x455e   :  { %v3758_v21 = vpop.permute.xlu0 %3757 }
0x455f   :  { %v3759_v24 = vrot.slane %v3758_v21, 1 }
0x4560   :  { %v3752_v14 = vpop.permute.xlu1 %3751 }
0x4561   :  { %v3754_v16 = vadd.f32 %v3752_v14, %v3745_v18 }
0x4563   :  { %4814 = vtanh.f32 %v3754_v16 }
0x4570   :  { %v4815_v19 = vpop.eup %4814 }
0x4571   :  { %3762 = vrot.lane.b32.xlu1 %v4815_v19, %s5015_s19 }
0x45e3   :  { %v3763_v25 = vpop.permute.xlu1 %3762 }
0x45e4   :  { %v3765_v26 = vmul.f32 %v3763_v25, %v3759_v24 }
0x45e6   :  { %3766 = vst.msk [vmem:[#allocation5 + $0x5] sm:$0x1] %vm2190_vm4, %v3765_v26  ;;  %4193 = vmatmul.mubr.msk.f32.vlgmr.msra.gmra.mxu1 %vm162_vm1, %v3765_v26 }
0x45e7   :  { %4524 = vmatprep.mubr.msk.f32.mxu1 %vm5014_vm0, %v5013_v0 }
0x46a6   :  { %v3838_v28 = vpop.f32.mrf.mxu1 }
0x46a8   :  { %v3840_v29 = vpop.f32.mrf.mxu1 }
0x46a9   :  { %v3845_v59 = vcombine.low %v3838_v28, %v3840_v29 }
0x46ab   :  { %v3852_v61 = vrot.slane %v3845_v59, %v5822_v47 }
0x46ad   :  { %v3859_v63 = vrot.slane %v3852_v61, %v5822_v47 }
0x46af   :  { %v3861_v13 = vadd.f32 %v3859_v63, %v3768_v2 }
0x46b1   :  { %v4194_v20 = vmul.f32 -1.442695, %v3861_v13 }
0x46b3   :  { %4816 = vpow2.f32 %v4194_v20 }
0x46b4   :  { %4818 = vtanh.f32 %v3861_v13 }
0x46c0   :  { %v4817_v6 = vpop.eup %4816 }
0x46c1   :  { %v3865_v7 = vadd.f32 1.0, %v4817_v6  ;;  %v4819_v22 = vpop.eup %4818 }
0x46c2   :  { %v3871_v23 = vrot.slane %v4819_v22, 1 }
0x46c3   :  { %4820 = vrcp.f32 %v3865_v7 }
0x46d0   :  { %v4821_v41 = vpop.eup %4820 }
0x46d1   :  { %3881 = vrot.lane.b32.xlu1 %v4821_v41, %s5015_s19  ;;  %v3873_v42 = vmul.f32 %v4821_v41, %v3871_v23  ;;  %v3869_v46 = vmul.f32 %v4821_v41, %v3754_v16 }
0x46d3   :  { %3875 = vrot.lane.b32.xlu0 %v3873_v42, %s5015_s19 }
0x4743   :  { %v3882_v35 = vpop.permute.xlu1 %3881 }
0x4744   :  { %v3883_v36 = vrot.slane %v3882_v35, 1 }
0x4745   :  { %v3876_v30 = vpop.permute.xlu0 %3875 }
0x4746   :  { %v3878_v31 = vadd.f32 %v3876_v30, %v3869_v46 }
0x4748   :  { %4822 = vtanh.f32 %v3878_v31 }
0x4755   :  { %v4823_v32 = vpop.eup %4822 }
0x4756   :  { %3886 = vrot.lane.b32.xlu0 %v4823_v32, %s5015_s19 }
0x47c8   :  { %v3887_v37 = vpop.permute.xlu0 %3886 }
0x47c9   :  { %v3889_v39 = vmul.f32 %v3887_v37, %v3883_v36 }
0x47cb   :  { %3890 = vst.msk [vmem:[#allocation5 + $0x6] sm:$0x1] %vm2190_vm4, %v3889_v39  ;;  %4195 = vmatmul.mubr.msk.f32.vlgmr.msra.gmra.mxu0 %vm162_vm1, %v3889_v39 }
0x488b   :  { %v3962_v40 = vpop.f32.mrf.mxu0 }
0x488d   :  { %v3964_v43 = vpop.f32.mrf.mxu0 }
0x488e   :  { %v3969_v48 = vcombine.low %v3962_v40, %v3964_v43 }
0x4890   :  { %v3976_v50 = vrot.slane %v3969_v48, %v5822_v47 }
0x4892   :  { %v3983_v4 = vrot.slane %v3976_v50, %v5822_v47  ;;  %v4023_v47 = vld [vmem:[%s6017_s13 + $0x38] sm:$0xff]  ;;  %s5018_s13 = smov [#allocation18]  }
0x4893   :  { %4509 = vmatpush3.msra.mxu1 %v4023_v47  ;;  %s4111_s29 = sshll.u32 %s5018_s13, 4  ;;  %s4112_s29 = int_to_ptr.vmem [resolvable:$true] %s4111_s29 }
0x4894   :  { %v3985_v34 = vadd.f32 %v3983_v4, %v3892_v51  ;;  %4510 = vmatprep.subr.mxu1 %v5013_v0  ;;  %p4977_p8 = scmp.lt.s32.totalorder %s4112_s29, %s4112_s29 }
0x4895   :  { %4511 = vmatpush3.msra.mxu1 %v4022_v49 }
0x4896   :  { %v4196_v52 = vmul.f32 -1.442695, %v3985_v34  ;;  %4512 = vmatprep.subr.mxu1 %v5013_v0 }
0x4897   :  { %4513 = vmatpush3.msra.mxu1 %v4021_v9 }
0x4898   :  { %4824 = vpow2.f32 %v4196_v52  ;;  %4514 = vmatprep.subr.mxu1 %v5013_v0 }
0x4899   :  { %4826 = vtanh.f32 %v3985_v34  ;;  %4515 = vmatpush3.msra.mxu1 %v4020_v56 }
0x489a   :  { %4516 = vmatprep.subr.mxu1 %v5013_v0 }
0x489b   :  { %4517 = vmatpush3.msra.mxu1 %v4019_v57 }
0x489c   :  { %4518 = vmatprep.subr.mxu1 %v5013_v0 }
0x489d   :  { %4519 = vmatpush3.msra.mxu1 %v4018_v8 }
0x489e   :  { %4520 = vmatprep.subr.mxu1 %v5013_v0 }
0x489f   :  { %4521 = vmatpush3.msra.mxu1 %v4017_v11 }
0x48a0   :  { %4522 = vmatprep.subr.mxu1 %v5013_v0 }
0x48a1   :  { %4523 = vmatpush3.msra.mxu1 %v4016_v27 }
0x48a5   :  { %v4825_v53 = vpop.eup %4824 }
0x48a6   :  { %v3989_v45 = vadd.f32 1.0, %v4825_v53  ;;  %v4827_v5 = vpop.eup %4826 }
0x48a7   :  { %v3995_v54 = vrot.slane %v4827_v5, 1 }
0x48a8   :  { %4828 = vrcp.f32 %v3989_v45 }
0x48b5   :  { %v4829_v38 = vpop.eup %4828 }
0x48b6   :  { %4005 = vrot.lane.b32.xlu0 %v4829_v38, %s5015_s19  ;;  %v3997_v33 = vmul.f32 %v4829_v38, %v3995_v54  ;;  %v3993_v10 = vmul.f32 %v4829_v38, %v3878_v31 }
0x48b8   :  { %3999 = vrot.lane.b32.xlu1 %v3997_v33, %s5015_s19 }
0x4928   :  { %v4006_v58 = vpop.permute.xlu0 %4005 }
0x4929   :  { %v4007_v60 = vrot.slane %v4006_v58, 1 }
0x492a   :  { %v4000_v12 = vpop.permute.xlu1 %3999 }
0x492b   :  { %v4002_v55 = vadd.f32 %v4000_v12, %v3993_v10 }
0x492d   :  { %4830 = vtanh.f32 %v4002_v55 }
0x493a   :  { %v4831_v44 = vpop.eup %4830 }
0x493b   :  { %4010 = vrot.lane.b32.xlu1 %v4831_v44, %s5015_s19  ;;  %s4972_s19 = scalar_lea.vmem %s4112_s29, 128 }
0x493c   :  { %p4973_p7 = scmp.ne.s32.totalorder %s4112_s29, %s4972_s19  ;;  %p4978_p9 = scmp.lt.s32.totalorder %s4972_s19, %s4972_s19 }
0x493e   :  { %p4979_p10 = por %p4978_p9, %p4977_p8 }
0x4940   :  { %p4980_p11 = pnand %p4979_p10, %p4973_p7 }
0x49ad   :  { %v4011_v62 = vpop.permute.xlu1 %4010 }
0x49ae   :  { %v4013_v1 = vmul.f32 %v4011_v62, %v4007_v60 }
0x49b0   :  { %4014 = vst.msk [vmem:[#allocation5 + $0x7] sm:$0x1] %vm2190_vm4, %v4013_v1 }
0x49b7   :  { %v4015_v3 = vld [vmem:[#allocation5] sm:$0xff] }
0x49b8   :  { %4525 = vmatmul.mubr.msk.f32.vlgmr.msra.gmra.mxu1 %vm162_vm1, %v4015_v3 }
0x4a78   :  { %v4100_v0 = vpop.f32.mrf.mxu1 }
0x4a79   :  { %v4101_v17 = vadd.f32 %v4197_v15, %v4100_v0 }
0x4a7a   :  { %v4526_v18 = vpop.f32.mrf.mxu1 }
0x4a7b   :  { %4104 = vst.msk [vmem:[#allocation18] sm:$0xff] %vm162_vm1, %v4101_v17 }
0x4a7c   :  { %4983 = shalt.err (!%p4980_p11)
}
0x4a7d   :  { %4114 = dma.vmem_to_hbm [thread:$0]  %s4112_s29, 128, %s6019_s15, [#allocation8]  }
0x4a7e   :  { %5000 = dma.done.wait [#allocation8], 128  }
0x4a7f   :  { %5001 = vsyncadd [#allocation8], 4294967168 }
0x4a80   :  { %4118 = vsyncpa [#allocation7], 1 }
0x4a81   :  { %4119 = vsyncpa [#allocation10], 1 }
0x4a82   :  { %4120 = vsyncpa [#allocation13], 1 }
0x4a83   :  { %4121 = vsyncpa [#allocation16], 1 }
0x4a84   :  { %4122 = vsyncpa [#allocation8], 1 }

</bundles_post_ra>
